<compile_context>
chip_gen: v5e
topology: v5e:2x2
jax: 0.10.0
libtpu: 0.0.40
codegen_flags: <defaults>
</compile_context>

<pallas_src>
import numpy as np

import jax
import jax.numpy as jnp
from jax.experimental import pallas as pl
from jax.experimental.pallas import tpu as pltpu


def _round_up(a, m):
    return -(-a // m) * m


# ----------------------------------------------------------------------------
# Fused forward kernel (one grid step == one block of Bb images)
# ----------------------------------------------------------------------------
def _fused_cnn_kernel(x_ref, w1_ref, b1_ref, rs1_ref, cs1_ref,
                      w2_ref, b2_ref, rs2_ref, cs2_ref,
                      wf1_ref, bf1_ref, wf2_ref, bf2_ref, wf3_ref, bf3_ref,
                      o_ref):
    f32, bf16 = jnp.float32, jnp.bfloat16

    # All sizes are static, derived from the (static) ref shapes.
    K1 = w1_ref.shape[0]              # conv1 kernel height (3)
    N1 = w1_ref.shape[2]              # O1 * Wo1 (288)
    M1 = rs1_ref.shape[1]             # Bb * H   (stacked conv1 rows)
    R1 = rs1_ref.shape[0] // 2        # padded pool1 row-block height
    N1p = w2_ref.shape[1]             # O1 * P1w (144)
    C1 = _round_up(N1p, 128)          # lane-aligned start of the odd column block

    K2 = w2_ref.shape[0]              # conv2 kernel height (3)
    N2 = w2_ref.shape[2]              # O2 * Wo2 (224)
    M2 = rs2_ref.shape[1]             # Bb * P1h (stacked conv2 rows)
    R2 = rs2_ref.shape[0] // 2        # P2h * Bpad
    N2p = wf1_ref.shape[1]            # O2 * P2w (96)
    C2 = _round_up(N2p, 128)

    P2h = wf1_ref.shape[0]            # pooled height after pool2 (3)
    Bpad = R2 // P2h                  # per-h row padding (>= Bb, multiple of 8)
    Bb = o_ref.shape[1]
    hid = wf1_ref.shape[2]

    # ---- conv1 + bias + ReLU : channels folded into K, batch stacked on M -----
    acc1 = jnp.zeros((M1, N1), f32)
    for i in range(K1):
        acc1 = acc1 + jnp.dot(x_ref[0, i:i + M1, :], w1_ref[i],
                              preferred_element_type=f32)
    a1 = jnp.maximum(acc1 + b1_ref[...], 0.0).astype(bf16)          # (M1, 288)

    # ---- pool1: one (even|odd) row-select dot + max, one column-select dot + max
    rr1 = jnp.dot(rs1_ref[...], a1, preferred_element_type=f32)     # (2*R1, 288)
    r1 = jnp.maximum(rr1[:R1], rr1[R1:]).astype(bf16)               # (R1, 288)
    cc1 = jnp.dot(r1, cs1_ref[...], preferred_element_type=f32)     # (R1, C1+144)
    p1 = jnp.maximum(cc1[:, :N1p], cc1[:, C1:C1 + N1p]).astype(bf16)  # (R1, 144)
    # p1 rows: b*P1h + p (valid), trailing rows are zero padding for conv2 slices.

    # ---- conv2 + bias + ReLU ---------------------------------------------------
    acc2 = jnp.zeros((M2, N2), f32)
    for i in range(K2):
        acc2 = acc2 + jnp.dot(p1[i:i + M2, :], w2_ref[i],
                              preferred_element_type=f32)
    a2 = jnp.maximum(acc2 + b2_ref[...], 0.0).astype(bf16)          # (M2, 224)

    # ---- pool2 -------------------------------------------------------------------
    rr2 = jnp.dot(rs2_ref[...], a2, preferred_element_type=f32)     # (2*R2, 224)
    r2 = jnp.maximum(rr2[:R2], rr2[R2:]).astype(bf16)               # (R2, 224)
    cc2 = jnp.dot(r2, cs2_ref[...], preferred_element_type=f32)     # (R2, C2+96)
    p2 = jnp.maximum(cc2[:, :N2p], cc2[:, C2:C2 + N2p]).astype(bf16)  # (R2, 96)
    # p2 rows: h*Bpad + b  (h-major so fc1 slices are 8-sublane aligned)

    # ---- fc1 + ReLU (NCHW flatten folded into per-h weight slabs) ---------------
    accf = jnp.zeros((Bb, hid), f32)
    for h in range(P2h):
        accf = accf + jnp.dot(p2[h * Bpad:h * Bpad + Bb, :], wf1_ref[h],
                              preferred_element_type=f32)
    f1 = jnp.maximum(accf + bf1_ref[...], 0.0).astype(bf16)         # (Bb, 96)

    # ---- fc2 + ReLU, fc3 ---------------------------------------------------------
    f2 = jnp.maximum(jnp.dot(f1, wf2_ref[...], preferred_element_type=f32)
                     + bf2_ref[...], 0.0).astype(bf16)              # (Bb, 32)
    f3 = (jnp.dot(f2, wf3_ref[...], preferred_element_type=f32)
          + bf3_ref[...])                                           # (Bb, 2) f32
    o_ref[0] = f3


# ----------------------------------------------------------------------------
# Wrapper: single fused pallas_call, grid over image-blocks (parallel -> both TCs)
# ----------------------------------------------------------------------------
def cnn_forward(x, kp, block_batch):
    B, C, H, W = x.shape
    Bb = block_batch
    assert B % Bb == 0
    nblocks = B // Bb
    K = kp["w1"].shape[0]
    CW = kp["w1"].shape[1]
    assert CW == C * W
    HB = _round_up(Bb * H + (K - 1), 8)   # per-block rows incl. bottom zero pad

    # Relayout once outside the kernel: lane = c*W + w, batch stacked along rows,
    # bf16 to halve the HBM->VMEM bytes.  Bottom zero-pad keeps conv1's shifted
    # slices in-bounds for the last image in each block.
    xs = jnp.transpose(x, (0, 2, 1, 3)).reshape(nblocks, Bb * H, CW)
    xs = jnp.pad(xs, ((0, 0), (0, HB - Bb * H), (0, 0))).astype(jnp.bfloat16)

    args = [xs,
            kp["w1"], kp["b1"], kp["rs1"], kp["cs1"],
            kp["w2"], kp["b2"], kp["rs2"], kp["cs2"],
            kp["wf1"], kp["bf1"], kp["wf2"], kp["bf2"], kp["wf3"], kp["bf3"]]

    in_specs = [pl.BlockSpec((1, HB, CW), lambda g: (g, 0, 0))]
    for a in args[1:]:  # weights / biases / selectors: resident, fetched once
        in_specs.append(pl.BlockSpec(a.shape, lambda g, _n=a.ndim: (0,) * _n))

    out = pl.pallas_call(
        _fused_cnn_kernel,
        out_shape=jax.ShapeDtypeStruct((nblocks, Bb, 2), jnp.float32),
        grid_spec=pltpu.PrefetchScalarGridSpec(
            num_scalar_prefetch=0,
            grid=(nblocks,),
            in_specs=in_specs,
            out_specs=pl.BlockSpec((1, Bb, 2), lambda g: (g, 0, 0)),
        ),
        compiler_params=pltpu.CompilerParams(
            dimension_semantics=("parallel",)),
    )(*args)
    return out.reshape(B, 2)


def _pick_block_batch(B):
    # Stack up to 4 images per grid step (bounded accumulator / vreg pressure),
    # preferring >= 2 grid steps so v7x's second TensorCore also gets work.
    for bb in (4, 2, 1):
        if B % bb == 0 and B // bb >= 2:
            return bb
    for bb in (4, 2, 1):
        if B % bb == 0:
            return bb
    return 1


# ----------------------------------------------------------------------------
# Host-side (numpy) parameter preparation: PyTorch layout -> kernel layout
# ----------------------------------------------------------------------------
def prepare_kernel_params(params, H, W, Bb):
    w1 = np.asarray(params["conv1_w"], np.float32)    # (16, 3, 3, 3)
    b1 = np.asarray(params["conv1_b"], np.float32)
    w2 = np.asarray(params["conv2_w"], np.float32)    # (32, 16, 3, 3)
    b2 = np.asarray(params["conv2_b"], np.float32)
    fc1w = np.asarray(params["fc1_w"], np.float32)    # (hid, 288)
    fc1b = np.asarray(params["fc1_b"], np.float32)
    fc2w = np.asarray(params["fc2_w"], np.float32)    # (32, hid)
    fc2b = np.asarray(params["fc2_b"], np.float32)
    fc3w = np.asarray(params["fc3_w"], np.float32)    # (2, 32)
    fc3b = np.asarray(params["fc3_b"], np.float32)

    O1, C, K, _ = w1.shape                 # 16, 3, 3
    O2 = w2.shape[0]                       # 32
    Wo1, Ho1 = W - K + 1, H - K + 1        # 18, 18
    P1w, P1h = Wo1 // 2, Ho1 // 2          # 9, 9
    Wo2, Ho2 = P1w - K + 1, P1h - K + 1    # 7, 7
    P2w, P2h = Wo2 // 2, Ho2 // 2          # 3, 3
    hid = fc1w.shape[0]
    assert fc1w.shape[1] == O2 * P2h * P2w

    # conv1: input channels folded into K -> (K, C*W, O1*Wo1)
    #   slab[i, c*W + wo + j, o*Wo1 + wo] = w1[o, c, i, j]
    w1big = np.zeros((K, C * W, O1 * Wo1), np.float32)
    for i in range(K):
        for c in range(C):
            for j in range(K):
                for wo in range(Wo1):
                    w1big[i, c * W + wo + j, wo::Wo1] = w1[:, c, i, j]
    b1row = np.repeat(b1, Wo1)[None, :]                       # (1, 288)

    # pool1 row selector: even block rows [0:R1), odd block rows [R1:2*R1)
    # row mapping (per image b, pooled row p): out b*P1h + p <- conv row b*H + 2p(+1)
    # R1 is padded to a multiple of 8 and >= Bb*P1h + K-1 so the zero tail doubles
    # as conv2's bottom zero padding.
    M1 = Bb * H
    R1 = _round_up(Bb * P1h + (K - 1), 8)
    rs1 = np.zeros((2 * R1, M1), np.float32)
    for b in range(Bb):
        for p in range(P1h):
            rs1[b * P1h + p, b * H + 2 * p] = 1.0
            rs1[R1 + b * P1h + p, b * H + 2 * p + 1] = 1.0

    # pool1 column selector: even lanes [0:N1p), odd lanes [C1:C1+N1p) (128-aligned)
    N1p = O1 * P1w
    C1 = _round_up(N1p, 128)
    cs1 = np.zeros((O1 * Wo1, C1 + N1p), np.float32)
    for o in range(O1):
        for q in range(P1w):
            cs1[o * Wo1 + 2 * q, o * P1w + q] = 1.0
            cs1[o * Wo1 + 2 * q + 1, C1 + o * P1w + q] = 1.0

    # conv2 slabs: lhs lane = c*P1w + q, out lane = o*Wo2 + wo
    w2big = np.zeros((K, O1 * P1w, O2 * Wo2), np.float32)
    for i in range(K):
        for c in range(O1):
            for j in range(K):
                for wo in range(Wo2):
                    w2big[i, c * P1w + wo + j, wo::Wo2] = w2[:, c, i, j]
    b2row = np.repeat(b2, Wo2)[None, :]                       # (1, 224)

    # pool2 row selector: output rows h-major (row = p*Bpad + b) so the fc1 slices
    # p2[h*Bpad : h*Bpad+Bb] start at 8-sublane-aligned offsets.
    M2 = Bb * P1h
    Bpad = _round_up(Bb, 8)
    R2 = P2h * Bpad
    rs2 = np.zeros((2 * R2, M2), np.float32)
    for b in range(Bb):
        for p in range(P2h):
            rs2[p * Bpad + b, b * P1h + 2 * p] = 1.0
            rs2[R2 + p * Bpad + b, b * P1h + 2 * p + 1] = 1.0

    # pool2 column selector
    N2p = O2 * P2w
    C2 = _round_up(N2p, 128)
    cs2 = np.zeros((O2 * Wo2, C2 + N2p), np.float32)
    for o in range(O2):
        for q in range(P2w):
            cs2[o * Wo2 + 2 * q, o * P2w + q] = 1.0
            cs2[o * Wo2 + 2 * q + 1, C2 + o * P2w + q] = 1.0

    # fc1: fold torch's NCHW flatten (feature = o*9 + h*3 + q) into per-h slabs
    # whose lhs lane layout matches p2 (lane = o*P2w + q).
    wf1big = np.zeros((P2h, O2 * P2w, hid), np.float32)
    for h in range(P2h):
        for o in range(O2):
            for q in range(P2w):
                wf1big[h, o * P2w + q, :] = fc1w[:, o * (P2h * P2w) + h * P2w + q]

    bf16, f32 = jnp.bfloat16, jnp.float32
    return {
        "w1": jnp.asarray(w1big, bf16),   "b1": jnp.asarray(b1row, f32),
        "rs1": jnp.asarray(rs1, bf16),    "cs1": jnp.asarray(cs1, bf16),
        "w2": jnp.asarray(w2big, bf16),   "b2": jnp.asarray(b2row, f32),
        "rs2": jnp.asarray(rs2, bf16),    "cs2": jnp.asarray(cs2, bf16),
        "wf1": jnp.asarray(wf1big, bf16), "bf1": jnp.asarray(fc1b[None, :], f32),
        "wf2": jnp.asarray(fc2w.T, bf16), "bf2": jnp.asarray(fc2b[None, :], f32),
        "wf3": jnp.asarray(fc3w.T, bf16), "bf3": jnp.asarray(fc3b[None, :], f32),
    }


# ----------------------------------------------------------------------------
# Deterministic PyTorch-layout parameter init (nn.Conv2d / nn.Linear style)
# ----------------------------------------------------------------------------
def init_params(key, H, W):
    s1 = H - 2
    p1 = s1 // 2
    s2 = p1 - 2
    p2 = s2 // 2
    flat = 32 * p2 * p2
    hid = 32 * min(int(H / 4 - 1.5), int(W / 4 - 1.5))
    assert flat == 32 * int(H / 4 - 1.5) * int(W / 4 - 1.5)

    keys = jax.random.split(key, 10)

    def uni(k, shape, fan_in):
        bound = 1.0 / jnp.sqrt(jnp.float32(fan_in))
        return jax.random.uniform(k, shape, jnp.float32, -bound, bound)

    return {
        "conv1_w": uni(keys[0], (16, 3, 3, 3), 3 * 9),
        "conv1_b": uni(keys[1], (16,), 3 * 9),
        "conv2_w": uni(keys[2], (32, 16, 3, 3), 16 * 9),
        "conv2_b": uni(keys[3], (32,), 16 * 9),
        "fc1_w": uni(keys[4], (hid, flat), flat),
        "fc1_b": uni(keys[5], (hid,), flat),
        "fc2_w": uni(keys[6], (32, hid), hid),
        "fc2_b": uni(keys[7], (32,), hid),
        "fc3_w": uni(keys[8], (2, 32), 32),
        "fc3_b": uni(keys[9], (2,), 32),
    }


# ----------------------------------------------------------------------------
# Pure-JAX reference of the PyTorch forward (f32) for a sanity tolerance check
# ----------------------------------------------------------------------------
def cnn_reference(x, params):
    def conv2d(y, w, b):
        y = jax.lax.conv_general_dilated(
            y, w, (1, 1), "VALID", dimension_numbers=("NCHW", "OIHW", "NCHW"))
        return y + b[None, :, None, None]

    def maxpool2(y):
        B, C, H, W = y.shape
        y = y[:, :, : (H // 2) * 2, : (W // 2) * 2]
        y = y.reshape(B, C, H // 2, 2, W // 2, 2)
        return y.max(axis=(3, 5))

    y = maxpool2(jax.nn.relu(conv2d(x, params["conv1_w"], params["conv1_b"])))
    y = maxpool2(jax.nn.relu(conv2d(y, params["conv2_w"], params["conv2_b"])))
    y = y.reshape(y.shape[0], -1)
    y = jax.nn.relu(y @ params["fc1_w"].T + params["fc1_b"])
    y = jax.nn.relu(y @ params["fc2_w"].T + params["fc2_b"])
    return y @ params["fc3_w"].T + params["fc3_b"]


if __name__ == "__main__":
    B, C, H, W = 8, 3, 20, 20
    key = jax.random.PRNGKey(0)
    kx, kparam = jax.random.split(key)
    x = jax.random.normal(kx, (B, C, H, W), jnp.float32)

    params = init_params(kparam, H, W)                 # PyTorch-layout weights
    Bb = _pick_block_batch(B)                          # 4 -> grid=(2,)
    kparams = prepare_kernel_params(params, H, W, Bb)  # kernel-layout slabs (host numpy)

    fwd = jax.jit(cnn_forward, static_argnums=2)
    out = jax.block_until_ready(fwd(x, kparams, Bb))

    assert out.shape == (B, 2), out.shape
    assert out.dtype == jnp.float32
    assert bool(jnp.isfinite(out).all())

    # bf16 matmul operands -> loose tolerance vs the f32 reference
    ref = jax.block_until_ready(jax.jit(cnn_reference)(x, params))
    np.testing.assert_allclose(np.asarray(out), np.asarray(ref), rtol=0.1, atol=0.05)

    print("KERNEL_OK")
</pallas_src>

<mosaic_0001>
module attributes {stable_mosaic.version = 11 : i64} {
  func.func @_fused_cnn_kernel(%arg0: i32, %arg1: memref<1x88x60xbf16, #tpu.memory_space<vmem>>, %arg2: memref<3x60x288xbf16, #tpu.memory_space<vmem>>, %arg3: memref<1x288xf32, #tpu.memory_space<vmem>>, %arg4: memref<80x80xbf16, #tpu.memory_space<vmem>>, %arg5: memref<288x400xbf16, #tpu.memory_space<vmem>>, %arg6: memref<3x144x224xbf16, #tpu.memory_space<vmem>>, %arg7: memref<1x224xf32, #tpu.memory_space<vmem>>, %arg8: memref<48x36xbf16, #tpu.memory_space<vmem>>, %arg9: memref<224x224xbf16, #tpu.memory_space<vmem>>, %arg10: memref<3x96x96xbf16, #tpu.memory_space<vmem>>, %arg11: memref<1x96xf32, #tpu.memory_space<vmem>>, %arg12: memref<96x32xbf16, #tpu.memory_space<vmem>>, %arg13: memref<1x32xf32, #tpu.memory_space<vmem>>, %arg14: memref<32x2xbf16, #tpu.memory_space<vmem>>, %arg15: memref<1x2xf32, #tpu.memory_space<vmem>>, %arg16: memref<1x4x2xf32, #tpu.memory_space<vmem>>) attributes {dimension_semantics = [#tpu.dimension_semantics<parallel>], iteration_bounds = array<i64: 2>, scalar_prefetch = 0 : i64, scratch_operands = 0 : i64, tpu.core_type = #tpu.core_type<tc>, window_params = [{transform_indices = @transform_0, window_bounds = array<i64: 1, 88, 60>}, {pipeline_mode = #tpu.pipeline_mode<synchronous>, transform_indices = @transform_1, window_bounds = array<i64: 3, 60, 288>}, {pipeline_mode = #tpu.pipeline_mode<synchronous>, transform_indices = @transform_2, window_bounds = array<i64: 1, 288>}, {pipeline_mode = #tpu.pipeline_mode<synchronous>, transform_indices = @transform_3, window_bounds = array<i64: 80, 80>}, {pipeline_mode = #tpu.pipeline_mode<synchronous>, transform_indices = @transform_4, window_bounds = array<i64: 288, 400>}, {pipeline_mode = #tpu.pipeline_mode<synchronous>, transform_indices = @transform_5, window_bounds = array<i64: 3, 144, 224>}, {pipeline_mode = #tpu.pipeline_mode<synchronous>, transform_indices = @transform_6, window_bounds = array<i64: 1, 224>}, {pipeline_mode = #tpu.pipeline_mode<synchronous>, transform_indices = @transform_7, window_bounds = array<i64: 48, 36>}, {pipeline_mode = #tpu.pipeline_mode<synchronous>, transform_indices = @transform_8, window_bounds = array<i64: 224, 224>}, {pipeline_mode = #tpu.pipeline_mode<synchronous>, transform_indices = @transform_9, window_bounds = array<i64: 3, 96, 96>}, {pipeline_mode = #tpu.pipeline_mode<synchronous>, transform_indices = @transform_10, window_bounds = array<i64: 1, 96>}, {pipeline_mode = #tpu.pipeline_mode<synchronous>, transform_indices = @transform_11, window_bounds = array<i64: 96, 32>}, {pipeline_mode = #tpu.pipeline_mode<synchronous>, transform_indices = @transform_12, window_bounds = array<i64: 1, 32>}, {pipeline_mode = #tpu.pipeline_mode<synchronous>, transform_indices = @transform_13, window_bounds = array<i64: 32, 2>}, {pipeline_mode = #tpu.pipeline_mode<synchronous>, transform_indices = @transform_14, window_bounds = array<i64: 1, 2>}, {transform_indices = @transform_15, window_bounds = array<i64: 1, 4, 2>}]} {
    %cst = arith.constant 0.000000e+00 : f32
    %0 = vector.broadcast %cst : f32 to vector<80x288xf32>
    %c0 = arith.constant 0 : index
    %c0_0 = arith.constant 0 : index
    %c0_1 = arith.constant 0 : index
    %1 = vector.load %arg1[%c0, %c0_0, %c0_1] : memref<1x88x60xbf16, #tpu.memory_space<vmem>>, vector<1x80x60xbf16>
    %2 = vector.shape_cast %1 : vector<1x80x60xbf16> to vector<80x60xbf16>
    %c0_2 = arith.constant 0 : index
    %c0_3 = arith.constant 0 : index
    %c0_4 = arith.constant 0 : index
    %3 = vector.load %arg2[%c0_2, %c0_3, %c0_4] : memref<3x60x288xbf16, #tpu.memory_space<vmem>>, vector<1x60x288xbf16>
    %4 = vector.shape_cast %3 : vector<1x60x288xbf16> to vector<60x288xbf16>
    %cst_5 = arith.constant dense<0.000000e+00> : vector<80x288xf32>
    %5 = tpu.matmul %2, %4, %cst_5 {dimension_numbers = #tpu.dot_dimension_numbers<[1], [0], [0], [1], [0, 0, 1, 1], [], []>} : vector<80x60xbf16>, vector<60x288xbf16>, vector<80x288xf32> -> vector<80x288xf32>
    %6 = arith.addf %0, %5 : vector<80x288xf32>
    %c0_6 = arith.constant 0 : index
    %c1 = arith.constant 1 : index
    %c0_7 = arith.constant 0 : index
    %7 = vector.load %arg1[%c0_6, %c1, %c0_7] : memref<1x88x60xbf16, #tpu.memory_space<vmem>>, vector<1x80x60xbf16>
    %8 = vector.shape_cast %7 : vector<1x80x60xbf16> to vector<80x60xbf16>
    %c1_8 = arith.constant 1 : index
    %c0_9 = arith.constant 0 : index
    %c0_10 = arith.constant 0 : index
    %9 = vector.load %arg2[%c1_8, %c0_9, %c0_10] : memref<3x60x288xbf16, #tpu.memory_space<vmem>>, vector<1x60x288xbf16>
    %10 = vector.shape_cast %9 : vector<1x60x288xbf16> to vector<60x288xbf16>
    %cst_11 = arith.constant dense<0.000000e+00> : vector<80x288xf32>
    %11 = tpu.matmul %8, %10, %cst_11 {dimension_numbers = #tpu.dot_dimension_numbers<[1], [0], [0], [1], [0, 0, 1, 1], [], []>} : vector<80x60xbf16>, vector<60x288xbf16>, vector<80x288xf32> -> vector<80x288xf32>
    %12 = arith.addf %6, %11 : vector<80x288xf32>
    %c0_12 = arith.constant 0 : index
    %c2 = arith.constant 2 : index
    %c0_13 = arith.constant 0 : index
    %13 = vector.load %arg1[%c0_12, %c2, %c0_13] : memref<1x88x60xbf16, #tpu.memory_space<vmem>>, vector<1x80x60xbf16>
    %14 = vector.shape_cast %13 : vector<1x80x60xbf16> to vector<80x60xbf16>
    %c2_14 = arith.constant 2 : index
    %c0_15 = arith.constant 0 : index
    %c0_16 = arith.constant 0 : index
    %15 = vector.load %arg2[%c2_14, %c0_15, %c0_16] : memref<3x60x288xbf16, #tpu.memory_space<vmem>>, vector<1x60x288xbf16>
    %16 = vector.shape_cast %15 : vector<1x60x288xbf16> to vector<60x288xbf16>
    %cst_17 = arith.constant dense<0.000000e+00> : vector<80x288xf32>
    %17 = tpu.matmul %14, %16, %cst_17 {dimension_numbers = #tpu.dot_dimension_numbers<[1], [0], [0], [1], [0, 0, 1, 1], [], []>} : vector<80x60xbf16>, vector<60x288xbf16>, vector<80x288xf32> -> vector<80x288xf32>
    %18 = arith.addf %12, %17 : vector<80x288xf32>
    %c0_18 = arith.constant 0 : index
    %c0_19 = arith.constant 0 : index
    %19 = vector.load %arg3[%c0_18, %c0_19] : memref<1x288xf32, #tpu.memory_space<vmem>>, vector<1x288xf32>
    %20 = vector.broadcast %19 : vector<1x288xf32> to vector<80x288xf32>
    %21 = arith.addf %18, %20 : vector<80x288xf32>
    %cst_20 = arith.constant 0.000000e+00 : f32
    %22 = vector.broadcast %cst_20 : f32 to vector<80x288xf32>
    %23 = arith.maximumf %21, %22 : vector<80x288xf32>
    %24 = arith.truncf %23 : vector<80x288xf32> to vector<80x288xbf16>
    %c0_21 = arith.constant 0 : index
    %c0_22 = arith.constant 0 : index
    %25 = vector.load %arg4[%c0_21, %c0_22] : memref<80x80xbf16, #tpu.memory_space<vmem>>, vector<80x80xbf16>
    %cst_23 = arith.constant dense<0.000000e+00> : vector<80x288xf32>
    %26 = tpu.matmul %25, %24, %cst_23 {dimension_numbers = #tpu.dot_dimension_numbers<[1], [0], [0], [1], [0, 0, 1, 1], [], []>} : vector<80x80xbf16>, vector<80x288xbf16>, vector<80x288xf32> -> vector<80x288xf32>
    %27 = vector.extract_strided_slice %26 {offsets = [0, 0], sizes = [40, 288], strides = [1, 1]} : vector<80x288xf32> to vector<40x288xf32>
    %28 = vector.extract_strided_slice %26 {offsets = [40, 0], sizes = [40, 288], strides = [1, 1]} : vector<80x288xf32> to vector<40x288xf32>
    %29 = arith.maximumf %27, %28 : vector<40x288xf32>
    %30 = arith.truncf %29 : vector<40x288xf32> to vector<40x288xbf16>
    %c0_24 = arith.constant 0 : index
    %c0_25 = arith.constant 0 : index
    %31 = vector.load %arg5[%c0_24, %c0_25] : memref<288x400xbf16, #tpu.memory_space<vmem>>, vector<288x400xbf16>
    %cst_26 = arith.constant dense<0.000000e+00> : vector<40x400xf32>
    %32 = tpu.matmul %30, %31, %cst_26 {dimension_numbers = #tpu.dot_dimension_numbers<[1], [0], [0], [1], [0, 0, 1, 1], [], []>} : vector<40x288xbf16>, vector<288x400xbf16>, vector<40x400xf32> -> vector<40x400xf32>
    %33 = vector.extract_strided_slice %32 {offsets = [0, 0], sizes = [40, 144], strides = [1, 1]} : vector<40x400xf32> to vector<40x144xf32>
    %34 = vector.extract_strided_slice %32 {offsets = [0, 256], sizes = [40, 144], strides = [1, 1]} : vector<40x400xf32> to vector<40x144xf32>
    %35 = arith.maximumf %33, %34 : vector<40x144xf32>
    %36 = arith.truncf %35 : vector<40x144xf32> to vector<40x144xbf16>
    %cst_27 = arith.constant 0.000000e+00 : f32
    %37 = vector.broadcast %cst_27 : f32 to vector<36x224xf32>
    %38 = vector.extract_strided_slice %36 {offsets = [0, 0], sizes = [36, 144], strides = [1, 1]} : vector<40x144xbf16> to vector<36x144xbf16>
    %c0_28 = arith.constant 0 : index
    %c0_29 = arith.constant 0 : index
    %c0_30 = arith.constant 0 : index
    %39 = vector.load %arg6[%c0_28, %c0_29, %c0_30] : memref<3x144x224xbf16, #tpu.memory_space<vmem>>, vector<1x144x224xbf16>
    %40 = vector.shape_cast %39 : vector<1x144x224xbf16> to vector<144x224xbf16>
    %cst_31 = arith.constant dense<0.000000e+00> : vector<36x224xf32>
    %41 = tpu.matmul %38, %40, %cst_31 {dimension_numbers = #tpu.dot_dimension_numbers<[1], [0], [0], [1], [0, 0, 1, 1], [], []>} : vector<36x144xbf16>, vector<144x224xbf16>, vector<36x224xf32> -> vector<36x224xf32>
    %42 = arith.addf %37, %41 : vector<36x224xf32>
    %43 = vector.extract_strided_slice %36 {offsets = [1, 0], sizes = [36, 144], strides = [1, 1]} : vector<40x144xbf16> to vector<36x144xbf16>
    %c1_32 = arith.constant 1 : index
    %c0_33 = arith.constant 0 : index
    %c0_34 = arith.constant 0 : index
    %44 = vector.load %arg6[%c1_32, %c0_33, %c0_34] : memref<3x144x224xbf16, #tpu.memory_space<vmem>>, vector<1x144x224xbf16>
    %45 = vector.shape_cast %44 : vector<1x144x224xbf16> to vector<144x224xbf16>
    %cst_35 = arith.constant dense<0.000000e+00> : vector<36x224xf32>
    %46 = tpu.matmul %43, %45, %cst_35 {dimension_numbers = #tpu.dot_dimension_numbers<[1], [0], [0], [1], [0, 0, 1, 1], [], []>} : vector<36x144xbf16>, vector<144x224xbf16>, vector<36x224xf32> -> vector<36x224xf32>
    %47 = arith.addf %42, %46 : vector<36x224xf32>
    %48 = vector.extract_strided_slice %36 {offsets = [2, 0], sizes = [36, 144], strides = [1, 1]} : vector<40x144xbf16> to vector<36x144xbf16>
    %c2_36 = arith.constant 2 : index
    %c0_37 = arith.constant 0 : index
    %c0_38 = arith.constant 0 : index
    %49 = vector.load %arg6[%c2_36, %c0_37, %c0_38] : memref<3x144x224xbf16, #tpu.memory_space<vmem>>, vector<1x144x224xbf16>
    %50 = vector.shape_cast %49 : vector<1x144x224xbf16> to vector<144x224xbf16>
    %cst_39 = arith.constant dense<0.000000e+00> : vector<36x224xf32>
    %51 = tpu.matmul %48, %50, %cst_39 {dimension_numbers = #tpu.dot_dimension_numbers<[1], [0], [0], [1], [0, 0, 1, 1], [], []>} : vector<36x144xbf16>, vector<144x224xbf16>, vector<36x224xf32> -> vector<36x224xf32>
    %52 = arith.addf %47, %51 : vector<36x224xf32>
    %c0_40 = arith.constant 0 : index
    %c0_41 = arith.constant 0 : index
    %53 = vector.load %arg7[%c0_40, %c0_41] : memref<1x224xf32, #tpu.memory_space<vmem>>, vector<1x224xf32>
    %54 = vector.broadcast %53 : vector<1x224xf32> to vector<36x224xf32>
    %55 = arith.addf %52, %54 : vector<36x224xf32>
    %cst_42 = arith.constant 0.000000e+00 : f32
    %56 = vector.broadcast %cst_42 : f32 to vector<36x224xf32>
    %57 = arith.maximumf %55, %56 : vector<36x224xf32>
    %58 = arith.truncf %57 : vector<36x224xf32> to vector<36x224xbf16>
    %c0_43 = arith.constant 0 : index
    %c0_44 = arith.constant 0 : index
    %59 = vector.load %arg8[%c0_43, %c0_44] : memref<48x36xbf16, #tpu.memory_space<vmem>>, vector<48x36xbf16>
    %cst_45 = arith.constant dense<0.000000e+00> : vector<48x224xf32>
    %60 = tpu.matmul %59, %58, %cst_45 {dimension_numbers = #tpu.dot_dimension_numbers<[1], [0], [0], [1], [0, 0, 1, 1], [], []>} : vector<48x36xbf16>, vector<36x224xbf16>, vector<48x224xf32> -> vector<48x224xf32>
    %61 = vector.extract_strided_slice %60 {offsets = [0, 0], sizes = [24, 224], strides = [1, 1]} : vector<48x224xf32> to vector<24x224xf32>
    %62 = vector.extract_strided_slice %60 {offsets = [24, 0], sizes = [24, 224], strides = [1, 1]} : vector<48x224xf32> to vector<24x224xf32>
    %63 = arith.maximumf %61, %62 : vector<24x224xf32>
    %64 = arith.truncf %63 : vector<24x224xf32> to vector<24x224xbf16>
    %c0_46 = arith.constant 0 : index
    %c0_47 = arith.constant 0 : index
    %65 = vector.load %arg9[%c0_46, %c0_47] : memref<224x224xbf16, #tpu.memory_space<vmem>>, vector<224x224xbf16>
    %cst_48 = arith.constant dense<0.000000e+00> : vector<24x224xf32>
    %66 = tpu.matmul %64, %65, %cst_48 {dimension_numbers = #tpu.dot_dimension_numbers<[1], [0], [0], [1], [0, 0, 1, 1], [], []>} : vector<24x224xbf16>, vector<224x224xbf16>, vector<24x224xf32> -> vector<24x224xf32>
    %67 = vector.extract_strided_slice %66 {offsets = [0, 0], sizes = [24, 96], strides = [1, 1]} : vector<24x224xf32> to vector<24x96xf32>
    %68 = vector.extract_strided_slice %66 {offsets = [0, 128], sizes = [24, 96], strides = [1, 1]} : vector<24x224xf32> to vector<24x96xf32>
    %69 = arith.maximumf %67, %68 : vector<24x96xf32>
    %70 = arith.truncf %69 : vector<24x96xf32> to vector<24x96xbf16>
    %cst_49 = arith.constant 0.000000e+00 : f32
    %71 = vector.broadcast %cst_49 : f32 to vector<4x96xf32>
    %72 = vector.extract_strided_slice %70 {offsets = [0, 0], sizes = [4, 96], strides = [1, 1]} : vector<24x96xbf16> to vector<4x96xbf16>
    %c0_50 = arith.constant 0 : index
    %c0_51 = arith.constant 0 : index
    %c0_52 = arith.constant 0 : index
    %73 = vector.load %arg10[%c0_50, %c0_51, %c0_52] : memref<3x96x96xbf16, #tpu.memory_space<vmem>>, vector<1x96x96xbf16>
    %74 = vector.shape_cast %73 : vector<1x96x96xbf16> to vector<96x96xbf16>
    %cst_53 = arith.constant dense<0.000000e+00> : vector<4x96xf32>
    %75 = tpu.matmul %72, %74, %cst_53 {dimension_numbers = #tpu.dot_dimension_numbers<[1], [0], [0], [1], [0, 0, 1, 1], [], []>} : vector<4x96xbf16>, vector<96x96xbf16>, vector<4x96xf32> -> vector<4x96xf32>
    %76 = arith.addf %71, %75 : vector<4x96xf32>
    %77 = vector.extract_strided_slice %70 {offsets = [8, 0], sizes = [4, 96], strides = [1, 1]} : vector<24x96xbf16> to vector<4x96xbf16>
    %c1_54 = arith.constant 1 : index
    %c0_55 = arith.constant 0 : index
    %c0_56 = arith.constant 0 : index
    %78 = vector.load %arg10[%c1_54, %c0_55, %c0_56] : memref<3x96x96xbf16, #tpu.memory_space<vmem>>, vector<1x96x96xbf16>
    %79 = vector.shape_cast %78 : vector<1x96x96xbf16> to vector<96x96xbf16>
    %cst_57 = arith.constant dense<0.000000e+00> : vector<4x96xf32>
    %80 = tpu.matmul %77, %79, %cst_57 {dimension_numbers = #tpu.dot_dimension_numbers<[1], [0], [0], [1], [0, 0, 1, 1], [], []>} : vector<4x96xbf16>, vector<96x96xbf16>, vector<4x96xf32> -> vector<4x96xf32>
    %81 = arith.addf %76, %80 : vector<4x96xf32>
    %82 = vector.extract_strided_slice %70 {offsets = [16, 0], sizes = [4, 96], strides = [1, 1]} : vector<24x96xbf16> to vector<4x96xbf16>
    %c2_58 = arith.constant 2 : index
    %c0_59 = arith.constant 0 : index
    %c0_60 = arith.constant 0 : index
    %83 = vector.load %arg10[%c2_58, %c0_59, %c0_60] : memref<3x96x96xbf16, #tpu.memory_space<vmem>>, vector<1x96x96xbf16>
    %84 = vector.shape_cast %83 : vector<1x96x96xbf16> to vector<96x96xbf16>
    %cst_61 = arith.constant dense<0.000000e+00> : vector<4x96xf32>
    %85 = tpu.matmul %82, %84, %cst_61 {dimension_numbers = #tpu.dot_dimension_numbers<[1], [0], [0], [1], [0, 0, 1, 1], [], []>} : vector<4x96xbf16>, vector<96x96xbf16>, vector<4x96xf32> -> vector<4x96xf32>
    %86 = arith.addf %81, %85 : vector<4x96xf32>
    %c0_62 = arith.constant 0 : index
    %c0_63 = arith.constant 0 : index
    %87 = vector.load %arg11[%c0_62, %c0_63] : memref<1x96xf32, #tpu.memory_space<vmem>>, vector<1x96xf32>
    %88 = vector.broadcast %87 : vector<1x96xf32> to vector<4x96xf32>
    %89 = arith.addf %86, %88 : vector<4x96xf32>
    %cst_64 = arith.constant 0.000000e+00 : f32
    %90 = vector.broadcast %cst_64 : f32 to vector<4x96xf32>
    %91 = arith.maximumf %89, %90 : vector<4x96xf32>
    %92 = arith.truncf %91 : vector<4x96xf32> to vector<4x96xbf16>
    %c0_65 = arith.constant 0 : index
    %c0_66 = arith.constant 0 : index
    %93 = vector.load %arg12[%c0_65, %c0_66] : memref<96x32xbf16, #tpu.memory_space<vmem>>, vector<96x32xbf16>
    %cst_67 = arith.constant dense<0.000000e+00> : vector<4x32xf32>
    %94 = tpu.matmul %92, %93, %cst_67 {dimension_numbers = #tpu.dot_dimension_numbers<[1], [0], [0], [1], [0, 0, 1, 1], [], []>} : vector<4x96xbf16>, vector<96x32xbf16>, vector<4x32xf32> -> vector<4x32xf32>
    %c0_68 = arith.constant 0 : index
    %c0_69 = arith.constant 0 : index
    %95 = vector.load %arg13[%c0_68, %c0_69] : memref<1x32xf32, #tpu.memory_space<vmem>>, vector<1x32xf32>
    %96 = vector.broadcast %95 : vector<1x32xf32> to vector<4x32xf32>
    %97 = arith.addf %94, %96 : vector<4x32xf32>
    %cst_70 = arith.constant 0.000000e+00 : f32
    %98 = vector.broadcast %cst_70 : f32 to vector<4x32xf32>
    %99 = arith.maximumf %97, %98 : vector<4x32xf32>
    %100 = arith.truncf %99 : vector<4x32xf32> to vector<4x32xbf16>
    %c0_71 = arith.constant 0 : index
    %c0_72 = arith.constant 0 : index
    %101 = vector.load %arg14[%c0_71, %c0_72] : memref<32x2xbf16, #tpu.memory_space<vmem>>, vector<32x2xbf16>
    %cst_73 = arith.constant dense<0.000000e+00> : vector<4x2xf32>
    %102 = tpu.matmul %100, %101, %cst_73 {dimension_numbers = #tpu.dot_dimension_numbers<[1], [0], [0], [1], [0, 0, 1, 1], [], []>} : vector<4x32xbf16>, vector<32x2xbf16>, vector<4x2xf32> -> vector<4x2xf32>
    %c0_74 = arith.constant 0 : index
    %c0_75 = arith.constant 0 : index
    %103 = vector.load %arg15[%c0_74, %c0_75] : memref<1x2xf32, #tpu.memory_space<vmem>>, vector<1x2xf32>
    %104 = vector.broadcast %103 : vector<1x2xf32> to vector<4x2xf32>
    %105 = arith.addf %102, %104 : vector<4x2xf32>
    %c0_76 = arith.constant 0 : index
    %c0_77 = arith.constant 0 : index
    %c0_78 = arith.constant 0 : index
    %106 = vector.load %arg16[%c0_76, %c0_77, %c0_78] : memref<1x4x2xf32, #tpu.memory_space<vmem>>, vector<1x4x2xf32>
    %107 = vector.shape_cast %106 : vector<1x4x2xf32> to vector<4x2xf32>
    %108 = vector.shape_cast %105 : vector<4x2xf32> to vector<1x4x2xf32>
    tpu.vector_store %arg16[%c0_76, %c0_77, %c0_78], %108 {strides = array<i32>} : memref<1x4x2xf32, #tpu.memory_space<vmem>>, vector<1x4x2xf32>,
    return
  }
  func.func @transform_0(%arg0: i32) -> (i32, i32, i32) {
    %c0_i32 = arith.constant 0 : i32
    %c0_i32_0 = arith.constant 0 : i32
    %c0_i32_1 = arith.constant 0 : i32
    return %arg0, %c0_i32, %c0_i32_0 : i32, i32, i32
  }
  func.func @transform_1(%arg0: i32) -> (i32, i32, i32) {
    %c0_i32 = arith.constant 0 : i32
    %c0_i32_0 = arith.constant 0 : i32
    %c0_i32_1 = arith.constant 0 : i32
    %c0_i32_2 = arith.constant 0 : i32
    return %c0_i32, %c0_i32_0, %c0_i32_1 : i32, i32, i32
  }
  func.func @transform_2(%arg0: i32) -> (i32, i32) {
    %c0_i32 = arith.constant 0 : i32
    %c0_i32_0 = arith.constant 0 : i32
    %c0_i32_1 = arith.constant 0 : i32
    return %c0_i32, %c0_i32_0 : i32, i32
  }
  func.func @transform_3(%arg0: i32) -> (i32, i32) {
    %c0_i32 = arith.constant 0 : i32
    %c0_i32_0 = arith.constant 0 : i32
    %c0_i32_1 = arith.constant 0 : i32
    return %c0_i32, %c0_i32_0 : i32, i32
  }
  func.func @transform_4(%arg0: i32) -> (i32, i32) {
    %c0_i32 = arith.constant 0 : i32
    %c0_i32_0 = arith.constant 0 : i32
    %c0_i32_1 = arith.constant 0 : i32
    return %c0_i32, %c0_i32_0 : i32, i32
  }
  func.func @transform_5(%arg0: i32) -> (i32, i32, i32) {
    %c0_i32 = arith.constant 0 : i32
    %c0_i32_0 = arith.constant 0 : i32
    %c0_i32_1 = arith.constant 0 : i32
    %c0_i32_2 = arith.constant 0 : i32
    return %c0_i32, %c0_i32_0, %c0_i32_1 : i32, i32, i32
  }
  func.func @transform_6(%arg0: i32) -> (i32, i32) {
    %c0_i32 = arith.constant 0 : i32
    %c0_i32_0 = arith.constant 0 : i32
    %c0_i32_1 = arith.constant 0 : i32
    return %c0_i32, %c0_i32_0 : i32, i32
  }
  func.func @transform_7(%arg0: i32) -> (i32, i32) {
    %c0_i32 = arith.constant 0 : i32
    %c0_i32_0 = arith.constant 0 : i32
    %c0_i32_1 = arith.constant 0 : i32
    return %c0_i32, %c0_i32_0 : i32, i32
  }
  func.func @transform_8(%arg0: i32) -> (i32, i32) {
    %c0_i32 = arith.constant 0 : i32
    %c0_i32_0 = arith.constant 0 : i32
    %c0_i32_1 = arith.constant 0 : i32
    return %c0_i32, %c0_i32_0 : i32, i32
  }
  func.func @transform_9(%arg0: i32) -> (i32, i32, i32) {
    %c0_i32 = arith.constant 0 : i32
    %c0_i32_0 = arith.constant 0 : i32
    %c0_i32_1 = arith.constant 0 : i32
    %c0_i32_2 = arith.constant 0 : i32
    return %c0_i32, %c0_i32_0, %c0_i32_1 : i32, i32, i32
  }
  func.func @transform_10(%arg0: i32) -> (i32, i32) {
    %c0_i32 = arith.constant 0 : i32
    %c0_i32_0 = arith.constant 0 : i32
    %c0_i32_1 = arith.constant 0 : i32
    return %c0_i32, %c0_i32_0 : i32, i32
  }
  func.func @transform_11(%arg0: i32) -> (i32, i32) {
    %c0_i32 = arith.constant 0 : i32
    %c0_i32_0 = arith.constant 0 : i32
    %c0_i32_1 = arith.constant 0 : i32
    return %c0_i32, %c0_i32_0 : i32, i32
  }
  func.func @transform_12(%arg0: i32) -> (i32, i32) {
    %c0_i32 = arith.constant 0 : i32
    %c0_i32_0 = arith.constant 0 : i32
    %c0_i32_1 = arith.constant 0 : i32
    return %c0_i32, %c0_i32_0 : i32, i32
  }
  func.func @transform_13(%arg0: i32) -> (i32, i32) {
    %c0_i32 = arith.constant 0 : i32
    %c0_i32_0 = arith.constant 0 : i32
    %c0_i32_1 = arith.constant 0 : i32
    return %c0_i32, %c0_i32_0 : i32, i32
  }
  func.func @transform_14(%arg0: i32) -> (i32, i32) {
    %c0_i32 = arith.constant 0 : i32
    %c0_i32_0 = arith.constant 0 : i32
    %c0_i32_1 = arith.constant 0 : i32
    return %c0_i32, %c0_i32_0 : i32, i32
  }
  func.func @transform_15(%arg0: i32) -> (i32, i32, i32) {
    %c0_i32 = arith.constant 0 : i32
    %c0_i32_0 = arith.constant 0 : i32
    %c0_i32_1 = arith.constant 0 : i32
    return %arg0, %c0_i32, %c0_i32_0 : i32, i32, i32
  }
}

</mosaic_0001>

<bundles_post_ra>
// kernel: cnn_forward.1
= control target key start
LH: loop header
LB: loop body
LE: loop exit
PB: predicated region body
PF: predicated region fallthrough
CT: control target
= control target key end

     0   :  { %s5145_s18 = smov 0   ;;  %s7065_s0 = inlined_call_operand.vmem [shape: bf16[2,88,60], index: 0, kind: input, shape index: {}]   ;;  %s7066_s1 = inlined_call_operand.vmem [shape: bf16[3,60,288], index: 1, kind: input, shape index: {}]   ;;  %s7067_s2 = inlined_call_operand.vmem [shape: f32[1,288], index: 2, kind: input, shape index: {}]   ;;  %s7068_s3 = inlined_call_operand.vmem [shape: bf16[80,80], index: 3, kind: input, shape index: {}]   ;;  %s7069_s4 = inlined_call_operand.vmem [shape: bf16[288,400], index: 4, kind: input, shape index: {}]   ;;  %s7070_s5 = inlined_call_operand.vmem [shape: bf16[3,144,224], index: 5, kind: input, shape index: {}]   ;;  %s7071_s6 = inlined_call_operand.vmem [shape: f32[1,224], index: 6, kind: input, shape index: {}]   ;;  %s7072_s7 = inlined_call_operand.vmem [shape: bf16[48,36], index: 7, kind: input, shape index: {}]   ;;  %s7073_s8 = inlined_call_operand.vmem [shape: bf16[224,224], index: 8, kind: input, shape index: {}]   ;;  %s7074_s9 = inlined_call_operand.vmem [shape: bf16[3,96,96], index: 9, kind: input, shape index: {}]   ;;  %s7075_s10 = inlined_call_operand.vmem [shape: f32[1,96], index: 10, kind: input, shape index: {}]   ;;  %s7076_s11 = inlined_call_operand.vmem [shape: bf16[96,32], index: 11, kind: input, shape index: {}]   ;;  %s7077_s12 = inlined_call_operand.vmem [shape: f32[1,32], index: 12, kind: input, shape index: {}]   ;;  %s7078_s13 = inlined_call_operand.vmem [shape: bf16[32,2], index: 13, kind: input, shape index: {}]   ;;  %s7079_s14 = inlined_call_operand.vmem [shape: f32[1,2], index: 14, kind: input, shape index: {}]   ;;  %s7080_s15 = inlined_call_operand.vmem [shape: f32[2,4,2], index: 15, kind: output, shape index: {}]  }
   0x1 LB: > { %s3692_s19 = sadd.s32 4294967295, %s5063_s18   ;;  %p3696_p0 = scmp.ge.s32.totalorder %s5063_s18, 1  ;;  %s5063_s18 = sphi %s5145_s18, %s25_s18  }
   0x2   : > { %p437_p1 = scmp.lt.s32.totalorder %s5063_s18, 3 }
   0x4   : > { %p438_p2 = pnand %p3696_p0, %p437_p1 }
   0x5   : > { %p5159_p3 = scmp.lt.s32.totalorder (!%p438_p2), %s3692_s19, 1 }
   0x6   : > { %441 = sbr.rel (%p438_p2) target bundleno = 1912 (0x778), region = 80 }
   0xb   : > { %v3769_v0 = vld [vmem:[%s7066_s1 + $0xa8] sm:$0xf]  ;;  %v4836_v1 = vld [vmem:[%s7066_s1 + $0xb0] sm:$0x30]  ;;  %vm688_vm0 = vcmask 1045504   ;;  %s7083_s19 = smov (!%p5159_p3, %s3692_s19), 1 }
   0xc   : > { %v3770_v2 = vor.u32 %v4836_v1, %v3769_v0  ;;  %v4835_v3 = vld [vmem:[%s7066_s1 + $0xac] sm:$0xf]  ;;  %v3771_v4 = vld [vmem:[%s7066_s1 + $0xb4] sm:$0x30]  ;;  %v3777_v5 = vld [vmem:[%s7066_s1 + $0xb0] sm:$0xf] }
   0xd   : > { %v3774_v6 = vor.u32 %v4835_v3, %v3771_v4  ;;  %v4837_v7 = vld [vmem:[%s7066_s1 + $0xb8] sm:$0x30]  ;;  %v3832_v8 = vld [vmem:[%s7066_s1 + $0x48] sm:$0xf]  ;;  %v4824_v9 = vld [vmem:[%s7066_s1 + $0x50] sm:$0x30] }
   0xe   : > { %v690_v10 = vsel %vm688_vm0, %v3770_v2, 0  ;;  %v3778_v11 = vor.u32 %v4837_v7, %v3777_v5  ;;  %v3833_v12 = vor.u32 %v4824_v9, %v3832_v8  ;;  %v3757_v13 = vld [vmem:[%s7066_s1 + $0x90] sm:$0xf]  ;;  %v4833_v14 = vld [vmem:[%s7066_s1 + $0x98] sm:$0xf0]  ;;  %s5045_s21 = smul.u32 44, %s7083_s19 }
   0xf   : > { %702 = vmatpush.bf16.msra.mxu0 %v690_v10  ;;  %v693_v15 = vsel %vm688_vm0, %v3774_v6, 0  ;;  %v3758_v16 = vor.u32 %v4833_v14, %v3757_v13  ;;  %v4832_v17 = vld [vmem:[%s7066_s1 + $0x94] sm:$0xf]  ;;  %v3759_v18 = vld [vmem:[%s7066_s1 + $0x9c] sm:$0xf0]  ;;  %vm672_vm1 = vcmask 490496  }
  0x10   : > { %736 = vmatpush.bf16.msra.mxu1 %v693_v15  ;;  %v696_v19 = vsel %vm688_vm0, %v3778_v11, 0  ;;  %v872_v20 = vsel %vm688_vm0, %v3833_v12, 0  ;;  %v3762_v21 = vor.u32 %v4832_v17, %v3759_v18  ;;  %v3765_v22 = vld [vmem:[%s7066_s1 + $0x98] sm:$0xf]  ;;  %v4834_v23 = vld [vmem:[%s7066_s1 + $0xa0] sm:$0xf0]  ;;  %s5265_s24 = scalar_lea.vmem %s7065_s0, %s5045_s21 }
  0x11   : > { %770 = vmatpush.bf16.msra.mxu2 %v696_v19  ;;  %884 = vmatpush.bf16.msra.mxu3 %v872_v20  ;;  %v3766_v24 = vor.u32 %v4834_v23, %v3765_v22  ;;  %v3820_v25 = vld [vmem:[%s7066_s1 + $0x30] sm:$0xf]  ;;  %v4821_v26 = vld [vmem:[%s7066_s1 + $0x38] sm:$0xf0]  ;;  %v3745_v27 = vld [vmem:[%s7066_s1 + $0x78] sm:$0xf] }
  0x12   : > { %v3821_v28 = vor.u32 %v4821_v26, %v3820_v25  ;;  %v4830_v29 = vld [vmem:[%s7066_s1 + $0x80] sm:$0xf0]  ;;  %v4829_v30 = vld [vmem:[%s7066_s1 + $0x7c] sm:$0xf]  ;;  %v3747_v31 = vld [vmem:[%s7066_s1 + $0x84] sm:$0xf0] }
  0x13   : > { %703 = vmatpush.bf16.msra.mxu0 %v3758_v16  ;;  %v3746_v32 = vor.u32 %v4830_v29, %v3745_v27  ;;  %v3753_v33 = vld [vmem:[%s7066_s1 + $0x80] sm:$0xf]  ;;  %v4831_v34 = vld [vmem:[%s7066_s1 + $0x88] sm:$0xf0]  ;;  %v3808_v35 = vld [vmem:[%s7066_s1 + $0x18] sm:$0xf]  ;;  %v3750_v36 = vor.u32 %v4829_v30, %v3747_v31 }
  0x14   : > { %737 = vmatpush.bf16.msra.mxu1 %v3762_v21  ;;  %v4818_v37 = vld [vmem:[%s7066_s1 + $0x20] sm:$0xf0]  ;;  %v3733_v38 = vld [vmem:[%s7066_s1 + $0x60] sm:$0xf]  ;;  %v4827_v39 = vld [vmem:[%s7066_s1 + $0x68] sm:$0xf0]  ;;  %v3754_v40 = vor.u32 %v4831_v34, %v3753_v33 }
  0x15   : > { %771 = vmatpush.bf16.msra.mxu2 %v3766_v24  ;;  %885 = vmatpush.bf16.msra.mxu3 %v3821_v28  ;;  %v3809_v41 = vor.u32 %v4818_v37, %v3808_v35  ;;  %v4826_v42 = vld [vmem:[%s7066_s1 + $0x64] sm:$0xf]  ;;  %v3735_v43 = vld [vmem:[%s7066_s1 + $0x6c] sm:$0xf0]  ;;  %v3741_v44 = vld [vmem:[%s7066_s1 + $0x68] sm:$0xf]  ;;  %v3734_v48 = vor.u32 %v4827_v39, %v3733_v38 }
  0x16   : > { %v4828_v45 = vld [vmem:[%s7066_s1 + $0x70] sm:$0xf0]  ;;  %v3796_v46 = vld [vmem:[%s7066_s1] sm:$0xf]  ;;  %v4815_v47 = vld [vmem:[%s7066_s1 + $0x8] sm:$0xf0]  ;;  %v3738_v49 = vor.u32 %v4826_v42, %v3735_v43 }
  0x17   : > { %704 = vmatpush.bf16.msra.mxu0 %v3746_v32  ;;  %v3742_v50 = vor.u32 %v4828_v45, %v3741_v44  ;;  %v3797_v51 = vor.u32 %v4815_v47, %v3796_v46  ;;  %v5268_v52 = vld [vmem:[%s5265_s24] sm:$0xff]   ;;  %v5271_v53 = vld [vmem:[%s5265_s24 + $0x8] sm:$0xff]  ;;  %vm566_vm2 = vsmask.f32 7424  ;;  %v5283_v61 = vld [vmem:[%s5265_s24 + $0x10] sm:$0xff]  ;;  %vm1003_vm3 = vcmask 1046528  }
  0x18   : > { %738 = vmatpush.bf16.msra.mxu1 %v3750_v36  ;;  %v568_v54 = vshrl.u32 %v5268_v52, 16  ;;  %v570_v55 = vshll.u32 %v5268_v52, 16  ;;  %v575_v56 = vshll.u32 %v5271_v53, 16  ;;  %v579_v62 = vshrl.u32 %v5271_v53, 16  ;;  %v5294_v3 = vld [vmem:[%s5265_s24 + $0x18] sm:$0xff]  ;;  %v5307_v13 = vld [vmem:[%s5265_s24 + $0x20] sm:$0xff] }
  0x19   : > { %772 = vmatpush.bf16.msra.mxu2 %v3754_v40  ;;  %886 = vmatpush.bf16.msra.mxu3 %v3809_v41  ;;  %v583_v63 = vshll.u32 %v5283_v61, 16  ;;  %v4823_v4 = vld [vmem:[%s7066_s1 + $0x4c] sm:$0xf]  ;;  %v3834_v5 = vld [vmem:[%s7066_s1 + $0x54] sm:$0x30]  ;;  %v587_v8 = vshrl.u32 %v5283_v61, 16 }
  0x1a   : > { %v572_v57 = vrot.slane %v570_v55, 1  ;;  %v577_v58 = vrot.slane %v575_v56, 1  ;;  %v3837_v6 = vor.u32 %v4823_v4, %v3834_v5  ;;  %v591_v9 = vshll.u32 %v5294_v3, 16  ;;  %v3840_v14 = vld [vmem:[%s7066_s1 + $0x50] sm:$0xf]  ;;  %s3698_s21 = sshll.u32 %s7083_s19, 2 }
  0x1b   : > { %705 = vmatpush.bf16.msra.mxu0 %v3734_v48  ;;  %v585_v1 = vrot.slane %v583_v63, 1  ;;  %v4825_v15 = vld [vmem:[%s7066_s1 + $0x58] sm:$0x30]  ;;  %v3911_v16 = vld [vmem:[%s7066_s1 + $0x108] sm:$0xf]  ;;  %v595_v21 = vshrl.u32 %v5294_v3, 16  ;;  %s492_s27 = scalar_lea.vmem %s7080_s15, %s3698_s21 }
  0x1c   : > { %739 = vmatpush.bf16.msra.mxu1 %v3738_v49  ;;  %v573_v59 = vor.u32 %v572_v57, %v568_v54  ;;  %v581_v0 = vor.u32 %v579_v62, %v577_v58  ;;  %v875_v7 = vsel %vm688_vm0, %v3837_v6, 0  ;;  %v593_v11 = vrot.slane %v591_v9, 1  ;;  %v4848_v18 = vld [vmem:[%s7066_s1 + $0x110] sm:$0x30]  ;;  %v4847_v19 = vld [vmem:[%s7066_s1 + $0x10c] sm:$0xf] }
  0x1d   : > { %773 = vmatpush.bf16.msra.mxu2 %v3742_v50  ;;  %887 = vmatpush.bf16.msra.mxu3 %v3797_v51  ;;  %v589_v10 = vor.u32 %v587_v8, %v585_v1  ;;  %v3841_v17 = vor.u32 %v4825_v15, %v3840_v14  ;;  %v3913_v20 = vld [vmem:[%s7066_s1 + $0x114] sm:$0x30]  ;;  %v3912_v22 = vor.u32 %v4848_v18, %v3911_v16  ;;  %v599_v24 = vshll.u32 %v5307_v13, 16  ;;  %v4820_v26 = vld [vmem:[%s7066_s1 + $0x34] sm:$0xf] }
  0x1e   : > { %v578_v60 = vsel %vm566_vm2, %v573_v59, %v577_v58  ;;  %v586_v2 = vsel %vm566_vm2, %v581_v0, %v585_v1  ;;  %v3916_v23 = vor.u32 %v4847_v19, %v3913_v20  ;;  %v3822_v27 = vld [vmem:[%s7066_s1 + $0x3c] sm:$0xf0]  ;;  %v3828_v31 = vld [vmem:[%s7066_s1 + $0x38] sm:$0xf]  ;;  %v4822_v32 = vld [vmem:[%s7066_s1 + $0x40] sm:$0xf0]  ;;  %v597_v62 = vor.u32 %v595_v21, %v593_v11 }
  0x1f   : > { %3779 = vmatmul.msk.bf16.vlgmr.msra.gmra.mxu0 %vm672_vm1, %v578_v60  ;;  %3784 = vmatmul.msk.bf16.vlgmr.msra.gmra.mxu1 %vm672_vm1, %v578_v60  ;;  %v594_v12 = vsel %vm566_vm2, %v589_v10, %v593_v11  ;;  %v878_v25 = vsel %vm688_vm0, %v3841_v17, 0  ;;  %v1092_v28 = vsel %vm688_vm0, %v3912_v22, 0  ;;  %v3825_v30 = vor.u32 %v4820_v26, %v3822_v27  ;;  %v3899_v34 = vld [vmem:[%s7066_s1 + $0xf0] sm:$0xf]  ;;  %v4845_v35 = vld [vmem:[%s7066_s1 + $0xf8] sm:$0xf0] }
  0x20   : > { %3842 = vmatmul.msk.bf16.vlgmr.msra.gmra.mxu3 %vm672_vm1, %v5268_v52  ;;  %3789 = vmatmul.msk.bf16.vlgmr.msra.gmra.mxu2 %vm672_vm1, %v578_v60  ;;  %v1095_v29 = vsel %vm688_vm0, %v3916_v23, 0  ;;  %v3829_v33 = vor.u32 %v4822_v32, %v3828_v31  ;;  %v4844_v36 = vld [vmem:[%s7066_s1 + $0xf4] sm:$0xf]  ;;  %v3900_v37 = vor.u32 %v4845_v35, %v3899_v34  ;;  %v3901_v38 = vld [vmem:[%s7066_s1 + $0xfc] sm:$0xf0]  ;;  %v601_v63 = vrot.slane %v599_v24, 1 }
  0x21   : > { %918 = vmatpush.bf16.msrb.mxu0 %v875_v7  ;;  %952 = vmatpush.bf16.msrb.mxu1 %v878_v25  ;;  %v4817_v39 = vld [vmem:[%s7066_s1 + $0x1c] sm:$0xf]  ;;  %v3810_v40 = vld [vmem:[%s7066_s1 + $0x24] sm:$0xf0]  ;;  %v3904_v41 = vor.u32 %v4844_v36, %v3901_v38  ;;  %v3816_v43 = vld [vmem:[%s7066_s1 + $0x20] sm:$0xf] }
  0x22   : > { %1104 = vmatpush.bf16.msrb.mxu2 %v1092_v28  ;;  %1138 = vmatpush.bf16.msrb.mxu3 %v1095_v29  ;;  %v3813_v42 = vor.u32 %v4817_v39, %v3810_v40  ;;  %v4819_v44 = vld [vmem:[%s7066_s1 + $0x28] sm:$0xf0]  ;;  %v3887_v45 = vld [vmem:[%s7066_s1 + $0xd8] sm:$0xf]  ;;  %v4842_v47 = vld [vmem:[%s7066_s1 + $0xe0] sm:$0xf0]  ;;  %v602_v7 = vsel %vm566_vm2, %v597_v62, %v601_v63 }
  0x23   : > { %v3817_v46 = vor.u32 %v4819_v44, %v3816_v43  ;;  %v4841_v48 = vld [vmem:[%s7066_s1 + $0xdc] sm:$0xf]  ;;  %v3889_v49 = vld [vmem:[%s7066_s1 + $0xe4] sm:$0xf0]  ;;  %v3888_v50 = vor.u32 %v4842_v47, %v3887_v45  ;;  %v4814_v54 = vld [vmem:[%s7066_s1 + $0x4] sm:$0xf] }
  0x24   : > { %v3892_v51 = vor.u32 %v4841_v48, %v3889_v49  ;;  %v3798_v55 = vld [vmem:[%s7066_s1 + $0xc] sm:$0xf0]  ;;  %v3804_v56 = vld [vmem:[%s7066_s1 + $0x8] sm:$0xf]  ;;  %v4816_v58 = vld [vmem:[%s7066_s1 + $0x10] sm:$0xf0] }
  0x25   : > { %919 = vmatpush.bf16.msrb.mxu0 %v3825_v30  ;;  %953 = vmatpush.bf16.msrb.mxu1 %v3829_v33  ;;  %v3801_v57 = vor.u32 %v4814_v54, %v3798_v55  ;;  %v3875_v59 = vld [vmem:[%s7066_s1 + $0xc0] sm:$0xf]  ;;  %v4839_v60 = vld [vmem:[%s7066_s1 + $0xc8] sm:$0xf0]  ;;  %v4838_v0 = vld [vmem:[%s7066_s1 + $0xc4] sm:$0xf]  ;;  %v3805_v4 = vor.u32 %v4816_v58, %v3804_v56 }
  0x26   : > { %1105 = vmatpush.bf16.msrb.mxu2 %v3900_v37  ;;  %1139 = vmatpush.bf16.msrb.mxu3 %v3904_v41  ;;  %v3877_v1 = vld [vmem:[%s7066_s1 + $0xcc] sm:$0xf0]  ;;  %v3876_v5 = vor.u32 %v4839_v60, %v3875_v59  ;;  %v603_v10 = vshrl.u32 %v5307_v13, 16  ;;  %v5042_v16 = vld [vmem:[%s5265_s24] sm:$0xf0]  ;;  %v1005_v20 = vrot.slane %v5271_v53, 1 }
  0x27   : > { %v3880_v6 = vor.u32 %v4838_v0, %v3877_v1  ;;  %v5043_v17 = vld [vmem:[%s5265_s24] sm:$0xe]  ;;  %v1007_v22 = vrot.slane %v5283_v61, 1  ;;  %v3919_v25 = vld [vmem:[%s7066_s1 + $0x110] sm:$0xf]  ;;  %v1011_v33 = vrot.slane %v5307_v13, 1 }
  0x28   : > { %v5044_v18 = vor.u32 %v5043_v17, %v5042_v16  ;;  %v4849_v26 = vld [vmem:[%s7066_s1 + $0x118] sm:$0x30]  ;;  %v3907_v28 = vld [vmem:[%s7066_s1 + $0xf8] sm:$0xf]  ;;  %v4846_v29 = vld [vmem:[%s7066_s1 + $0x100] sm:$0xf0] }
  0x29   : > { %920 = vmatpush.bf16.msrb.mxu0 %v3813_v42  ;;  %954 = vmatpush.bf16.msrb.mxu1 %v3817_v46  ;;  %v5438_v23 = vsel %vm1003_vm3, %v1005_v20, %v1007_v22  ;;  %v3908_v30 = vor.u32 %v4846_v29, %v3907_v28  ;;  %v3895_v31 = vld [vmem:[%s7066_s1 + $0xe0] sm:$0xf]  ;;  %v3883_v35 = vld [vmem:[%s7066_s1 + $0xc8] sm:$0xf]  ;;  %v4840_v36 = vld [vmem:[%s7066_s1 + $0xd0] sm:$0xf0] }
  0x2a   : > { %1106 = vmatpush.bf16.msrb.mxu2 %v3888_v50  ;;  %1140 = vmatpush.bf16.msrb.mxu3 %v3892_v51  ;;  %v1004_v19 = vrot.slane %v5044_v18, 1  ;;  %v3884_v37 = vor.u32 %v4840_v36, %v3883_v35  ;;  %vm1350_vm4 = vcmask 654336   ;;  %vm1924_vm5 = vcmask 261120  }
  0x2b   : > { %vm2422_vm6 = vcmask 130048   ;;  %vm3011_vm7 = vcmask 1041408   ;;  %vm3001_vm8 = vcmask 293888   ;;  %vm3244_vm9 = vcmask 785408  }
  0x2c   : > { %v1006_v21 = vsel %vm1003_vm3, %v1004_v19, %v1005_v20  ;;  %vm3637_vm10 = vcmask 11264  }
  0x2d   : > { %921 = vmatpush.bf16.msrb.mxu0 %v3801_v57  ;;  %955 = vmatpush.bf16.msrb.mxu1 %v3805_v4 }
  0x2e   : > { %1107 = vmatpush.bf16.msrb.mxu2 %v3876_v5  ;;  %1141 = vmatpush.bf16.msrb.mxu3 %v3880_v6 }
  0x2f   : > { %3780 = vmatmul.msk.bf16.gmra.mxu0 %vm672_vm1, %v586_v2  ;;  %3785 = vmatmul.msk.bf16.gmra.mxu1 %vm672_vm1, %v586_v2 }
  0x30   : > { %3843 = vmatmul.msk.bf16.gmra.mxu3 %vm672_vm1, %v5271_v53  ;;  %3790 = vmatmul.msk.bf16.gmra.mxu2 %vm672_vm1, %v586_v2  ;;  %v520_v2 = vld [vmem:[%s5265_s24 + $0x28] sm:$0x1] }
  0x31   : > { %v559_v8 = vunpack.c.l.b16 %v520_v2 }
  0x33   : > { %v5416_v9 = vpack.c.b16 %v559_v8, %v559_v8 }
  0x35   : > { %v607_v11 = vshll.u32 %v5416_v9, 16  ;;  %v1013_v43 = vrot.slane %v5416_v9, 1 }
  0x37   : > { %v609_v14 = vrot.slane %v607_v11, 1  ;;  %v1014_v45 = vsel %vm1003_vm3, %v1011_v33, %v1013_v43 }
  0x3f   : > { %3781 = vmatmul.msk.bf16.gmra.mxu0 %vm672_vm1, %v594_v12  ;;  %3786 = vmatmul.msk.bf16.gmra.mxu1 %vm672_vm1, %v594_v12 }
  0x40   : > { %3844 = vmatmul.msk.bf16.gmra.mxu3 %vm672_vm1, %v5283_v61  ;;  %3791 = vmatmul.msk.bf16.gmra.mxu2 %vm672_vm1, %v594_v12  ;;  %v605_v12 = vor.u32 %v603_v10, %v601_v63 }
  0x42   : > { %v610_v15 = vsel %vm566_vm2, %v605_v12, %v609_v14 }
  0x4f   : > { %3782 = vmatmul.msk.bf16.gmra.mxu0 %vm672_vm1, %v602_v7  ;;  %3787 = vmatmul.msk.bf16.gmra.mxu1 %vm672_vm1, %v602_v7 }
  0x50   : > { %3845 = vmatmul.msk.bf16.gmra.mxu3 %vm672_vm1, %v5294_v3  ;;  %3792 = vmatmul.msk.bf16.gmra.mxu2 %vm672_vm1, %v602_v7 }
  0x5f   : > { %3783 = vmatmul.msk.bf16.gmra.mxu0 %vm672_vm1, %v610_v15  ;;  %3788 = vmatmul.msk.bf16.gmra.mxu1 %vm672_vm1, %v610_v15 }
  0x60   : > { %3846 = vmatmul.msk.bf16.gmra.mxu3 %vm672_vm1, %v5307_v13  ;;  %3793 = vmatmul.msk.bf16.gmra.mxu2 %vm672_vm1, %v610_v15 }
  0x6f   : > { %3847 = vmatmul.msk.bf16.vlgmr.msrb.gmra.mxu0 %vm672_vm1, %v5268_v52  ;;  %3852 = vmatmul.msk.bf16.vlgmr.msrb.gmra.mxu1 %vm672_vm1, %v5268_v52  ;;  %v1009_v52 = vrot.slane %v5294_v3, 1 }
  0x70   : > { %3926 = vmatmul.msk.bf16.vlgmr.msrb.gmra.mxu3 %vm672_vm1, %v1006_v21  ;;  %3921 = vmatmul.msk.bf16.vlgmr.msrb.gmra.mxu2 %vm672_vm1, %v1006_v21 }
  0x71   : > { %v5450_v24 = vsel %vm1003_vm3, %v1007_v22, %v1009_v52  ;;  %v1012_v34 = vsel %vm1003_vm3, %v1009_v52, %v1011_v33 }
  0x7f   : > { %3848 = vmatmul.msk.bf16.gmra.mxu0 %vm672_vm1, %v5271_v53  ;;  %3853 = vmatmul.msk.bf16.gmra.mxu1 %vm672_vm1, %v5271_v53  ;;  %v3920_v53 = vor.u32 %v4849_v26, %v3919_v25  ;;  %v5562_v26 = vld [vmem:[%s7067_s2] sm:$0x7] }
  0x80   : > { %3927 = vmatmul.msk.bf16.gmra.mxu3 %vm672_vm1, %v5438_v23  ;;  %3922 = vmatmul.msk.bf16.gmra.mxu2 %vm672_vm1, %v5438_v23 }
  0x81   : > { %v1098_v27 = vsel %vm688_vm0, %v3920_v53, 0  ;;  %v5565_v53 = vperm.slane %v5562_v26, 0 }
  0x82   : > { %1172 = vmatpush.bf16.msra.mxu0 %v1098_v27 }
  0x86   : > { %1173 = vmatpush.bf16.msra.mxu0 %v3908_v30 }
  0x8f   : > { %3849 = vmatmul.msk.bf16.gmra.mxu0 %vm672_vm1, %v5283_v61  ;;  %3854 = vmatmul.msk.bf16.gmra.mxu1 %vm672_vm1, %v5283_v61  ;;  %v4843_v61 = vld [vmem:[%s7066_s1 + $0xe8] sm:$0xf0] }
  0x90   : > { %3928 = vmatmul.msk.bf16.gmra.mxu3 %vm672_vm1, %v5450_v24  ;;  %3923 = vmatmul.msk.bf16.gmra.mxu2 %vm672_vm1, %v5450_v24  ;;  %v3896_v32 = vor.u32 %v4843_v61, %v3895_v31 }
  0x92   : > { %1174 = vmatpush.bf16.msra.mxu0 %v3896_v32 }
  0x96   : > { %1175 = vmatpush.bf16.msra.mxu0 %v3884_v37 }
  0x9c   : > { %v707_v38 = vpop.f32.mrf.mxu0  ;;  %v741_v58 = vpop.f32.mrf.mxu1 }
  0x9f   : > { %3850 = vmatmul.msk.bf16.gmra.mxu0 %vm672_vm1, %v5294_v3  ;;  %3855 = vmatmul.msk.bf16.gmra.mxu1 %vm672_vm1, %v5294_v3 }
  0xa0   : > { %3929 = vmatmul.msk.bf16.gmra.mxu3 %vm672_vm1, %v1012_v34  ;;  %3924 = vmatmul.msk.bf16.gmra.mxu2 %vm672_vm1, %v1012_v34 }
  0xa3   : > { %v889_v39 = vpop.f32.mrf.mxu3  ;;  %v5493_v41 = vpop.f32.mrf.mxu2 }
  0xa4   : > { %v890_v40 = vadd.f32 %v889_v39, %v707_v38  ;;  %v709_v42 = vpop.f32.mrf.mxu0  ;;  %v5522_v63 = vpop.f32.mrf.mxu1 }
  0xab   : > { %v891_v44 = vpop.f32.mrf.mxu3  ;;  %v5497_v46 = vpop.f32.mrf.mxu2 }
  0xac   : > { %v712_v47 = vpop.f32.mrf.mxu0  ;;  %v746_v6 = vpop.f32.mrf.mxu1  ;;  %v892_v28 = vadd.f32 %v891_v44, %v709_v42 }
  0xaf   : > { %3851 = vmatmul.msk.bf16.gmra.mxu0 %vm672_vm1, %v5307_v13  ;;  %3856 = vmatmul.msk.bf16.gmra.mxu1 %vm672_vm1, %v5307_v13 }
  0xb0   : > { %3930 = vmatmul.msk.bf16.gmra.mxu3 %vm672_vm1, %v1014_v45  ;;  %3925 = vmatmul.msk.bf16.gmra.mxu2 %vm672_vm1, %v1014_v45 }
  0xb3   : > { %v894_v3 = vpop.f32.mrf.mxu3  ;;  %v5505_v49 = vpop.f32.mrf.mxu2 }
  0xb4   : > { %v895_v48 = vadd.f32 %v894_v3, %v712_v47  ;;  %v5507_v50 = vpop.f32.mrf.mxu0  ;;  %v5538_v10 = vpop.f32.mrf.mxu1 }
  0xbb   : > { %v896_v51 = vpop.f32.mrf.mxu3  ;;  %v5509_v54 = vpop.f32.mrf.mxu2 }
  0xbc   : > { %v717_v55 = vpop.f32.mrf.mxu0  ;;  %v5548_v17 = vpop.f32.mrf.mxu1  ;;  %v897_v3 = vadd.f32 %v896_v51, %v5507_v50 }
  0xbf   : > { %3931 = vmatmul.msk.bf16.vlgmr.msra.gmra.mxu0 %vm672_vm1, %v1006_v21 }
  0xc3   : > { %v899_v56 = vpop.f32.mrf.mxu3  ;;  %v5514_v59 = vpop.f32.mrf.mxu2 }
  0xc4   : > { %v5512_v57 = vadd.f32 %v899_v56, %v717_v55  ;;  %v5516_v13 = vpop.f32.mrf.mxu0  ;;  %v5555_v52 = vpop.f32.mrf.mxu1 }
  0xcb   : > { %v5518_v60 = vpop.f32.mrf.mxu3  ;;  %v5520_v62 = vpop.f32.mrf.mxu2 }
  0xcc   : > { %v722_v0 = vpop.f32.mrf.mxu0  ;;  %v756_v32 = vpop.f32.mrf.mxu1  ;;  %v902_v50 = vadd.f32 %v5518_v60, %v5516_v13 }
  0xcf   : > { %3932 = vmatmul.msk.bf16.gmra.mxu0 %vm672_vm1, %v5438_v23 }
  0xd3   : > { %v904_v1 = vpop.f32.mrf.mxu3  ;;  %v5528_v4 = vpop.f32.mrf.mxu2 }
  0xd4   : > { %v5526_v2 = vadd.f32 %v904_v1, %v722_v0  ;;  %v5530_v5 = vpop.f32.mrf.mxu0  ;;  %v758_v44 = vpop.f32.mrf.mxu1 }
  0xdb   : > { %v5532_v7 = vpop.f32.mrf.mxu3  ;;  %v5534_v8 = vpop.f32.mrf.mxu2 }
  0xdc   : > { %v727_v9 = vpop.f32.mrf.mxu0 }
  0xdf   : > { %3933 = vmatmul.msk.bf16.gmra.mxu0 %vm672_vm1, %v5450_v24 }
  0xe3   : > { %v909_v11 = vpop.f32.mrf.mxu3  ;;  %v5542_v14 = vpop.f32.mrf.mxu2 }
  0xe4   : > { %v5540_v12 = vadd.f32 %v909_v11, %v727_v9  ;;  %v5544_v15 = vpop.f32.mrf.mxu0  ;;  %v761_v11 = vpop.f32.mrf.mxu1 }
  0xeb   : > { %v5546_v16 = vpop.f32.mrf.mxu3  ;;  %v5550_v18 = vpop.f32.mrf.mxu2 }
  0xec   : > { %v923_v19 = vpop.f32.mrf.mxu0 }
  0xed   : > { %v924_v20 = vadd.f32 %v923_v19, %v741_v58 }
  0xef   : > { %3934 = vmatmul.msk.bf16.gmra.mxu0 %vm672_vm1, %v1012_v34 }
  0xf3   : > { %v1143_v21 = vpop.f32.mrf.mxu3  ;;  %v1109_v23 = vpop.f32.mrf.mxu2 }
  0xf4   : > { %v5553_v22 = vadd.f32 %v1143_v21, %v924_v20  ;;  %v1202_v24 = vadd.f32 %v1109_v23, %v890_v40  ;;  %v5557_v25 = vpop.f32.mrf.mxu0 }
  0xf6   : > { %v1240_v30 = vadd.f32 %v5565_v53, %v1202_v24  ;;  %v763_v24 = vpop.f32.mrf.mxu1 }
  0xf8   : > { %v1270_v35 = vmax.f32 %v1240_v30, 0.0 }
  0xfb   : > { %v5567_v27 = vpop.f32.mrf.mxu3  ;;  %v1111_v29 = vpop.f32.mrf.mxu2 }
  0xfc   : > { %v1205_v31 = vadd.f32 %v1111_v29, %v892_v28  ;;  %v928_v61 = vpop.f32.mrf.mxu0 }
  0xfd   : > { %v929_v34 = vadd.f32 %v928_v61, %v746_v6 }
  0xfe   : > { %v1243_v33 = vadd.f32 %v5565_v53, %v1205_v31 }
  0xff   : > { %3935 = vmatmul.msk.bf16.gmra.mxu0 %vm672_vm1, %v1014_v45 }
 0x100   : > { %v1273_v36 = vmax.f32 %v1243_v33, 0.0 }
 0x102   : > { %v5574_v39 = vpack.c.bf16 %v1273_v36, %v1270_v35 }
 0x103   : > { %v1148_v37 = vpop.f32.mrf.mxu3  ;;  %v1114_v40 = vpop.f32.mrf.mxu2 }
 0x104   : > { %v5572_v38 = vadd.f32 %v1148_v37, %v929_v34  ;;  %v1208_v42 = vadd.f32 %v1114_v40, %v895_v48  ;;  %v930_v43 = vpop.f32.mrf.mxu0 }
 0x106   : > { %v1246_v56 = vadd.f32 %v5565_v53, %v1208_v42 }
 0x108   : > { %v1276_v1 = vmax.f32 %v1246_v56, 0.0 }
 0x10b   : > { %v5576_v47 = vpop.f32.mrf.mxu3  ;;  %v1116_v55 = vpop.f32.mrf.mxu2 }
 0x10c   : > { %v1211_v58 = vadd.f32 %v1116_v55, %v897_v3  ;;  %v933_v45 = vpop.f32.mrf.mxu0 }
 0x10e   : > { %v1249_v0 = vadd.f32 %v5565_v53, %v1211_v58 }
 0x110   : > { %v1279_v6 = vmax.f32 %v1249_v0, 0.0 }
 0x112   : > { %v5581_v19 = vpack.c.bf16 %v1279_v6, %v1276_v1  ;;  %v1235_v6 = vperm.slane %v5562_v26, 1 }
 0x113   : > { %v1153_v9 = vpop.f32.mrf.mxu3  ;;  %v1119_v48 = vpop.f32.mrf.mxu2 }
 0x114   : > { %v935_v20 = vpop.f32.mrf.mxu0  ;;  %v1214_v21 = vadd.f32 %v1119_v48, %v5512_v57  ;;  %v957_v57 = vpop.f32.mrf.mxu1 }
 0x116   : > { %v1252_v28 = vadd.f32 %v5565_v53, %v1214_v21 }
 0x118   : > { %v1282_v61 = vmax.f32 %v1252_v28, 0.0 }
 0x11b   : > { %v1155_v23 = vpop.f32.mrf.mxu3  ;;  %v1121_v51 = vpop.f32.mrf.mxu2 }
 0x11c   : > { %v1217_v29 = vadd.f32 %v1121_v51, %v902_v50  ;;  %v938_v30 = vpop.f32.mrf.mxu0  ;;  %v5590_v13 = vpop.f32.mrf.mxu1  ;;  %v907_v51 = vadd.f32 %v5532_v7, %v5530_v5 }
 0x11d   : > { %v939_v48 = vadd.f32 %v938_v30, %v756_v32  ;;  %v934_v32 = vadd.f32 %v933_v45, %v5548_v17  ;;  %v931_v30 = vadd.f32 %v930_v43, %v5538_v10 }
 0x11e   : > { %v1255_v31 = vadd.f32 %v5565_v53, %v1217_v29 }
 0x11f   : > { %v1212_v43 = vadd.f32 %v5576_v47, %v931_v30 }
 0x120   : > { %v1285_v33 = vmax.f32 %v1255_v31, 0.0  ;;  %v936_v31 = vadd.f32 %v935_v20, %v5555_v52 }
 0x122   : > { %v5588_v35 = vpack.c.bf16 %v1285_v33, %v1282_v61  ;;  %v1218_v5 = vadd.f32 %v1155_v23, %v936_v31  ;;  %v1247_v31 = vadd.f32 %v1235_v6, %v5572_v38 }
 0x123   : > { %v1158_v34 = vpop.f32.mrf.mxu3  ;;  %v1124_v36 = vpop.f32.mrf.mxu2 }
 0x124   : > { %v940_v37 = vpop.f32.mrf.mxu0  ;;  %v1221_v61 = vadd.f32 %v1158_v34, %v939_v48  ;;  %v1220_v52 = vadd.f32 %v1124_v36, %v5526_v2  ;;  %v1256_v45 = vadd.f32 %v1235_v6, %v1218_v5 }
 0x125   : > { %v941_v0 = vadd.f32 %v940_v37, %v758_v44  ;;  %v912_v44 = vadd.f32 %v5546_v16, %v5544_v15  ;;  %v958_v37 = vadd.f32 %v957_v57, %v5493_v41 }
 0x126   : > { %v1259_v15 = vadd.f32 %v1235_v6, %v1221_v61  ;;  %v1258_v2 = vadd.f32 %v5565_v53, %v1220_v52  ;;  %v5646_v52 = vld [vmem:[%s7068_s3 + $0x10] sm:$0xff] }
 0x12b   : > { %v1160_v40 = vpop.f32.mrf.mxu3  ;;  %v1126_v42 = vpop.f32.mrf.mxu2 }
 0x12c   : > { %v943_v3 = vpop.f32.mrf.mxu0  ;;  %v1224_v21 = vadd.f32 %v1160_v40, %v941_v0  ;;  %v1289_v0 = vmax.f32 %v1259_v15, 0.0 }
 0x12d   : > { %v944_v55 = vadd.f32 %v943_v3, %v761_v11  ;;  %v962_v3 = vpop.f32.mrf.mxu1 }
 0x12e   : > { %v1262_v7 = vadd.f32 %v1235_v6, %v1224_v21 }
 0x130   : > { %v1292_v23 = vmax.f32 %v1262_v7, 0.0 }
 0x132   : > { %v1310_v47 = vpack.c.bf16 %v1292_v23, %v1289_v0  ;;  %v1236_v23 = vperm.slane %v5562_v26, 2 }
 0x133   : > { %v1163_v60 = vpop.f32.mrf.mxu3  ;;  %v1129_v56 = vpop.f32.mrf.mxu2 }
 0x134   : > { %v945_v58 = vpop.f32.mrf.mxu0  ;;  %v1227_v1 = vadd.f32 %v1163_v60, %v944_v55  ;;  %v1226_v28 = vadd.f32 %v1129_v56, %v5540_v12  ;;  %v1215_v60 = vadd.f32 %v1153_v9, %v934_v32  ;;  %v926_v56 = vadd.f32 %v5557_v25, %v5522_v63 }
 0x135   : > { %v946_v50 = vadd.f32 %v945_v58, %v763_v24  ;;  %v1223_v24 = vadd.f32 %v1126_v42, %v907_v51  ;;  %v1286_v51 = vmax.f32 %v1256_v45, 0.0  ;;  %v963_v32 = vadd.f32 %v962_v3, %v5505_v49 }
 0x136   : > { %v1265_v33 = vadd.f32 %v1235_v6, %v1227_v1  ;;  %v1264_v20 = vadd.f32 %v5565_v53, %v1226_v28  ;;  %v1253_v58 = vadd.f32 %v1235_v6, %v1215_v60  ;;  %v1206_v21 = vadd.f32 %v5567_v27, %v926_v56  ;;  %v5613_v28 = vpop.f32.mrf.mxu1 }
 0x137   : > { %v1261_v17 = vadd.f32 %v5565_v53, %v1223_v24  ;;  %v1241_v27 = vadd.f32 %v1235_v6, %v5553_v22  ;;  %v5627_v22 = vld [vmem:[%s7068_s3] sm:$0xff] }
 0x138   : > { %v1295_v16 = vmax.f32 %v1265_v33, 0.0  ;;  %v1294_v36 = vmax.f32 %v1264_v20, 0.0  ;;  %v1283_v61 = vmax.f32 %v1253_v58, 0.0  ;;  %v1244_v25 = vadd.f32 %v1235_v6, %v1206_v21 }
 0x139   : > { %v1291_v1 = vmax.f32 %v1261_v17, 0.0  ;;  %v1271_v5 = vmax.f32 %v1241_v27, 0.0 }
 0x13b   : > { %v1165_v29 = vpop.f32.mrf.mxu3  ;;  %v1131_v12 = vpop.f32.mrf.mxu2 }
 0x13c   : > { %v1230_v11 = vadd.f32 %v1165_v29, %v946_v50  ;;  %v1229_v34 = vadd.f32 %v1131_v12, %v912_v44  ;;  %v1177_v55 = vpop.f32.mrf.mxu0  ;;  %v1250_v50 = vadd.f32 %v1235_v6, %v1212_v43  ;;  %v1288_v29 = vmax.f32 %v1258_v2, 0.0 }
 0x13d   : > { %v5604_v57 = vadd.f32 %v1177_v55, %v958_v37  ;;  %v1277_v44 = vmax.f32 %v1247_v31, 0.0  ;;  %v1274_v37 = vmax.f32 %v1244_v25, 0.0 }
 0x13e   : > { %v1268_v40 = vadd.f32 %v1235_v6, %v1230_v11  ;;  %v1267_v10 = vadd.f32 %v5565_v53, %v1229_v34  ;;  %v1309_v63 = vpack.c.bf16 %v1291_v1, %v1288_v29  ;;  %v1280_v33 = vmax.f32 %v1250_v50, 0.0  ;;  %v967_v7 = vpop.f32.mrf.mxu1 }
 0x13f   : > { %v1307_v11 = vpack.c.bf16 %v1286_v51, %v1283_v61  ;;  %v1301_v12 = vpack.c.bf16 %v1274_v37, %v1271_v5  ;;  %v968_v56 = vadd.f32 %v967_v7, %v5514_v59  ;;  %v960_v59 = vadd.f32 %v5590_v13, %v5497_v46  ;;  %v4885_v5 = vld [vmem:[%s7069_s4 + $0xec] sm:$0xf0] }
 0x140   : > { %v1298_v41 = vmax.f32 %v1268_v40, 0.0  ;;  %v1297_v42 = vmax.f32 %v1267_v10, 0.0  ;;  %v1304_v24 = vpack.c.bf16 %v1280_v33, %v1277_v44  ;;  %v5657_v10 = vld [vmem:[%s7068_s3 + $0x18] sm:$0xff]  ;;  %v1242_v13 = vadd.f32 %v1236_v23, %v5604_v57  ;;  %v4085_v57 = vld [vmem:[%s7069_s4 + $0xe0] sm:$0xf] }
 0x141   : > { %v4086_v7 = vor.u32 %v4885_v5, %v4085_v57  ;;  %v4165_v57 = vld [vmem:[%s7069_s4 + $0x180] sm:$0xf]  ;;  %v4905_v5 = vld [vmem:[%s7069_s4 + $0x18c] sm:$0xf0] }
 0x142   : > { %v1313_v9 = vpack.c.bf16 %v1298_v41, %v1295_v16  ;;  %v1312_v48 = vpack.c.bf16 %v1297_v42, %v1294_v36 }
 0x143   : > { %1934 = vmatpush.bf16.msrb.mxu0 %v4086_v7 }
 0x144   : > { %1403 = vmatpush.bf16.msra.mxu2 %v1313_v9  ;;  %1369 = vmatpush.bf16.msra.mxu1 %v1312_v48  ;;  %v5615_v53 = vpop.f32.mrf.mxu0 }
 0x145   : > { %v1207_v61 = vadd.f32 %v5615_v53, %v960_v59 }
 0x147   : > { %v1245_v27 = vadd.f32 %v1236_v23, %v1207_v61 }
 0x148   : > { %1404 = vmatpush.bf16.msra.mxu2 %v1310_v47  ;;  %1370 = vmatpush.bf16.msra.mxu1 %v1309_v63 }
 0x149   : > { %v1275_v37 = vmax.f32 %v1245_v27, 0.0 }
 0x14c   : > { %1405 = vmatpush.bf16.msra.mxu2 %v1307_v11  ;;  %1371 = vmatpush.bf16.msra.mxu1 %v5588_v35  ;;  %v1182_v30 = vpop.f32.mrf.mxu0  ;;  %v969_v35 = vpop.f32.mrf.mxu1  ;;  %v5677_v11 = vld [vmem:[%s7068_s3 + $0x20] sm:$0xff] }
 0x14d   : > { %v5621_v38 = vadd.f32 %v1182_v30, %v963_v32 }
 0x150   : > { %1406 = vmatpush.bf16.msra.mxu2 %v1304_v24  ;;  %1372 = vmatpush.bf16.msra.mxu1 %v5581_v19  ;;  %v5637_v19 = vld [vmem:[%s7068_s3 + $0x8] sm:$0xff]  ;;  %v1272_v24 = vmax.f32 %v1242_v13, 0.0 }
 0x152   : > { %v1302_v30 = vpack.c.bf16 %v1275_v37, %v1272_v24  ;;  %v4181_v37 = vld [vmem:[%s7069_s4 + $0x1a0] sm:$0xf] }
 0x154   : > { %1407 = vmatpush.bf16.msra.mxu2 %v1301_v12  ;;  %1373 = vmatpush.bf16.msra.mxu1 %v5574_v39  ;;  %v1184_v49 = vpop.f32.mrf.mxu0  ;;  %v972_v3 = vpop.f32.mrf.mxu1  ;;  %v4087_v12 = vld [vmem:[%s7069_s4 + $0xf0] sm:$0xf0] }
 0x155   : > { %v973_v43 = vadd.f32 %v972_v3, %v5528_v4  ;;  %v965_v4 = vadd.f32 %v5613_v28, %v5509_v54  ;;  %v1248_v54 = vadd.f32 %v1236_v23, %v5621_v38  ;;  %v4883_v38 = vld [vmem:[%s7069_s4 + $0xe4] sm:$0xf] }
 0x157   : > { %3961 = vmatmul.msk.bf16.vlgmr.msra.gmra.mxu2 %vm1350_vm4, %v5627_v22  ;;  %3956 = vmatmul.msk.bf16.vlgmr.msra.gmra.mxu1 %vm1350_vm4, %v5627_v22  ;;  %v1213_v50 = vadd.f32 %v1184_v49, %v965_v4  ;;  %v1278_v53 = vmax.f32 %v1248_v54, 0.0  ;;  %v4069_v49 = vld [vmem:[%s7069_s4 + $0xc0] sm:$0xf] }
 0x159   : > { %v1251_v63 = vadd.f32 %v1236_v23, %v1213_v50  ;;  %v4859_v50 = vld [vmem:[%s7069_s4 + $0x24] sm:$0xf] }
 0x15b   : > { %v1281_v44 = vmax.f32 %v1251_v63, 0.0  ;;  %v3973_v63 = vld [vmem:[%s7069_s4] sm:$0xf] }
 0x15c   : > { %v1187_v6 = vpop.f32.mrf.mxu0  ;;  %v974_v39 = vpop.f32.mrf.mxu1 }
 0x15d   : > { %v975_v41 = vadd.f32 %v974_v39, %v5534_v8  ;;  %v1305_v32 = vpack.c.bf16 %v1281_v44, %v1278_v53  ;;  %v4877_v39 = vld [vmem:[%s7069_s4 + $0xac] sm:$0xf0]  ;;  %v4197_v44 = vld [vmem:[%s7069_s4 + $0x1c0] sm:$0xf] }
 0x164   : > { %v1189_v40 = vpop.f32.mrf.mxu0  ;;  %v977_v34 = vpop.f32.mrf.mxu1 }
 0x165   : > { %v978_v15 = vadd.f32 %v977_v34, %v5542_v14  ;;  %v970_v14 = vadd.f32 %v969_v35, %v5520_v62  ;;  %v4881_v35 = vld [vmem:[%s7069_s4 + $0xcc] sm:$0xf0] }
 0x166   : > { %v4070_v3 = vor.u32 %v4881_v35, %v4069_v49 }
 0x167   : > { %3962 = vmatmul.msk.bf16.gmra.mxu2 %vm1350_vm4, %v5637_v19  ;;  %3957 = vmatmul.msk.bf16.gmra.mxu1 %vm1350_vm4, %v5637_v19  ;;  %v1219_v58 = vadd.f32 %v1189_v40, %v970_v14  ;;  %v4053_v40 = vld [vmem:[%s7069_s4 + $0xa0] sm:$0xf]  ;;  %v4023_v14 = vld [vmem:[%s7069_s4 + $0x70] sm:$0xf0] }
 0x168   : > { %1935 = vmatpush.bf16.msrb.mxu0 %v4070_v3  ;;  %v4054_v34 = vor.u32 %v4877_v39, %v4053_v40  ;;  %v4897_v3 = vld [vmem:[%s7069_s4 + $0x14c] sm:$0xf0]  ;;  %v4915_v39 = vld [vmem:[%s7069_s4 + $0x1e4] sm:$0xf] }
 0x169   : > { %v1257_v62 = vadd.f32 %v1236_v23, %v1219_v58  ;;  %v4865_v58 = vld [vmem:[%s7069_s4 + $0x4c] sm:$0xf0] }
 0x16b   : > { %v1287_v25 = vmax.f32 %v1257_v62, 0.0 }
 0x16c   : > { %v1192_v60 = vpop.f32.mrf.mxu0  ;;  %v979_v16 = vpop.f32.mrf.mxu1  ;;  %1936 = vmatpush.bf16.msrb.mxu0 %v4054_v34  ;;  %v4918_v34 = vld [vmem:[%s7069_s4 + $0x1f4] sm:$0xf0] }
 0x16d   : > { %v980_v45 = vadd.f32 %v979_v16, %v5550_v18  ;;  %v1222_v8 = vadd.f32 %v1192_v60, %v973_v43  ;;  %v1216_v18 = vadd.f32 %v1187_v6, %v968_v56  ;;  %v4879_v6 = vld [vmem:[%s7069_s4 + $0xc4] sm:$0xf]  ;;  %v4873_v16 = vld [vmem:[%s7069_s4 + $0x8c] sm:$0xf0]  ;;  %v4005_v56 = vld [vmem:[%s7069_s4 + $0x40] sm:$0xf] }
 0x16e   : > { %v4006_v4 = vor.u32 %v4865_v58, %v4005_v56  ;;  %v4189_v56 = vld [vmem:[%s7069_s4 + $0x1a8] sm:$0xf]  ;;  %v4910_v58 = vld [vmem:[%s7069_s4 + $0x1b4] sm:$0xf0] }
 0x16f   : > { %v1260_v26 = vadd.f32 %v1236_v23, %v1222_v8  ;;  %v1254_v29 = vadd.f32 %v1236_v23, %v1216_v18  ;;  %v4007_v18 = vld [vmem:[%s7069_s4 + $0x50] sm:$0xf0] }
 0x171   : > { %v1290_v31 = vmax.f32 %v1260_v26, 0.0  ;;  %v1284_v28 = vmax.f32 %v1254_v29, 0.0  ;;  %v4213_v29 = vld [vmem:[%s7069_s4 + $0x1e0] sm:$0xf] }
 0x173   : > { %v1308_v46 = vpack.c.bf16 %v1287_v25, %v1284_v28  ;;  %v4857_v25 = vld [vmem:[%s7069_s4 + $0xc] sm:$0xf0] }
 0x174   : > { %v1194_v20 = vpop.f32.mrf.mxu0  ;;  %v3974_v28 = vor.u32 %v4857_v25, %v3973_v63 }
 0x175   : > { %v1225_v9 = vadd.f32 %v1194_v20, %v975_v41  ;;  %v4055_v20 = vld [vmem:[%s7069_s4 + $0xb0] sm:$0xf0]  ;;  %v4871_v41 = vld [vmem:[%s7069_s4 + $0x84] sm:$0xf] }
 0x177   : > { %3963 = vmatmul.msk.bf16.gmra.mxu2 %vm1350_vm4, %v5646_v52  ;;  %3958 = vmatmul.msk.bf16.gmra.mxu1 %vm1350_vm4, %v5646_v52  ;;  %v1263_v0 = vadd.f32 %v1236_v23, %v1225_v9 }
 0x179   : > { %v1293_v51 = vmax.f32 %v1263_v0, 0.0  ;;  %v4863_v0 = vld [vmem:[%s7069_s4 + $0x44] sm:$0xf] }
 0x17a   : > { %v4010_v26 = vor.u32 %v4863_v0, %v4007_v18  ;;  %v4101_v0 = vld [vmem:[%s7069_s4 + $0x100] sm:$0xf] }
 0x17b   : > { %v1311_v33 = vpack.c.bf16 %v1293_v51, %v1290_v31  ;;  %v3991_v51 = vld [vmem:[%s7069_s4 + $0x30] sm:$0xf0]  ;;  %v4917_v31 = vld [vmem:[%s7069_s4 + $0x1ec] sm:$0xf0] }
 0x17c   : > { %v1197_v55 = vpop.f32.mrf.mxu0  ;;  %v3994_v59 = vor.u32 %v4859_v50, %v3991_v51  ;;  %v4214_v61 = vor.u32 %v4917_v31, %v4213_v29  ;;  %v4167_v51 = vld [vmem:[%s7069_s4 + $0x190] sm:$0xf0] }
 0x17d   : > { %v1228_v17 = vadd.f32 %v1197_v55, %v978_v15  ;;  %v4037_v15 = vld [vmem:[%s7069_s4 + $0x80] sm:$0xf] }
 0x17e   : > { %v4038_v43 = vor.u32 %v4873_v16, %v4037_v15  ;;  %1957 = vmatpush.bf16.msrb.mxu1 %v4214_v61  ;;  %v4911_v15 = vld [vmem:[%s7069_s4 + $0x1c4] sm:$0xf]  ;;  %v4199_v16 = vld [vmem:[%s7069_s4 + $0x1d0] sm:$0xf0]  ;;  %v4906_v61 = vld [vmem:[%s7069_s4 + $0x194] sm:$0xf0] }
 0x17f   : > { %v1266_v36 = vadd.f32 %v1236_v23, %v1228_v17 }
 0x180   : > { %1937 = vmatpush.bf16.msrb.mxu0 %v4038_v43  ;;  %v4202_v43 = vor.u32 %v4911_v15, %v4199_v16 }
 0x181   : > { %v1296_v48 = vmax.f32 %v1266_v36, 0.0 }
 0x184   : > { %v1199_v2 = vpop.f32.mrf.mxu0 }
 0x185   : > { %v1231_v42 = vadd.f32 %v1199_v2, %v980_v45  ;;  %v4021_v45 = vld [vmem:[%s7069_s4 + $0x60] sm:$0xf]  ;;  %v4867_v2 = vld [vmem:[%s7069_s4 + $0x64] sm:$0xf] }
 0x187   : > { %3964 = vmatmul.msk.bf16.gmra.mxu2 %vm1350_vm4, %v5657_v10  ;;  %v1269_v1 = vadd.f32 %v1236_v23, %v1231_v42  ;;  %3959 = vmatmul.msk.bf16.gmra.mxu1 %vm1350_vm4, %v5657_v10  ;;  %v4869_v23 = vld [vmem:[%s7069_s4 + $0x6c] sm:$0xf0]  ;;  %v4026_v42 = vor.u32 %v4867_v2, %v4023_v14  ;;  %v4907_v14 = vld [vmem:[%s7069_s4 + $0x1a4] sm:$0xf] }
 0x188   : > { %v4022_v8 = vor.u32 %v4869_v23, %v4021_v45  ;;  %v4117_v45 = vld [vmem:[%s7069_s4 + $0x120] sm:$0xf]  ;;  %v4893_v23 = vld [vmem:[%s7069_s4 + $0x12c] sm:$0xf0] }
 0x189   : > { %v1299_v21 = vmax.f32 %v1269_v1, 0.0  ;;  %v4118_v2 = vor.u32 %v4893_v23, %v4117_v45 }
 0x18a   : > { %1938 = vmatpush.bf16.msrb.mxu0 %v4022_v8  ;;  %v4183_v8 = vld [vmem:[%s7069_s4 + $0x1b0] sm:$0xf0] }
 0x18b   : > { %v1314_v47 = vpack.c.bf16 %v1299_v21, %v1296_v48  ;;  %v3989_v48 = vld [vmem:[%s7069_s4 + $0x20] sm:$0xf]  ;;  %v4861_v21 = vld [vmem:[%s7069_s4 + $0x2c] sm:$0xf0]  ;;  %v4186_v18 = vor.u32 %v4907_v14, %v4183_v8 }
 0x18c   : > { %v3990_v62 = vor.u32 %v4861_v21, %v3989_v48  ;;  %v4190_v21 = vor.u32 %v4910_v58, %v4189_v56 }
 0x18d   : > { %1437 = vmatpush.bf16.msra.mxu3 %v1314_v47 }
 0x18e   : > { %1939 = vmatpush.bf16.msrb.mxu0 %v4006_v4  ;;  %v4889_v4 = vld [vmem:[%s7069_s4 + $0x10c] sm:$0xf0] }
 0x191   : > { %1438 = vmatpush.bf16.msra.mxu3 %v1311_v33  ;;  %v4855_v33 = vld [vmem:[%s7069_s4 + $0x4] sm:$0xf] }
 0x192   : > { %1940 = vmatpush.bf16.msrb.mxu0 %v3990_v62  ;;  %v4903_v62 = vld [vmem:[%s7069_s4 + $0x184] sm:$0xf] }
 0x193   : > { %v4170_v31 = vor.u32 %v4903_v62, %v4167_v51  ;;  %v4919_v62 = vld [vmem:[%s7069_s4 + $0x204] sm:$0xf] }
 0x195   : > { %1439 = vmatpush.bf16.msra.mxu3 %v1308_v46  ;;  %v4913_v46 = vld [vmem:[%s7069_s4 + $0x1cc] sm:$0xf0] }
 0x196   : > { %1941 = vmatpush.bf16.msrb.mxu0 %v3974_v28  ;;  %v4198_v13 = vor.u32 %v4913_v46, %v4197_v44  ;;  %v4902_v46 = vld [vmem:[%s7069_s4 + $0x174] sm:$0xf0] }
 0x197   : > { %3965 = vmatmul.msk.bf16.gmra.mxu2 %vm1350_vm4, %v5677_v11  ;;  %3960 = vmatmul.msk.bf16.gmra.mxu1 %vm1350_vm4, %v5677_v11 }
 0x198   : > { %1958 = vmatpush.bf16.msrb.mxu1 %v4198_v13 }
 0x199   : > { %1440 = vmatpush.bf16.msra.mxu3 %v1305_v32  ;;  %v4909_v32 = vld [vmem:[%s7069_s4 + $0x1ac] sm:$0xf0] }
 0x19a   : > { %v4182_v24 = vor.u32 %v4909_v32, %v4181_v37  ;;  %v4895_v32 = vld [vmem:[%s7069_s4 + $0x144] sm:$0xf] }
 0x19c   : > { %1959 = vmatpush.bf16.msrb.mxu1 %v4182_v24  ;;  %v4141_v24 = vld [vmem:[%s7069_s4 + $0x148] sm:$0xf] }
 0x19d   : > { %1441 = vmatpush.bf16.msra.mxu3 %v1302_v30 }
 0x1a0   : > { %3966 = vmatmul.msk.bf16.vlgmr.msra.gmra.mxu3 %vm1350_vm4, %v5627_v22  ;;  %v4090_v22 = vor.u32 %v4883_v38, %v4087_v12  ;;  %v4166_v38 = vor.u32 %v4905_v5, %v4165_v57  ;;  %v4149_v12 = vld [vmem:[%s7069_s4 + $0x160] sm:$0xf] }
 0x1a2   : > { %2003 = vmatpush.bf16.msrb.mxu3 %v4090_v22  ;;  %1960 = vmatpush.bf16.msrb.mxu1 %v4166_v38  ;;  %v4901_v22 = vld [vmem:[%s7069_s4 + $0x16c] sm:$0xf0]  ;;  %v4898_v38 = vld [vmem:[%s7069_s4 + $0x154] sm:$0xf0] }
 0x1a3   : > { %v4150_v49 = vor.u32 %v4901_v22, %v4149_v12  ;;  %v4891_v12 = vld [vmem:[%s7069_s4 + $0x124] sm:$0xf]  ;;  %v4119_v22 = vld [vmem:[%s7069_s4 + $0x130] sm:$0xf0] }
 0x1a6   : > { %1961 = vmatpush.bf16.msrb.mxu1 %v4150_v49  ;;  %v4142_v49 = vor.u32 %v4898_v38, %v4141_v24  ;;  %v4886_v24 = vld [vmem:[%s7069_s4 + $0xf4] sm:$0xf0]  ;;  %v4095_v38 = vld [vmem:[%s7069_s4 + $0xf8] sm:$0xf0] }
 0x1b0   : > { %3967 = vmatmul.msk.bf16.gmra.mxu3 %vm1350_vm4, %v5637_v19  ;;  %v4071_v19 = vld [vmem:[%s7069_s4 + $0xd0] sm:$0xf0] }
 0x1b1   : > { %v4074_v60 = vor.u32 %v4879_v6, %v4071_v19  ;;  %v4133_v6 = vld [vmem:[%s7069_s4 + $0x140] sm:$0xf] }
 0x1b2   : > { %v4134_v19 = vor.u32 %v4897_v3, %v4133_v6  ;;  %v4125_v6 = vld [vmem:[%s7069_s4 + $0x128] sm:$0xf]  ;;  %v4894_v3 = vld [vmem:[%s7069_s4 + $0x134] sm:$0xf0] }
 0x1b3   : > { %2004 = vmatpush.bf16.msrb.mxu3 %v4074_v60  ;;  %v4215_v60 = vld [vmem:[%s7069_s4 + $0x1f0] sm:$0xf0] }
 0x1b4   : > { %1962 = vmatpush.bf16.msrb.mxu1 %v4134_v19  ;;  %v4122_v19 = vor.u32 %v4891_v12, %v4119_v22 }
 0x1b8   : > { %1963 = vmatpush.bf16.msrb.mxu1 %v4118_v2 }
 0x1c0   : > { %3968 = vmatmul.msk.bf16.gmra.mxu3 %vm1350_vm4, %v5646_v52  ;;  %v4875_v52 = vld [vmem:[%s7069_s4 + $0xa4] sm:$0xf] }
 0x1c1   : > { %v4058_v55 = vor.u32 %v4875_v52, %v4055_v20  ;;  %v4221_v52 = vld [vmem:[%s7069_s4 + $0x1e8] sm:$0xf]  ;;  %v4218_v20 = vor.u32 %v4915_v39, %v4215_v60  ;;  %v4126_v60 = vor.u32 %v4894_v3, %v4125_v6  ;;  %v4882_v6 = vld [vmem:[%s7069_s4 + $0xd4] sm:$0xf0]  ;;  %v4880_v3 = vld [vmem:[%s7069_s4 + $0xcc] sm:$0xf] }
 0x1c3   : > { %2005 = vmatpush.bf16.msrb.mxu3 %v4058_v55  ;;  %v4222_v55 = vor.u32 %v4918_v34, %v4221_v52  ;;  %2026 = vmatpush.bf16.msra.mxu0 %v4218_v20  ;;  %v4887_v20 = vld [vmem:[%s7069_s4 + $0x104] sm:$0xf]  ;;  %v4103_v34 = vld [vmem:[%s7069_s4 + $0x110] sm:$0xf0] }
 0x1c4   : > { %v4106_v16 = vor.u32 %v4887_v20, %v4103_v34  ;;  %v4878_v20 = vld [vmem:[%s7069_s4 + $0xb4] sm:$0xf0]  ;;  %v4876_v34 = vld [vmem:[%s7069_s4 + $0xac] sm:$0xf] }
 0x1c7   : > { %2027 = vmatpush.bf16.msra.mxu0 %v4202_v43 }
 0x1cb   : > { %2028 = vmatpush.bf16.msra.mxu0 %v4186_v18  ;;  %v4923_v18 = vld [vmem:[%s7069_s4 + $0x224] sm:$0xf] }
 0x1cf   : > { %2029 = vmatpush.bf16.msra.mxu0 %v4170_v31 }
 0x1d0   : > { %3969 = vmatmul.msk.bf16.gmra.mxu3 %vm1350_vm4, %v5657_v10  ;;  %v4039_v10 = vld [vmem:[%s7069_s4 + $0x90] sm:$0xf0] }
 0x1d1   : > { %v4042_v9 = vor.u32 %v4871_v41, %v4039_v10  ;;  %v4205_v41 = vld [vmem:[%s7069_s4 + $0x1c8] sm:$0xf]  ;;  %v4914_v10 = vld [vmem:[%s7069_s4 + $0x1d4] sm:$0xf0] }
 0x1d3   : > { %2006 = vmatpush.bf16.msrb.mxu3 %v4042_v9  ;;  %v4206_v9 = vor.u32 %v4914_v10, %v4205_v41  ;;  %v4890_v41 = vld [vmem:[%s7069_s4 + $0x114] sm:$0xf0] }
 0x1d4   : > { %v5737_v17 = vpop.f32.mrf.mxu1 }
 0x1d7   : > { %2007 = vmatpush.bf16.msrb.mxu3 %v4026_v42 }
 0x1da   : > { %v5754_v36 = vpop.f32.mrf.mxu2 }
 0x1db   : > { %2008 = vmatpush.bf16.msrb.mxu3 %v4010_v26  ;;  %v4102_v26 = vor.u32 %v4889_v4, %v4101_v0 }
 0x1dc   : > { %v5765_v1 = vpop.f32.mrf.mxu1 }
 0x1dd   : > { %1964 = vmatpush.bf16.msrb.mxu1 %v4102_v26 }
 0x1df   : > { %2009 = vmatpush.bf16.msrb.mxu3 %v3994_v59  ;;  %v4173_v59 = vld [vmem:[%s7069_s4 + $0x188] sm:$0xf] }
 0x1e0   : > { %3970 = vmatmul.msk.bf16.gmra.mxu3 %vm1350_vm4, %v5677_v11  ;;  %v3975_v11 = vld [vmem:[%s7069_s4 + $0x10] sm:$0xf0]  ;;  %v4174_v63 = vor.u32 %v4906_v61, %v4173_v59  ;;  %v4253_v61 = vld [vmem:[%s7069_s4 + $0x228] sm:$0xf] }
 0x1e1   : > { %v3978_v27 = vor.u32 %v4855_v33, %v3975_v11  ;;  %v4899_v11 = vld [vmem:[%s7069_s4 + $0x164] sm:$0xf]  ;;  %v4231_v59 = vld [vmem:[%s7069_s4 + $0x210] sm:$0xf0] }
 0x1e2   : > { %v5782_v47 = vpop.f32.mrf.mxu2 }
 0x1e3   : > { %2010 = vmatpush.bf16.msrb.mxu3 %v3978_v27  ;;  %v4151_v27 = vld [vmem:[%s7069_s4 + $0x170] sm:$0xf0] }
 0x1e4   : > { %v5801_v54 = vpop.f32.mrf.mxu1 }
 0x1e7   : > { %2095 = vmatpush.bf16.msra.mxu3 %v4222_v55  ;;  %v4109_v55 = vld [vmem:[%s7069_s4 + $0x108] sm:$0xf] }
 0x1e8   : > { %v4110_v43 = vor.u32 %v4890_v41, %v4109_v55  ;;  %v4874_v41 = vld [vmem:[%s7069_s4 + $0x94] sm:$0xf0] }
 0x1ea   : > { %v5812_v53 = vpop.f32.mrf.mxu2 }
 0x1eb   : > { %2096 = vmatpush.bf16.msra.mxu3 %v4206_v9 }
 0x1ec   : > { %v5820_v30 = vpop.f32.mrf.mxu1 }
 0x1ef   : > { %2097 = vmatpush.bf16.msra.mxu3 %v4190_v21  ;;  %v4229_v21 = vld [vmem:[%s7069_s4 + $0x200] sm:$0xf] }
 0x1f2   : > { %v5828_v7 = vpop.f32.mrf.mxu2 }
 0x1f3   : > { %2098 = vmatpush.bf16.msra.mxu3 %v4174_v63  ;;  %v4924_v63 = vld [vmem:[%s7069_s4 + $0x22c] sm:$0xf] }
 0x1f4   : > { %v5836_v35 = vpop.f32.mrf.mxu1 }
 0x1fa   : > { %v5844_v40 = vpop.f32.mrf.mxu2 }
 0x1fc   : > { %v1387_v42 = vpop.f32.mrf.mxu1 }
 0x1fd   : > { %v1468_v50 = vmax.f32 %v5737_v17, %v1387_v42  ;;  %v4245_v42 = vld [vmem:[%s7069_s4 + $0x220] sm:$0xf] }
 0x202   : > { %v1421_v48 = vpop.f32.mrf.mxu2 }
 0x203   : > { %v1469_v25 = vmax.f32 %v5754_v36, %v1421_v48  ;;  %v4154_v36 = vor.u32 %v4899_v11, %v4151_v27 }
 0x204   : > { %v1390_v29 = vpop.f32.mrf.mxu1 }
 0x205   : > { %v1471_v17 = vmax.f32 %v5765_v1, %v1390_v29  ;;  %v4157_v1 = vld [vmem:[%s7069_s4 + $0x168] sm:$0xf]  ;;  %2030 = vmatpush.bf16.msra.mxu0 %v4154_v36  ;;  %v4234_v29 = vor.u32 %v4919_v62, %v4231_v59  ;;  %v4920_v36 = vld [vmem:[%s7069_s4 + $0x20c] sm:$0xf]  ;;  %v4015_v62 = vld [vmem:[%s7069_s4 + $0x58] sm:$0xf0] }
 0x206   : > { %v4158_v13 = vor.u32 %v4902_v46, %v4157_v1  ;;  %v4237_v1 = vld [vmem:[%s7069_s4 + $0x208] sm:$0xf] }
 0x207   : > { %v5909_v33 = vpack.c.bf16 %v1471_v17, %v1468_v50  ;;  %v4921_v50 = vld [vmem:[%s7069_s4 + $0x20c] sm:$0xf0]  ;;  %v4926_v17 = vld [vmem:[%s7069_s4 + $0x234] sm:$0xf0] }
 0x208   : > { %2099 = vmatpush.bf16.msra.mxu3 %v4158_v13  ;;  %v4230_v51 = vor.u32 %v4921_v50, %v4229_v21  ;;  %v4239_v13 = vld [vmem:[%s7069_s4 + $0x218] sm:$0xf0]  ;;  %v4864_v21 = vld [vmem:[%s7069_s4 + $0x4c] sm:$0xf] }
 0x209   : > { %1942 = vmatmul.bf16.vlgmr.msrb.gmra.mxu0 %v5909_v33  ;;  %2011 = vmatmul.bf16.vlgmr.msrb.gmra.mxu3 %v5909_v33  ;;  %v4018_v59 = vor.u32 %v4864_v21, %v4015_v62 }
 0x20a   : > { %v1424_v28 = vpop.f32.mrf.mxu2 }
 0x20b   : > { %v1472_v44 = vmax.f32 %v5782_v47, %v1424_v28  ;;  %v4135_v47 = vld [vmem:[%s7069_s4 + $0x150] sm:$0xf0]  ;;  %v4255_v28 = vld [vmem:[%s7069_s4 + $0x238] sm:$0xf0] }
 0x20c   : > { %v1392_v57 = vpop.f32.mrf.mxu1  ;;  %v4138_v5 = vor.u32 %v4895_v32, %v4135_v47  ;;  %2100 = vmatpush.bf16.msra.mxu3 %v4142_v49  ;;  %v4258_v11 = vor.u32 %v4924_v63, %v4255_v28  ;;  %v4242_v32 = vor.u32 %v4920_v36, %v4239_v13  ;;  %v4093_v47 = vld [vmem:[%s7069_s4 + $0xe8] sm:$0xf]  ;;  %v3999_v63 = vld [vmem:[%s7069_s4 + $0x38] sm:$0xf0]  ;;  %v4856_v36 = vld [vmem:[%s7069_s4 + $0xc] sm:$0xf] }
 0x20d   : > { %v5926_v37 = vpack.c.bf16 %v1472_v44, %v1469_v25  ;;  %v1474_v52 = vmax.f32 %v5801_v54, %v1392_v57  ;;  %v4254_v25 = vor.u32 %v4926_v17, %v4253_v61  ;;  %v4922_v44 = vld [vmem:[%s7069_s4 + $0x214] sm:$0xf0]  ;;  %v4884_v57 = vld [vmem:[%s7069_s4 + $0xec] sm:$0xf]  ;;  %v4077_v49 = vld [vmem:[%s7069_s4 + $0xc8] sm:$0xf] }
 0x20e   : > { %2031 = vmatpush.bf16.msra.mxu0 %v4138_v5  ;;  %v4238_v46 = vor.u32 %v4922_v44, %v4237_v1  ;;  %v4094_v5 = vor.u32 %v4886_v24, %v4093_v47  ;;  %v4098_v12 = vor.u32 %v4884_v57, %v4095_v38  ;;  %v4862_v61 = vld [vmem:[%s7069_s4 + $0x34] sm:$0xf0]  ;;  %v4860_v17 = vld [vmem:[%s7069_s4 + $0x2c] sm:$0xf]  ;;  %v3981_v1 = vld [vmem:[%s7069_s4 + $0x8] sm:$0xf] }
 0x20f   : > { %1965 = vmatmul.bf16.vlgmr.msrb.gmra.mxu1 %v5926_v37  ;;  %v4002_v28 = vor.u32 %v4860_v17, %v3999_v63  ;;  %v4858_v44 = vld [vmem:[%s7069_s4 + $0x14] sm:$0xf0]  ;;  %v3983_v47 = vld [vmem:[%s7069_s4 + $0x18] sm:$0xf0]  ;;  %v4916_v38 = vld [vmem:[%s7069_s4 + $0x1ec] sm:$0xf] }
 0x210   : > { %2101 = vmatpush.bf16.msra.mxu3 %v4126_v60  ;;  %v3986_v24 = vor.u32 %v4856_v36, %v3983_v47 }
 0x212   : > { %v1426_v39 = vpop.f32.mrf.mxu2  ;;  %2032 = vmatpush.bf16.msra.mxu0 %v4122_v19  ;;  %v4078_v19 = vor.u32 %v4882_v6, %v4077_v49  ;;  %v4207_v49 = vld [vmem:[%s7069_s4 + $0x1d8] sm:$0xf0] }
 0x213   : > { %v1475_v10 = vmax.f32 %v5812_v53, %v1426_v39  ;;  %v4079_v39 = vld [vmem:[%s7069_s4 + $0xd8] sm:$0xf0] }
 0x214   : > { %v1395_v15 = vpop.f32.mrf.mxu1  ;;  %2102 = vmatpush.bf16.msra.mxu3 %v4110_v43  ;;  %v4082_v60 = vor.u32 %v4880_v3, %v4079_v39  ;;  %v4872_v43 = vld [vmem:[%s7069_s4 + $0x8c] sm:$0xf] }
 0x215   : > { %v1477_v54 = vmax.f32 %v5820_v30, %v1395_v15  ;;  %v4063_v15 = vld [vmem:[%s7069_s4 + $0xb8] sm:$0xf0]  ;;  %v4908_v3 = vld [vmem:[%s7069_s4 + $0x1ac] sm:$0xf] }
 0x216   : > { %2033 = vmatpush.bf16.msra.mxu0 %v4106_v16  ;;  %v4045_v16 = vld [vmem:[%s7069_s4 + $0x88] sm:$0xf] }
 0x217   : > { %v5968_v45 = vpack.c.bf16 %v1477_v54, %v1474_v52  ;;  %v4061_v52 = vld [vmem:[%s7069_s4 + $0xa8] sm:$0xf]  ;;  %v4066_v54 = vor.u32 %v4876_v34, %v4063_v15  ;;  %v4159_v15 = vld [vmem:[%s7069_s4 + $0x178] sm:$0xf0] }
 0x218   : > { %2193 = vmatpush.bf16.msrb.mxu3 %v4258_v11  ;;  %v4062_v55 = vor.u32 %v4878_v20, %v4061_v52  ;;  %v4175_v52 = vld [vmem:[%s7069_s4 + $0x198] sm:$0xf0] }
 0x219   : > { %1947 = vmatmul.bf16.gmra.mxu0 %v5968_v45  ;;  %2016 = vmatmul.bf16.gmra.mxu3 %v5968_v45 }
 0x21a   : > { %v1429_v23 = vpop.f32.mrf.mxu2  ;;  %2124 = vmatpush.bf16.msrb.mxu0 %v4254_v25 }
 0x21b   : > { %v1478_v9 = vmax.f32 %v5828_v7, %v1429_v23  ;;  %v4925_v7 = vld [vmem:[%s7069_s4 + $0x22c] sm:$0xf0]  ;;  %v4046_v23 = vor.u32 %v4874_v41, %v4045_v16 }
 0x21c   : > { %v1397_v14 = vpop.f32.mrf.mxu1  ;;  %v4246_v58 = vor.u32 %v4925_v7, %v4245_v42  ;;  %2194 = vmatpush.bf16.msrb.mxu3 %v4242_v32  ;;  %v4029_v7 = vld [vmem:[%s7069_s4 + $0x68] sm:$0xf]  ;;  %v3982_v32 = vor.u32 %v4858_v44, %v3981_v1 }
 0x21d   : > { %v5973_v2 = vpack.c.bf16 %v1478_v9, %v1475_v10  ;;  %v1480_v30 = vmax.f32 %v5836_v35, %v1397_v14  ;;  %v4047_v10 = vld [vmem:[%s7069_s4 + $0x98] sm:$0xf0] }
 0x21e   : > { %1986 = vmatpush.bf16.msrb.mxu2 %v4246_v58  ;;  %2125 = vmatpush.bf16.msrb.mxu0 %v4238_v46  ;;  %v4050_v14 = vor.u32 %v4872_v43, %v4047_v10  ;;  %v4868_v58 = vld [vmem:[%s7069_s4 + $0x6c] sm:$0xf]  ;;  %v4143_v10 = vld [vmem:[%s7069_s4 + $0x158] sm:$0xf0] }
 0x21f   : > { %1970 = vmatmul.bf16.gmra.mxu1 %v5973_v2  ;;  %v5986_v0 = vpack.c.bf16 %v1480_v30, %v1480_v30  ;;  %v4896_v43 = vld [vmem:[%s7069_s4 + $0x14c] sm:$0xf] }
 0x222   : > { %v1431_v8 = vpop.f32.mrf.mxu2  ;;  %1987 = vmatpush.bf16.msrb.mxu2 %v4230_v51 }
 0x223   : > { %v5977_v53 = vpop.f32.mrf.mxu3  ;;  %v1481_v56 = vmax.f32 %v5844_v40, %v1431_v8  ;;  %v4247_v40 = vld [vmem:[%s7069_s4 + $0x230] sm:$0xf0] }
 0x224   : > { %v4250_v26 = vor.u32 %v4923_v18, %v4247_v40  ;;  %v4013_v40 = vld [vmem:[%s7069_s4 + $0x48] sm:$0xf] }
 0x225   : > { %v5988_v4 = vpack.c.bf16 %v1481_v56, %v1481_v56  ;;  %v4870_v56 = vld [vmem:[%s7069_s4 + $0x74] sm:$0xf0] }
 0x226   : > { %2055 = vmatpush.bf16.msra.mxu1 %v4250_v26  ;;  %2072 = vmatpush.bf16.msra.mxu2 %v4094_v5  ;;  %v4866_v26 = vld [vmem:[%s7069_s4 + $0x54] sm:$0xf0] }
 0x227   : > { %v4014_v50 = vor.u32 %v4866_v26, %v4013_v40 }
 0x229   : > { %1952 = vmatmul.bf16.gmra.mxu0 %v5986_v0  ;;  %2021 = vmatmul.bf16.gmra.mxu3 %v5986_v0 }
 0x22a   : > { %2056 = vmatpush.bf16.msra.mxu1 %v4234_v29  ;;  %2073 = vmatpush.bf16.msra.mxu2 %v4078_v19  ;;  %v3997_v29 = vld [vmem:[%s7069_s4 + $0x28] sm:$0xf]  ;;  %v4191_v19 = vld [vmem:[%s7069_s4 + $0x1b8] sm:$0xf0] }
 0x22b   : > { %v5992_v35 = vpop.f32.mrf.mxu3  ;;  %v3998_v25 = vor.u32 %v4862_v61, %v3997_v29  ;;  %v4194_v39 = vor.u32 %v4908_v3, %v4191_v19 }
 0x22e   : > { %2141 = vmatpush.bf16.msrb.mxu1 %v4098_v12  ;;  %2074 = vmatpush.bf16.msra.mxu2 %v4062_v55  ;;  %v4223_v12 = vld [vmem:[%s7069_s4 + $0x1f8] sm:$0xf0]  ;;  %v4900_v55 = vld [vmem:[%s7069_s4 + $0x16c] sm:$0xf] }
 0x22f   : > { %1975 = vmatmul.bf16.gmra.mxu1 %v5988_v4  ;;  %v4162_v16 = vor.u32 %v4900_v55, %v4159_v15 }
 0x232   : > { %2142 = vmatpush.bf16.msrb.mxu1 %v4082_v60  ;;  %2075 = vmatpush.bf16.msra.mxu2 %v4046_v23  ;;  %v4904_v60 = vld [vmem:[%s7069_s4 + $0x18c] sm:$0xf] }
 0x233   : > { %v6001_v48 = vpop.f32.mrf.mxu3  ;;  %v4178_v20 = vor.u32 %v4904_v60, %v4175_v52 }
 0x236   : > { %2143 = vmatpush.bf16.msrb.mxu1 %v4066_v54 }
 0x239   : > { %2034 = vmatmul.bf16.vlgmr.msra.gmra.mxu0 %v5926_v37  ;;  %2103 = vmatmul.bf16.vlgmr.msra.gmra.mxu3 %v5926_v37 }
 0x23a   : > { %2144 = vmatpush.bf16.msrb.mxu1 %v4050_v14 }
 0x23b   : > { %v6017_v31 = vpop.f32.mrf.mxu3 }
 0x243   : > { %v6031_v27 = vpop.f32.mrf.mxu3 }
 0x249   : > { %2039 = vmatmul.bf16.gmra.mxu0 %v5973_v2  ;;  %2108 = vmatmul.bf16.gmra.mxu3 %v5973_v2 }
 0x24b   : > { %v1455_v22 = vpop.f32.mrf.mxu3 }
 0x24c   : > { %v1470_v30 = vmax.f32 %v5977_v53, %v1455_v22  ;;  %v4030_v53 = vor.u32 %v4870_v56, %v4029_v7  ;;  %v4226_v22 = vor.u32 %v4916_v38, %v4223_v12  ;;  %v4888_v7 = vld [vmem:[%s7069_s4 + $0x10c] sm:$0xf]  ;;  %v4111_v56 = vld [vmem:[%s7069_s4 + $0x118] sm:$0xf0] }
 0x24e   : > { %2076 = vmatpush.bf16.msra.mxu2 %v4030_v53  ;;  %v4114_v53 = vor.u32 %v4888_v7, %v4111_v56 }
 0x252   : > { %2077 = vmatpush.bf16.msra.mxu2 %v4014_v50 }
 0x253   : > { %v1458_v9 = vpop.f32.mrf.mxu3 }
 0x254   : > { %v1473_v8 = vmax.f32 %v5992_v35, %v1458_v9  ;;  %v4031_v35 = vld [vmem:[%s7069_s4 + $0x78] sm:$0xf0]  ;;  %v4146_v9 = vor.u32 %v4896_v43, %v4143_v10 }
 0x255   : > { %v4034_v18 = vor.u32 %v4868_v58, %v4031_v35 }
 0x256   : > { %v1485_v42 = vpack.c.bf16 %v1473_v8, %v1470_v30  ;;  %2078 = vmatpush.bf16.msra.mxu2 %v3998_v25  ;;  %v4127_v30 = vld [vmem:[%s7069_s4 + $0x138] sm:$0xf0] }
 0x257   : > { %2145 = vmatpush.bf16.msrb.mxu1 %v4034_v18 }
 0x258   : > { %4259 = vmatmul.msk.bf16.vlgmr.msrb.gmra.mxu2 %vm1924_vm5, %v1485_v42  ;;  %4262 = vmatmul.msk.bf16.vlgmr.msra.gmra.mxu1 %vm1924_vm5, %v1485_v42 }
 0x259   : > { %2044 = vmatmul.bf16.gmra.mxu0 %v5988_v4  ;;  %2113 = vmatmul.bf16.gmra.mxu3 %v5988_v4 }
 0x25a   : > { %2079 = vmatpush.bf16.msra.mxu2 %v3982_v32 }
 0x25b   : > { %v1460_v51 = vpop.f32.mrf.mxu3  ;;  %2146 = vmatpush.bf16.msrb.mxu1 %v4018_v59 }
 0x25c   : > { %v1476_v46 = vmax.f32 %v6001_v48, %v1460_v51 }
 0x25e   : > { %2164 = vmatpush.bf16.msrb.mxu2 %v4226_v22 }
 0x25f   : > { %2147 = vmatpush.bf16.msrb.mxu1 %v4002_v28 }
 0x263   : > { %v1463_v11 = vpop.f32.mrf.mxu3  ;;  %2148 = vmatpush.bf16.msrb.mxu1 %v3986_v24 }
 0x264   : > { %v1479_v13 = vmax.f32 %v6017_v31, %v1463_v11 }
 0x266   : > { %v1488_v57 = vpack.c.bf16 %v1479_v13, %v1476_v46 }
 0x268   : > { %4260 = vmatmul.msk.bf16.gmra.mxu2 %vm1924_vm5, %v1488_v57  ;;  %4263 = vmatmul.msk.bf16.gmra.mxu1 %vm1924_vm5, %v1488_v57 }
 0x269   : > { %4265 = vmatmul.msk.bf16.vlgmr.msrb.gmra.mxu0 %vm1924_vm5, %v1485_v42  ;;  %4268 = vmatmul.msk.bf16.vlgmr.msrb.gmra.mxu3 %vm1924_vm5, %v1485_v42 }
 0x26b   : > { %v1465_v48 = vpop.f32.mrf.mxu3 }
 0x26c   : > { %v1482_v31 = vmax.f32 %v6031_v27, %v1465_v48  ;;  %v4912_v27 = vld [vmem:[%s7069_s4 + $0x1cc] sm:$0xf] }
 0x26d   : > { %v4210_v6 = vor.u32 %v4912_v27, %v4207_v49 }
 0x26e   : > { %v1491_v5 = vpack.c.bf16 %v1482_v31, %v1482_v31 }
 0x26f   : > { %2165 = vmatpush.bf16.msrb.mxu2 %v4210_v6 }
 0x273   : > { %2166 = vmatpush.bf16.msrb.mxu2 %v4194_v39 }
 0x277   : > { %2167 = vmatpush.bf16.msrb.mxu2 %v4178_v20 }
 0x278   : > { %4261 = vmatmul.msk.bf16.gmra.mxu2 %vm1924_vm5, %v1491_v5  ;;  %4264 = vmatmul.msk.bf16.gmra.mxu1 %vm1924_vm5, %v1491_v5 }
 0x279   : > { %4266 = vmatmul.msk.bf16.gmra.mxu0 %vm1924_vm5, %v1488_v57  ;;  %4269 = vmatmul.msk.bf16.gmra.mxu3 %vm1924_vm5, %v1488_v57 }
 0x27b   : > { %2168 = vmatpush.bf16.msrb.mxu2 %v4162_v16 }
 0x27f   : > { %2169 = vmatpush.bf16.msrb.mxu2 %v4146_v9 }
 0x286   : > { %v1943_v34 = vpop.f32.mrf.mxu0 }
 0x288   : > { %2080 = vmatmul.bf16.vlgmr.msra.gmra.mxu2 %v5909_v33  ;;  %2149 = vmatmul.bf16.vlgmr.msrb.gmra.mxu1 %v5909_v33  ;;  %v4892_v33 = vld [vmem:[%s7069_s4 + $0x12c] sm:$0xf] }
 0x289   : > { %4267 = vmatmul.msk.bf16.gmra.mxu0 %vm1924_vm5, %v1491_v5  ;;  %4270 = vmatmul.msk.bf16.gmra.mxu3 %vm1924_vm5, %v1491_v5  ;;  %v4130_v8 = vor.u32 %v4892_v33, %v4127_v30 }
 0x28b   : > { %2170 = vmatpush.bf16.msrb.mxu2 %v4130_v8 }
 0x28c   : > { %v1966_v41 = vpop.f32.mrf.mxu1  ;;  %v2012_v23 = vpop.f32.mrf.mxu3 }
 0x28d   : > { %v1967_v54 = vadd.f32 %v1966_v41, %v1943_v34 }
 0x28e   : > { %v6200_v14 = vpop.f32.mrf.mxu0 }
 0x28f   : > { %2171 = vmatpush.bf16.msrb.mxu2 %v4114_v53 }
 0x294   : > { %v6208_v42 = vpop.f32.mrf.mxu1  ;;  %v6216_v58 = vpop.f32.mrf.mxu3 }
 0x296   : > { %v1948_v35 = vpop.f32.mrf.mxu0 }
 0x298   : > { %2085 = vmatmul.bf16.gmra.mxu2 %v5968_v45  ;;  %2154 = vmatmul.bf16.gmra.mxu1 %v5968_v45 }
 0x29c   : > { %v1971_v18 = vpop.f32.mrf.mxu1  ;;  %v2017_v26 = vpop.f32.mrf.mxu3 }
 0x29d   : > { %v1972_v40 = vadd.f32 %v1971_v18, %v1948_v35 }
 0x29e   : > { %v6220_v21 = vpop.f32.mrf.mxu0 }
 0x2a4   : > { %v6222_v50 = vpop.f32.mrf.mxu1  ;;  %v6224_v62 = vpop.f32.mrf.mxu3 }
 0x2a6   : > { %v1953_v51 = vpop.f32.mrf.mxu0 }
 0x2a8   : > { %2090 = vmatmul.bf16.gmra.mxu2 %v5986_v0  ;;  %2159 = vmatmul.bf16.gmra.mxu1 %v5986_v0 }
 0x2ac   : > { %v1976_v59 = vpop.f32.mrf.mxu1  ;;  %v2022_v61 = vpop.f32.mrf.mxu3 }
 0x2ad   : > { %v1977_v29 = vadd.f32 %v1976_v59, %v1953_v51 }
 0x2ae   : > { %v1955_v17 = vpop.f32.mrf.mxu0 }
 0x2b4   : > { %v1978_v63 = vpop.f32.mrf.mxu1  ;;  %v2024_v45 = vpop.f32.mrf.mxu3 }
 0x2b6   : > { %v2035_v25 = vpop.f32.mrf.mxu0 }
 0x2b7   : > { %v2036_v28 = vadd.f32 %v2035_v25, %v2012_v23 }
 0x2b8   : > { %2172 = vmatmul.bf16.vlgmr.msrb.gmra.mxu2 %v5926_v37 }
 0x2bc   : > { %v2104_v11 = vpop.f32.mrf.mxu3 }
 0x2be   : > { %v6229_v1 = vpop.f32.mrf.mxu0 }
 0x2c4   : > { %v6231_v44 = vpop.f32.mrf.mxu3 }
 0x2c6   : > { %v2040_v36 = vpop.f32.mrf.mxu0 }
 0x2c7   : > { %v2041_v46 = vadd.f32 %v2040_v36, %v2017_v26  ;;  %v4959_v36 = vld [vmem:[%s7070_s5 + $0x104] sm:$0xf] }
 0x2c8   : > { %2177 = vmatmul.bf16.gmra.mxu2 %v5973_v2 }
 0x2cc   : > { %v2109_v0 = vpop.f32.mrf.mxu3 }
 0x2ce   : > { %v6234_v13 = vpop.f32.mrf.mxu0 }
 0x2d4   : > { %v6236_v32 = vpop.f32.mrf.mxu3 }
 0x2d5   : > { %v2058_v47 = vpop.f32.mrf.mxu1 }
 0x2d6   : > { %v2045_v24 = vpop.f32.mrf.mxu0  ;;  %v6238_v57 = vadd.f32 %v2058_v47, %v2036_v28  ;;  %v4347_v28 = vld [vmem:[%s7070_s5 + $0x100] sm:$0xf]  ;;  %v4349_v47 = vld [vmem:[%s7070_s5 + $0x108] sm:$0xf0] }
 0x2d7   : > { %v2046_v48 = vadd.f32 %v2045_v24, %v2022_v61  ;;  %v4352_v24 = vor.u32 %v4959_v36, %v4349_v47  ;;  %v4315_v47 = vld [vmem:[%s7070_s5 + $0xc0] sm:$0xf] }
 0x2d8   : > { %2182 = vmatmul.bf16.gmra.mxu2 %v5988_v4 }
 0x2d9   : > { %2478 = vmatpush.bf16.msra.mxu2 %v4352_v24  ;;  %v4952_v24 = vld [vmem:[%s7070_s5 + $0xc4] sm:$0xf0] }
 0x2db   : > { %v1989_v37 = vpop.f32.mrf.mxu2 }
 0x2dc   : > { %v6241_v31 = vadd.f32 %v1989_v37, %v1967_v54  ;;  %v2114_v5 = vpop.f32.mrf.mxu3  ;;  %v4958_v37 = vld [vmem:[%s7070_s5 + $0xf4] sm:$0xf0] }
 0x2dd   : > { %v6243_v38 = vpop.f32.mrf.mxu1 }
 0x2de   : > { %v2047_v12 = vpop.f32.mrf.mxu0 }
 0x2df   : > { %v4957_v12 = vld [vmem:[%s7070_s5 + $0xf4] sm:$0xf] }
 0x2e3   : > { %v6245_v2 = vpop.f32.mrf.mxu2 }
 0x2e4   : > { %v2116_v22 = vpop.f32.mrf.mxu3 }
 0x2e5   : > { %v2063_v27 = vpop.f32.mrf.mxu1 }
 0x2e6   : > { %v6247_v49 = vadd.f32 %v2063_v27, %v2041_v46  ;;  %v2127_v6 = vpop.f32.mrf.mxu0  ;;  %v4341_v27 = vld [vmem:[%s7070_s5 + $0xf8] sm:$0xf0] }
 0x2eb   : > { %v1994_v3 = vpop.f32.mrf.mxu2 }
 0x2ec   : > { %v6249_v19 = vadd.f32 %v1994_v3, %v1972_v40  ;;  %v6251_v39 = vpop.f32.mrf.mxu3 }
 0x2ed   : > { %v6253_v4 = vpop.f32.mrf.mxu1 }
 0x2ee   : > { %v6255_v60 = vpop.f32.mrf.mxu0 }
 0x2f3   : > { %v6257_v52 = vpop.f32.mrf.mxu2 }
 0x2f4   : > { %v6259_v20 = vpop.f32.mrf.mxu3 }
 0x2f5   : > { %v2068_v34 = vpop.f32.mrf.mxu1 }
 0x2f6   : > { %v6261_v55 = vadd.f32 %v2068_v34, %v2046_v48  ;;  %v2132_v15 = vpop.f32.mrf.mxu0  ;;  %v4339_v48 = vld [vmem:[%s7070_s5 + $0xf0] sm:$0xf] }
 0x2f7   : > { %v4340_v22 = vor.u32 %v4958_v37, %v4339_v48  ;;  %v4951_v48 = vld [vmem:[%s7070_s5 + $0xc4] sm:$0xf]  ;;  %v4316_v37 = vor.u32 %v4952_v24, %v4315_v47  ;;  %v4293_v24 = vld [vmem:[%s7070_s5 + $0x98] sm:$0xf0] }
 0x2fb   : > { %v1999_v16 = vpop.f32.mrf.mxu2 }
 0x2fc   : > { %v6263_v41 = vadd.f32 %v1999_v16, %v1977_v29  ;;  %v6265_v54 = vpop.f32.mrf.mxu3  ;;  %v4956_v16 = vld [vmem:[%s7070_s5 + $0xe4] sm:$0xf0] }
 0x2fd   : > { %v2070_v43 = vpop.f32.mrf.mxu1 }
 0x2fe   : > { %v6267_v10 = vpop.f32.mrf.mxu0  ;;  %v4955_v43 = vld [vmem:[%s7070_s5 + $0xe4] sm:$0xf] }
 0x303   : > { %v2001_v23 = vpop.f32.mrf.mxu2 }
 0x304   : > { %v6269_v9 = vpop.f32.mrf.mxu3 }
 0x305   : > { %v6271_v33 = vpop.f32.mrf.mxu1 }
 0x306   : > { %v2137_v30 = vpop.f32.mrf.mxu0 }
 0x30b   : > { %v2081_v8 = vpop.f32.mrf.mxu2 }
 0x30c   : > { %v2105_v7 = vadd.f32 %v2104_v11, %v2081_v8  ;;  %v6273_v56 = vpop.f32.mrf.mxu3  ;;  %v4960_v11 = vld [vmem:[%s7070_s5 + $0x104] sm:$0xf0] }
 0x30d   : > { %v6275_v53 = vpop.f32.mrf.mxu1 }
 0x30e   : > { %v6277_v35 = vadd.f32 %v2127_v6, %v2105_v7  ;;  %v2139_v18 = vpop.f32.mrf.mxu0  ;;  %v4344_v6 = vor.u32 %v4957_v12, %v4341_v27  ;;  %v4333_v7 = vld [vmem:[%s7070_s5 + $0xe8] sm:$0xf0]  ;;  %v4307_v27 = vld [vmem:[%s7070_s5 + $0xb0] sm:$0xf] }
 0x30f   : > { %v4336_v18 = vor.u32 %v4955_v43, %v4333_v7  ;;  %v4317_v12 = vld [vmem:[%s7070_s5 + $0xc8] sm:$0xf0]  ;;  %v4948_v7 = vld [vmem:[%s7070_s5 + $0xa4] sm:$0xf0] }
 0x310   : > { %v2210_v40 = vmax.f32 %v6241_v31, %v6277_v35  ;;  %2479 = vmatpush.bf16.msra.mxu2 %v4344_v6  ;;  %v4950_v6 = vld [vmem:[%s7070_s5 + $0xb4] sm:$0xf0]  ;;  %v2038_v31 = vadd.f32 %v6229_v1, %v6216_v58 }
 0x313   : > { %v6281_v26 = vpop.f32.mrf.mxu2 }
 0x314   : > { %v2208_v51 = vpop.f32.mrf.mxu3  ;;  %2480 = vmatpush.bf16.msra.mxu2 %v4336_v18  ;;  %v4947_v18 = vld [vmem:[%s7070_s5 + $0xa4] sm:$0xf] }
 0x315   : > { %v6283_v59 = vpop.f32.mrf.mxu1 }
 0x31b   : > { %v2086_v29 = vpop.f32.mrf.mxu2 }
 0x31c   : > { %v2110_v61 = vadd.f32 %v2109_v0, %v2086_v29  ;;  %v4348_v0 = vor.u32 %v4960_v11, %v4347_v28  ;;  %v4323_v29 = vld [vmem:[%s7070_s5 + $0xd0] sm:$0xf]  ;;  %v4953_v28 = vld [vmem:[%s7070_s5 + $0xd4] sm:$0xf]  ;;  %v4325_v11 = vld [vmem:[%s7070_s5 + $0xd8] sm:$0xf0] }
 0x31d   : > { %v6285_v17 = vpop.f32.mrf.mxu1  ;;  %v4328_v36 = vor.u32 %v4953_v28, %v4325_v11  ;;  %v4291_v11 = vld [vmem:[%s7070_s5 + $0x90] sm:$0xf] }
 0x31e   : > { %v6287_v63 = vadd.f32 %v2132_v15, %v2110_v61  ;;  %2432 = vmatpush.bf16.msra.mxu0 %v4348_v0  ;;  %v4331_v15 = vld [vmem:[%s7070_s5 + $0xe0] sm:$0xf]  ;;  %v4954_v61 = vld [vmem:[%s7070_s5 + $0xd4] sm:$0xf0] }
 0x31f   : > { %v4332_v8 = vor.u32 %v4956_v16, %v4331_v15  ;;  %2481 = vmatpush.bf16.msra.mxu2 %v4328_v36  ;;  %v4309_v15 = vld [vmem:[%s7070_s5 + $0xb8] sm:$0xf0]  ;;  %v4946_v36 = vld [vmem:[%s7070_s5 + $0x94] sm:$0xf0] }
 0x320   : > { %v2214_v45 = vmax.f32 %v6249_v19, %v6287_v63  ;;  %v4292_v47 = vor.u32 %v4946_v36, %v4291_v11  ;;  %v4942_v19 = vld [vmem:[%s7070_s5 + $0x74] sm:$0xf0]  ;;  %v4409_v36 = vld [vmem:[%s7070_s5 + $0x50] sm:$0xf] }
 0x322   : > { %2433 = vmatpush.bf16.msra.mxu0 %v4340_v22  ;;  %v4320_v22 = vor.u32 %v4951_v48, %v4317_v12 }
 0x323   : > { %v6291_v25 = vpop.f32.mrf.mxu2 }
 0x324   : > { %2482 = vmatpush.bf16.msra.mxu2 %v4320_v22  ;;  %v4961_v22 = vld [vmem:[%s7070_s5 + $0x114] sm:$0xf]  ;;  %v2112_v1 = vadd.f32 %v6236_v32, %v6291_v25 }
 0x325   : > { %v6302_v46 = vpop.f32.mrf.mxu1 }
 0x326   : > { %2434 = vmatpush.bf16.msra.mxu0 %v4332_v8  ;;  %v4299_v8 = vld [vmem:[%s7070_s5 + $0xa0] sm:$0xf] }
 0x32b   : > { %v2091_v3 = vpop.f32.mrf.mxu2 }
 0x32c   : > { %v2115_v34 = vadd.f32 %v2114_v5, %v2091_v3  ;;  %v4949_v3 = vld [vmem:[%s7070_s5 + $0xb4] sm:$0xf] }
 0x32d   : > { %v2162_v23 = vpop.f32.mrf.mxu1  ;;  %v4312_v16 = vor.u32 %v4949_v3, %v4309_v15 }
 0x32e   : > { %v6331_v5 = vadd.f32 %v2137_v30, %v2115_v34  ;;  %v4324_v30 = vor.u32 %v4954_v61, %v4323_v29  ;;  %v4308_v34 = vor.u32 %v4950_v6, %v4307_v27  ;;  %v4300_v29 = vor.u32 %v4948_v7, %v4299_v8  ;;  %v4301_v61 = vld [vmem:[%s7070_s5 + $0xa8] sm:$0xf0]  ;;  %v4357_v27 = vld [vmem:[%s7070_s5 + $0x118] sm:$0xf0] }
 0x32f   : > { %2483 = vmatpush.bf16.msra.mxu2 %v4312_v16  ;;  %v4304_v28 = vor.u32 %v4947_v18, %v4301_v61  ;;  %v2107_v6 = vadd.f32 %v6231_v44, %v6281_v26  ;;  %v2061_v16 = vadd.f32 %v6243_v38, %v2038_v31  ;;  %v4417_v61 = vld [vmem:[%s7070_s5 + $0x60] sm:$0xf] }
 0x330   : > { %v2218_v51 = vmax.f32 %v6263_v41, %v6331_v5  ;;  %2435 = vmatpush.bf16.msra.mxu0 %v4324_v30  ;;  %v4401_v31 = vld [vmem:[%s7070_s5 + $0x40] sm:$0xf]  ;;  %v4934_v41 = vld [vmem:[%s7070_s5 + $0x34] sm:$0xf0]  ;;  %v4933_v5 = vld [vmem:[%s7070_s5 + $0x34] sm:$0xf] }
 0x331   : > { %v2130_v44 = vadd.f32 %v6255_v60, %v2107_v6 }
 0x333   : > { %v2093_v0 = vpop.f32.mrf.mxu2  ;;  %2484 = vmatpush.bf16.msra.mxu2 %v4304_v28 }
 0x334   : > { %2436 = vmatpush.bf16.msra.mxu0 %v4316_v37  ;;  %v4355_v0 = vld [vmem:[%s7070_s5 + $0x110] sm:$0xf] }
 0x338   : > { %2437 = vmatpush.bf16.msra.mxu0 %v4308_v34  ;;  %v4360_v34 = vor.u32 %v4961_v22, %v4357_v27 }
 0x33a   : > { %2508 = vmatpush.bf16.msra.mxu3 %v4360_v34 }
 0x33b   : > { %v2173_v43 = vpop.f32.mrf.mxu2 }
 0x33c   : > { %v2174_v23 = vadd.f32 %v2173_v43, %v6271_v33  ;;  %2438 = vmatpush.bf16.msra.mxu0 %v4300_v29 }
 0x33e   : > { %v2197_v33 = vadd.f32 %v6251_v39, %v2174_v23  ;;  %v4962_v39 = vld [vmem:[%s7070_s5 + $0x114] sm:$0xf0] }
 0x33f   : > { %v4356_v37 = vor.u32 %v4962_v39, %v4355_v0  ;;  %v4938_v0 = vld [vmem:[%s7070_s5 + $0x54] sm:$0xf0]  ;;  %v4937_v39 = vld [vmem:[%s7070_s5 + $0x54] sm:$0xf] }
 0x340   : > { %v2211_v30 = vmax.f32 %v6238_v57, %v2197_v33  ;;  %v4945_v57 = vld [vmem:[%s7070_s5 + $0x94] sm:$0xf]  ;;  %2439 = vmatpush.bf16.msra.mxu0 %v4292_v47  ;;  %v4939_v33 = vld [vmem:[%s7070_s5 + $0x64] sm:$0xf]  ;;  %v4410_v27 = vor.u32 %v4938_v0, %v4409_v36 }
 0x341   : > { %v4296_v12 = vor.u32 %v4945_v57, %v4293_v24  ;;  %2462 = vmatpush.bf16.msra.mxu1 %v4356_v37  ;;  %v4411_v57 = vld [vmem:[%s7070_s5 + $0x58] sm:$0xf0] }
 0x342   : > { %v2220_v48 = vpack.c.bf16 %v2211_v30, %v2210_v40  ;;  %v1969_v40 = vadd.f32 %v6208_v42, %v6200_v14 }
 0x343   : > { %v2175_v3 = vpop.f32.mrf.mxu2  ;;  %2485 = vmatpush.bf16.msra.mxu2 %v4296_v12 }
 0x344   : > { %v2176_v15 = vadd.f32 %v2175_v3, %v6275_v53  ;;  %v1992_v26 = vadd.f32 %v6245_v2, %v1969_v40  ;;  %v2043_v2 = vadd.f32 %v6234_v13, %v6224_v62  ;;  %v2267_v60 = vunpack.c.l.b16 %v2220_v48  ;;  %v4941_v62 = vld [vmem:[%s7070_s5 + $0x74] sm:$0xf] }
 0x345   : > { %v2268_v29 = vunpack.c.h.b16 %v2220_v48 }
 0x346   : > { %v2199_v35 = vadd.f32 %v6259_v20, %v2176_v15  ;;  %v2212_v23 = vmax.f32 %v1992_v26, %v2130_v44  ;;  %v2066_v13 = vadd.f32 %v6253_v4, %v2043_v2  ;;  %v4940_v4 = vld [vmem:[%s7070_s5 + $0x64] sm:$0xf0]  ;;  %v4414_v15 = vor.u32 %v4937_v39, %v4411_v57  ;;  %v4403_v44 = vld [vmem:[%s7070_s5 + $0x48] sm:$0xf0]  ;;  %v4943_v39 = vld [vmem:[%s7070_s5 + $0x84] sm:$0xf] }
 0x347   : > { %v4418_v28 = vor.u32 %v4940_v4, %v4417_v61  ;;  %v4377_v61 = vld [vmem:[%s7070_s5 + $0x10] sm:$0xf]  ;;  %v4930_v4 = vld [vmem:[%s7070_s5 + $0x14] sm:$0xf0] }
 0x348   : > { %v2213_v43 = vmax.f32 %v2061_v16, %v2199_v35  ;;  %v4936_v35 = vld [vmem:[%s7070_s5 + $0x44] sm:$0xf0]  ;;  %v4935_v16 = vld [vmem:[%s7070_s5 + $0x44] sm:$0xf]  ;;  %v4378_v0 = vor.u32 %v4930_v4, %v4377_v61  ;;  %v4970_v61 = vld [vmem:[%s7070_s5 + $0x154] sm:$0xf0] }
 0x349   : > { %v4969_v4 = vld [vmem:[%s7070_s5 + $0x154] sm:$0xf] }
 0x34a   : > { %v2221_v7 = vpack.c.bf16 %v2213_v43, %v2212_v23 }
 0x34b   : > { %v2178_v53 = vpop.f32.mrf.mxu2 }
 0x34c   : > { %v2179_v8 = vadd.f32 %v2178_v53, %v6283_v59  ;;  %v2269_v14 = vunpack.c.l.b16 %v2221_v7  ;;  %v2270_v42 = vunpack.c.h.b16 %v2221_v7  ;;  %v1974_v59 = vadd.f32 %v6222_v50, %v6220_v21 }
 0x34d   : > { %v4402_v7 = vor.u32 %v4936_v35, %v4401_v31 }
 0x34e   : > { %v2202_v58 = vadd.f32 %v6265_v54, %v2179_v8  ;;  %v2135_v54 = vadd.f32 %v6267_v10, %v2112_v1  ;;  %v6448_v21 = vpack.c.b16 %v2269_v14, %v2267_v60  ;;  %v4427_v10 = vld [vmem:[%s7070_s5 + $0x78] sm:$0xf0]  ;;  %v6454_v63 = vpack.c.b16 %v2270_v42, %v2268_v29 }
 0x34f   : > { %v4430_v25 = vor.u32 %v4941_v62, %v4427_v10  ;;  %v4406_v14 = vor.u32 %v4935_v16, %v4403_v44  ;;  %v4385_v62 = vld [vmem:[%s7070_s5 + $0x20] sm:$0xf] }
 0x350   : > { %v2215_v20 = vmax.f32 %v6247_v49, %v2202_v58  ;;  %v4425_v49 = vld [vmem:[%s7070_s5 + $0x70] sm:$0xf]  ;;  %v2286_v47 = vshll.u32 %v6448_v21, 16  ;;  %v2298_v48 = vshll.u32 %v6454_v63, 16  ;;  %v2284_v53 = vshrl.u32 %v6448_v21, 16 }
 0x351   : > { %v4426_v50 = vor.u32 %v4942_v19, %v4425_v49  ;;  %2669 = vmatpush.bf16.msrb.mxu2 %v4430_v25  ;;  %v2296_v8 = vshrl.u32 %v6454_v63, 16  ;;  %v4395_v49 = vld [vmem:[%s7070_s5 + $0x38] sm:$0xf0]  ;;  %v4387_v25 = vld [vmem:[%s7070_s5 + $0x28] sm:$0xf0] }
 0x352   : > { %v2222_v38 = vpack.c.bf16 %v2215_v20, %v2214_v45  ;;  %v2288_v40 = vrot.slane %v2286_v47, 1  ;;  %v2300_v23 = vrot.slane %v2298_v48, 1  ;;  %v4398_v19 = vor.u32 %v4933_v5, %v4395_v49  ;;  %v4928_v48 = vld [vmem:[%s7070_s5 + $0x4] sm:$0xf0]  ;;  %v4497_v49 = vld [vmem:[%s7070_s5 + $0x160] sm:$0xf] }
 0x353   : > { %v2180_v18 = vpop.f32.mrf.mxu2  ;;  %2623 = vmatpush.bf16.msrb.mxu0 %v4426_v50  ;;  %v4931_v50 = vld [vmem:[%s7070_s5 + $0x24] sm:$0xf] }
 0x354   : > { %v2181_v32 = vadd.f32 %v2180_v18, %v6285_v17  ;;  %v1997_v17 = vadd.f32 %v6257_v52, %v1974_v59  ;;  %v4419_v52 = vld [vmem:[%s7070_s5 + $0x68] sm:$0xf0]  ;;  %v2271_v37 = vunpack.c.l.b16 %v2222_v38  ;;  %v2272_v12 = vunpack.c.h.b16 %v2222_v38 }
 0x355   : > { %v4422_v11 = vor.u32 %v4939_v33, %v4419_v52  ;;  %v2289_v42 = vor.u32 %v2288_v40, %v2284_v53  ;;  %v2301_v2 = vor.u32 %v2300_v23, %v2296_v8  ;;  %v4390_v33 = vor.u32 %v4931_v50, %v4387_v25  ;;  %v4379_v52 = vld [vmem:[%s7070_s5 + $0x18] sm:$0xf0]  ;;  %v4489_v25 = vld [vmem:[%s7070_s5 + $0x150] sm:$0xf] }
 0x356   : > { %v2204_v45 = vadd.f32 %v6269_v9, %v2181_v32  ;;  %v2216_v9 = vmax.f32 %v1997_v17, %v2135_v54  ;;  %v4393_v32 = vld [vmem:[%s7070_s5 + $0x30] sm:$0xf] }
 0x357   : > { %2624 = vmatpush.bf16.msrb.mxu0 %v4418_v28  ;;  %2670 = vmatpush.bf16.msrb.mxu2 %v4422_v11  ;;  %v4929_v28 = vld [vmem:[%s7070_s5 + $0x14] sm:$0xf] }
 0x358   : > { %v2217_v30 = vmax.f32 %v2066_v13, %v2204_v45  ;;  %v4932_v13 = vld [vmem:[%s7070_s5 + $0x24] sm:$0xf0]  ;;  %v4382_v57 = vor.u32 %v4929_v28, %v4379_v52  ;;  %v4491_v28 = vld [vmem:[%s7070_s5 + $0x158] sm:$0xf0] }
 0x359   : > { %v4386_v45 = vor.u32 %v4932_v13, %v4385_v62  ;;  %v4971_v62 = vld [vmem:[%s7070_s5 + $0x164] sm:$0xf]  ;;  %v4499_v13 = vld [vmem:[%s7070_s5 + $0x168] sm:$0xf0]  ;;  %v4494_v52 = vor.u32 %v4969_v4, %v4491_v28 }
 0x35a   : > { %v2223_v24 = vpack.c.bf16 %v2217_v30, %v2216_v9  ;;  %v4433_v9 = vld [vmem:[%s7070_s5 + $0x80] sm:$0xf]  ;;  %v4944_v30 = vld [vmem:[%s7070_s5 + $0x84] sm:$0xf0] }
 0x35b   : > { %v2183_v22 = vpop.f32.mrf.mxu2  ;;  %2625 = vmatpush.bf16.msrb.mxu0 %v4410_v27  ;;  %2671 = vmatpush.bf16.msrb.mxu2 %v4414_v15  ;;  %v4434_v47 = vor.u32 %v4944_v30, %v4433_v9  ;;  %v4481_v9 = vld [vmem:[%s7070_s5 + $0x140] sm:$0xf]  ;;  %v4968_v30 = vld [vmem:[%s7070_s5 + $0x144] sm:$0xf0] }
 0x35c   : > { %v2273_v6 = vunpack.c.l.b16 %v2223_v24  ;;  %v2274_v3 = vunpack.c.h.b16 %v2223_v24  ;;  %v2184_v34 = vadd.f32 %v2183_v22, %v6302_v46  ;;  %v4369_v24 = vld [vmem:[%s7070_s5] sm:$0xf]  ;;  %v4371_v22 = vld [vmem:[%s7070_s5 + $0x8] sm:$0xf0] }
 0x35d   : > { %2653 = vmatpush.bf16.msrb.mxu1 %v4434_v47 }
 0x35e   : > { %v6496_v46 = vpack.c.b16 %v2273_v6, %v2271_v37  ;;  %v6498_v26 = vpack.c.b16 %v2274_v3, %v2272_v12  ;;  %v2207_v43 = vadd.f32 %v6273_v56, %v2184_v34  ;;  %v4435_v37 = vld [vmem:[%s7070_s5 + $0x88] sm:$0xf0]  ;;  %v4927_v12 = vld [vmem:[%s7070_s5 + $0x4] sm:$0xf]  ;;  %v4370_v3 = vor.u32 %v4928_v48, %v4369_v24  ;;  %v4965_v24 = vld [vmem:[%s7070_s5 + $0x134] sm:$0xf] }
 0x35f   : > { %2626 = vmatpush.bf16.msrb.mxu0 %v4402_v7  ;;  %2672 = vmatpush.bf16.msrb.mxu2 %v4406_v14  ;;  %v4438_v27 = vor.u32 %v4943_v39, %v4435_v37  ;;  %v4374_v35 = vor.u32 %v4927_v12, %v4371_v22  ;;  %v4473_v39 = vld [vmem:[%s7070_s5 + $0x130] sm:$0xf]  ;;  %v4475_v48 = vld [vmem:[%s7070_s5 + $0x138] sm:$0xf0]  ;;  %v4529_v37 = vld [vmem:[%s7070_s5 + $0x1a0] sm:$0xf] }
 0x360   : > { %v2219_v58 = vmax.f32 %v6261_v55, %v2207_v43  ;;  %v2291_v1 = vshll.u32 %v6496_v46, 16  ;;  %v2303_v20 = vshll.u32 %v6498_v26, 16  ;;  %v2307_v6 = vshrl.u32 %v6496_v46, 16  ;;  %v4980_v12 = vld [vmem:[%s7070_s5 + $0x1a4] sm:$0xf0] }
 0x361   : > { %2699 = vmatpush.bf16.msrb.mxu3 %v4438_v27  ;;  %v2315_v15 = vshrl.u32 %v6498_v26, 16  ;;  %v4530_v22 = vor.u32 %v4980_v12, %v4529_v37  ;;  %v4979_v27 = vld [vmem:[%s7070_s5 + $0x1a4] sm:$0xf] }
 0x362   : > { %v2224_v56 = vpack.c.bf16 %v2219_v58, %v2218_v51  ;;  %v2293_v38 = vrot.slane %v2291_v1, 1  ;;  %v2305_v60 = vrot.slane %v2303_v20, 1  ;;  %v4394_v51 = vor.u32 %v4934_v41, %v4393_v32  ;;  %v4521_v58 = vld [vmem:[%s7070_s5 + $0x190] sm:$0xf]  ;;  %v4978_v1 = vld [vmem:[%s7070_s5 + $0x194] sm:$0xf0] }
 0x363   : > { %v2185_v18 = vpop.f32.mrf.mxu2  ;;  %2673 = vmatpush.bf16.msrb.mxu2 %v4398_v19  ;;  %v4977_v20 = vld [vmem:[%s7070_s5 + $0x194] sm:$0xf]  ;;  %v4522_v14 = vor.u32 %v4978_v1, %v4521_v58  ;;  %v4507_v41 = vld [vmem:[%s7070_s5 + $0x178] sm:$0xf0]  ;;  %v4972_v19 = vld [vmem:[%s7070_s5 + $0x164] sm:$0xf0] }
 0x364   : > { %v2275_v59 = vunpack.c.l.b16 %v2224_v56  ;;  %v2276_v54 = vunpack.c.h.b16 %v2224_v56  ;;  %v2294_v55 = vsel %vm566_vm2, %v2289_v42, %v2293_v38  ;;  %v2306_v29 = vsel %vm566_vm2, %v2301_v2, %v2305_v60  ;;  %2627 = vmatpush.bf16.msrb.mxu0 %v4394_v51  ;;  %v4523_v42 = vld [vmem:[%s7070_s5 + $0x198] sm:$0xf0]  ;;  %v4976_v2 = vld [vmem:[%s7070_s5 + $0x184] sm:$0xf0]  ;;  %v4973_v32 = vld [vmem:[%s7070_s5 + $0x174] sm:$0xf] }
 0x365   : > { %2440 = vmatmul.bf16.vlgmr.msra.gmra.mxu0 %v2294_v55  ;;  %4361 = vmatmul.msk.bf16.vlgmr.msra.gmra.mxu1 %vm2422_vm6, %v2306_v29  ;;  %v2309_v40 = vor.u32 %v2307_v6, %v2293_v38  ;;  %v2317_v16 = vor.u32 %v2315_v15, %v2305_v60  ;;  %v4526_v56 = vor.u32 %v4977_v20, %v4523_v42  ;;  %v4513_v38 = vld [vmem:[%s7070_s5 + $0x180] sm:$0xf]  ;;  %v4975_v60 = vld [vmem:[%s7070_s5 + $0x184] sm:$0xf] }
 0x366   : > { %2486 = vmatmul.bf16.vlgmr.msra.gmra.mxu2 %v2294_v55  ;;  %4364 = vmatmul.msk.bf16.vlgmr.msra.gmra.mxu3 %vm2422_vm6, %v2306_v29  ;;  %v6534_v10 = vpack.c.b16 %v2275_v59, %v2275_v59  ;;  %v6536_v17 = vpack.c.b16 %v2276_v54, %v2276_v54  ;;  %v4514_v18 = vor.u32 %v4976_v2, %v4513_v38  ;;  %v4515_v59 = vld [vmem:[%s7070_s5 + $0x188] sm:$0xf0]  ;;  %v4505_v55 = vld [vmem:[%s7070_s5 + $0x170] sm:$0xf]  ;;  %v4974_v29 = vld [vmem:[%s7070_s5 + $0x174] sm:$0xf0] }
 0x367   : > { %2674 = vmatpush.bf16.msrb.mxu2 %v4390_v33  ;;  %v4518_v54 = vor.u32 %v4975_v60, %v4515_v59  ;;  %v4506_v5 = vor.u32 %v4974_v29, %v4505_v55  ;;  %v4510_v51 = vor.u32 %v4973_v32, %v4507_v41  ;;  %v4498_v50 = vor.u32 %v4972_v19, %v4497_v49  ;;  %v4465_v15 = vld [vmem:[%s7070_s5 + $0x120] sm:$0xf] }
 0x368   : > { %v2311_v11 = vshll.u32 %v6534_v10, 16  ;;  %v2319_v36 = vshll.u32 %v6536_v17, 16  ;;  %2628 = vmatpush.bf16.msrb.mxu0 %v4386_v45  ;;  %v2323_v23 = vshrl.u32 %v6534_v10, 16  ;;  %v2326_v53 = vshrl.u32 %v6536_v17, 16  ;;  %2876 = vmatpush.bf16.msra.mxu1 %v4530_v22 }
 0x369   : > { %v4502_v45 = vor.u32 %v4971_v62, %v4499_v13  ;;  %v4490_v33 = vor.u32 %v4970_v61, %v4489_v25  ;;  %v2740_v20 = vrot.slane %v6534_v10, 1 }
 0x36a   : > { %v2313_v34 = vrot.slane %v2311_v11, 1  ;;  %v2321_v31 = vrot.slane %v2319_v36, 1  ;;  %v4967_v11 = vld [vmem:[%s7070_s5 + $0x144] sm:$0xf]  ;;  %v4482_v36 = vor.u32 %v4968_v30, %v4481_v9 }
 0x36b   : > { %2675 = vmatpush.bf16.msrb.mxu2 %v4382_v57  ;;  %v4966_v57 = vld [vmem:[%s7070_s5 + $0x134] sm:$0xf0] }
 0x36c   : > { %2629 = vmatpush.bf16.msrb.mxu0 %v4378_v0  ;;  %v2314_v44 = vsel %vm566_vm2, %v2309_v40, %v2313_v34  ;;  %v2322_v43 = vsel %vm566_vm2, %v2317_v16, %v2321_v31  ;;  %v2325_v8 = vor.u32 %v2323_v23, %v2313_v34  ;;  %v2328_v7 = vor.u32 %v2326_v53, %v2321_v31  ;;  %v4483_v0 = vld [vmem:[%s7070_s5 + $0x148] sm:$0xf0]  ;;  %v4964_v31 = vld [vmem:[%s7070_s5 + $0x124] sm:$0xf0]  ;;  %v4963_v40 = vld [vmem:[%s7070_s5 + $0x124] sm:$0xf] }
 0x36d   : > { %v4486_v47 = vor.u32 %v4967_v11, %v4483_v0  ;;  %v4474_v6 = vor.u32 %v4966_v57, %v4473_v39  ;;  %v4478_v34 = vor.u32 %v4965_v24, %v4475_v48  ;;  %v4467_v16 = vld [vmem:[%s7070_s5 + $0x128] sm:$0xf0]  ;;  %v2735_v23 = vrot.slane %v6496_v46, 1 }
 0x36e   : > { %v2738_v53 = vrot.slane %v6498_v26, 1 }
 0x36f   : > { %2676 = vmatpush.bf16.msrb.mxu2 %v4374_v35 }
 0x370   : > { %2630 = vmatpush.bf16.msrb.mxu0 %v4370_v3  ;;  %v4531_v3 = vld [vmem:[%s7070_s5 + $0x1a8] sm:$0xf0] }
 0x371   : > { %v4534_v35 = vor.u32 %v4979_v27, %v4531_v3 }
 0x373   : > { %2892 = vmatpush.bf16.msra.mxu2 %v4526_v56  ;;  %2922 = vmatpush.bf16.msra.mxu3 %v4534_v35 }
 0x374   : > { %2846 = vmatpush.bf16.msra.mxu0 %v4522_v14 }
 0x375   : > { %2445 = vmatmul.bf16.gmra.mxu0 %v2314_v44  ;;  %4362 = vmatmul.msk.bf16.gmra.mxu1 %vm2422_vm6, %v2322_v43 }
 0x376   : > { %2491 = vmatmul.bf16.gmra.mxu2 %v2314_v44  ;;  %4365 = vmatmul.msk.bf16.gmra.mxu3 %vm2422_vm6, %v2322_v43  ;;  %v4466_v44 = vor.u32 %v4964_v31, %v4465_v15  ;;  %v4470_v43 = vor.u32 %v4963_v40, %v4467_v16 }
 0x377   : > { %2893 = vmatpush.bf16.msra.mxu2 %v4518_v54 }
 0x378   : > { %2847 = vmatpush.bf16.msra.mxu0 %v4514_v18 }
 0x37b   : > { %2894 = vmatpush.bf16.msra.mxu2 %v4510_v51 }
 0x37c   : > { %2848 = vmatpush.bf16.msra.mxu0 %v4506_v5 }
 0x37f   : > { %2895 = vmatpush.bf16.msra.mxu2 %v4502_v45 }
 0x380   : > { %2849 = vmatpush.bf16.msra.mxu0 %v4498_v50 }
 0x383   : > { %2896 = vmatpush.bf16.msra.mxu2 %v4494_v52 }
 0x384   : > { %2850 = vmatpush.bf16.msra.mxu0 %v4490_v33 }
 0x385   : > { %2450 = vmatmul.bf16.gmra.mxu0 %v2325_v8  ;;  %4363 = vmatmul.msk.bf16.gmra.mxu1 %vm2422_vm6, %v2328_v7 }
 0x386   : > { %2496 = vmatmul.bf16.gmra.mxu2 %v2325_v8  ;;  %4366 = vmatmul.msk.bf16.gmra.mxu3 %vm2422_vm6, %v2328_v7  ;;  %v2734_v8 = vrot.slane %v6448_v21, 1  ;;  %v2737_v7 = vrot.slane %v6454_v63, 1 }
 0x387   : > { %2897 = vmatpush.bf16.msra.mxu2 %v4486_v47 }
 0x388   : > { %2851 = vmatpush.bf16.msra.mxu0 %v4482_v36  ;;  %v2736_v58 = vsel %vm1003_vm3, %v2734_v8, %v2735_v23  ;;  %v2739_v1 = vsel %vm1003_vm3, %v2737_v7, %v2738_v53 }
 0x38b   : > { %2898 = vmatpush.bf16.msra.mxu2 %v4478_v34 }
 0x38c   : > { %2852 = vmatpush.bf16.msra.mxu0 %v4474_v6 }
 0x38f   : > { %2899 = vmatpush.bf16.msra.mxu2 %v4470_v43 }
 0x390   : > { %2853 = vmatpush.bf16.msra.mxu0 %v4466_v44 }
 0x395   : > { %2631 = vmatmul.bf16.vlgmr.msrb.gmra.mxu0 %v6448_v21  ;;  %4439 = vmatmul.msk.bf16.vlgmr.msrb.gmra.mxu1 %vm2422_vm6, %v6454_v63 }
 0x396   : > { %2677 = vmatmul.bf16.vlgmr.msrb.gmra.mxu2 %v6448_v21  ;;  %4442 = vmatmul.msk.bf16.vlgmr.msrb.gmra.mxu3 %vm2422_vm6, %v6454_v63 }
 0x3a5   : > { %2636 = vmatmul.bf16.gmra.mxu0 %v6496_v46  ;;  %4440 = vmatmul.msk.bf16.gmra.mxu1 %vm2422_vm6, %v6498_v26 }
 0x3a6   : > { %2682 = vmatmul.bf16.gmra.mxu2 %v6496_v46  ;;  %4443 = vmatmul.msk.bf16.gmra.mxu3 %vm2422_vm6, %v6498_v26  ;;  %v2742_v46 = vrot.slane %v6536_v17, 1  ;;  %v2741_v26 = vsel %vm1003_vm3, %v2735_v23, %v2740_v20 }
 0x3a8   : > { %v2743_v21 = vsel %vm1003_vm3, %v2738_v53, %v2742_v46 }
 0x3b5   : > { %2641 = vmatmul.bf16.gmra.mxu0 %v6534_v10  ;;  %4441 = vmatmul.msk.bf16.gmra.mxu1 %vm2422_vm6, %v6536_v17 }
 0x3b6   : > { %2687 = vmatmul.bf16.gmra.mxu2 %v6534_v10  ;;  %4444 = vmatmul.msk.bf16.gmra.mxu3 %vm2422_vm6, %v6536_v17 }
 0x3c5   : > { %2854 = vmatmul.bf16.vlgmr.msra.gmra.mxu0 %v2736_v58  ;;  %4535 = vmatmul.msk.bf16.vlgmr.msra.gmra.mxu1 %vm2422_vm6, %v2739_v1 }
 0x3c6   : > { %2900 = vmatmul.bf16.vlgmr.msra.gmra.mxu2 %v2736_v58  ;;  %4538 = vmatmul.msk.bf16.vlgmr.msra.gmra.mxu3 %vm2422_vm6, %v2739_v1 }
 0x3d5   : > { %2859 = vmatmul.bf16.gmra.mxu0 %v2741_v26  ;;  %4536 = vmatmul.msk.bf16.gmra.mxu1 %vm2422_vm6, %v2743_v21 }
 0x3d6   : > { %2905 = vmatmul.bf16.gmra.mxu2 %v2741_v26  ;;  %4539 = vmatmul.msk.bf16.gmra.mxu3 %vm2422_vm6, %v2743_v21 }
 0x3e2   : > { %v2441_v63 = vpop.f32.mrf.mxu0  ;;  %v2464_v14 = vpop.f32.mrf.mxu1 }
 0x3e3   : > { %v2465_v42 = vadd.f32 %v2464_v14, %v2441_v63 }
 0x3e5   : > { %2864 = vmatmul.bf16.gmra.mxu0 %v2740_v20  ;;  %4537 = vmatmul.msk.bf16.gmra.mxu1 %vm2422_vm6, %v2742_v46 }
 0x3e6   : > { %2910 = vmatmul.bf16.gmra.mxu2 %v2740_v20  ;;  %4540 = vmatmul.msk.bf16.gmra.mxu3 %vm2422_vm6, %v2742_v46 }
 0x3e9   : > { %v2487_v10 = vpop.f32.mrf.mxu2  ;;  %v2510_v17 = vpop.f32.mrf.mxu3 }
 0x3ea   : > { %v2511_v56 = vadd.f32 %v2510_v17, %v2487_v10  ;;  %v2443_v38 = vpop.f32.mrf.mxu0  ;;  %v2466_v2 = vpop.f32.mrf.mxu1 }
 0x3eb   : > { %v2467_v0 = vadd.f32 %v2466_v2, %v2443_v38  ;;  %v2948_v2 = vld [vmem:[%s7071_s6] sm:$0x3] }
 0x3f1   : > { %v2489_v60 = vpop.f32.mrf.mxu2  ;;  %v2512_v18 = vpop.f32.mrf.mxu3 }
 0x3f2   : > { %v2446_v59 = vpop.f32.mrf.mxu0  ;;  %v2469_v54 = vpop.f32.mrf.mxu1  ;;  %v2513_v27 = vadd.f32 %v2512_v18, %v2489_v60  ;;  %v2950_v18 = vperm.slane %v2948_v2, 0 }
 0x3f3   : > { %v2470_v55 = vadd.f32 %v2469_v54, %v2446_v59 }
 0x3f9   : > { %v2492_v29 = vpop.f32.mrf.mxu2  ;;  %v2515_v32 = vpop.f32.mrf.mxu3 }
 0x3fa   : > { %v2516_v41 = vadd.f32 %v2515_v32, %v2492_v29  ;;  %v6731_v5 = vpop.f32.mrf.mxu0  ;;  %v6733_v51 = vpop.f32.mrf.mxu1 }
 0x401   : > { %v6735_v49 = vpop.f32.mrf.mxu2  ;;  %v6737_v19 = vpop.f32.mrf.mxu3 }
 0x402   : > { %v2451_v62 = vpop.f32.mrf.mxu0  ;;  %v2474_v13 = vpop.f32.mrf.mxu1 }
 0x403   : > { %v6739_v50 = vadd.f32 %v2474_v13, %v2451_v62 }
 0x409   : > { %v2497_v45 = vpop.f32.mrf.mxu2  ;;  %v2520_v25 = vpop.f32.mrf.mxu3 }
 0x40a   : > { %v6741_v61 = vadd.f32 %v2520_v25, %v2497_v45  ;;  %v2453_v4 = vpop.f32.mrf.mxu0  ;;  %v2476_v33 = vpop.f32.mrf.mxu1 }
 0x40b   : > { %v6756_v4 = vperm.slane %v2948_v2, 1 }
 0x411   : > { %v2499_v28 = vpop.f32.mrf.mxu2  ;;  %v2522_v52 = vpop.f32.mrf.mxu3 }
 0x412   : > { %v2632_v9 = vpop.f32.mrf.mxu0  ;;  %v2655_v30 = vpop.f32.mrf.mxu1 }
 0x413   : > { %v2633_v11 = vadd.f32 %v2632_v9, %v2465_v42 }
 0x415   : > { %v2656_v36 = vadd.f32 %v2655_v30, %v2633_v11 }
 0x419   : > { %v2678_v47 = vpop.f32.mrf.mxu2  ;;  %v2701_v39 = vpop.f32.mrf.mxu3 }
 0x41a   : > { %v2679_v57 = vadd.f32 %v2678_v47, %v2511_v56  ;;  %v2634_v24 = vpop.f32.mrf.mxu0  ;;  %v2657_v48 = vpop.f32.mrf.mxu1 }
 0x41b   : > { %v2635_v37 = vadd.f32 %v2634_v24, %v2467_v0 }
 0x41c   : > { %v2702_v12 = vadd.f32 %v2701_v39, %v2679_v57  ;;  %v2472_v57 = vadd.f32 %v6733_v51, %v6731_v5 }
 0x41d   : > { %v2658_v22 = vadd.f32 %v2657_v48, %v2635_v37 }
 0x421   : > { %v2680_v6 = vpop.f32.mrf.mxu2  ;;  %v2703_v3 = vpop.f32.mrf.mxu3 }
 0x422   : > { %v2681_v34 = vadd.f32 %v2680_v6, %v2513_v27  ;;  %v2637_v15 = vpop.f32.mrf.mxu0  ;;  %v2660_v31 = vpop.f32.mrf.mxu1 }
 0x423   : > { %v2638_v35 = vadd.f32 %v2637_v15, %v2470_v55 }
 0x424   : > { %v2704_v40 = vadd.f32 %v2703_v3, %v2681_v34 }
 0x425   : > { %v2661_v16 = vadd.f32 %v2660_v31, %v2638_v35 }
 0x429   : > { %v2683_v44 = vpop.f32.mrf.mxu2  ;;  %v2706_v43 = vpop.f32.mrf.mxu3 }
 0x42a   : > { %v2684_v23 = vadd.f32 %v2683_v44, %v2516_v41  ;;  %v2639_v53 = vpop.f32.mrf.mxu0  ;;  %v2662_v8 = vpop.f32.mrf.mxu1 }
 0x42b   : > { %v2640_v37 = vadd.f32 %v2639_v53, %v2472_v57  ;;  %v4609_v57 = vld [vmem:[%s7073_s8 + $0x60] sm:$0xf] }
 0x42c   : > { %v6743_v7 = vadd.f32 %v2706_v43, %v2684_v23 }
 0x42d   : > { %v2663_v35 = vadd.f32 %v2662_v8, %v2640_v37  ;;  %v4601_v37 = vld [vmem:[%s7073_s8 + $0x50] sm:$0xf] }
 0x431   : > { %v6745_v58 = vpop.f32.mrf.mxu2  ;;  %v6747_v1 = vpop.f32.mrf.mxu3 }
 0x432   : > { %v2642_v20 = vpop.f32.mrf.mxu0  ;;  %v2665_v46 = vpop.f32.mrf.mxu1 }
 0x439   : > { %v6749_v26 = vpop.f32.mrf.mxu2  ;;  %v6751_v21 = vpop.f32.mrf.mxu3 }
 0x43a   : > { %v2644_v63 = vpop.f32.mrf.mxu0  ;;  %v2667_v14 = vpop.f32.mrf.mxu1 }
 0x441   : > { %v2690_v42 = vpop.f32.mrf.mxu2  ;;  %v2713_v10 = vpop.f32.mrf.mxu3 }
 0x442   : > { %v2855_v17 = vpop.f32.mrf.mxu0  ;;  %v2878_v56 = vpop.f32.mrf.mxu1 }
 0x443   : > { %v2879_v38 = vadd.f32 %v2878_v56, %v2855_v17 }
 0x445   : > { %v2938_v60 = vadd.f32 %v2879_v38, %v2656_v36 }
 0x447   : > { %v2954_v62 = vadd.f32 %v2950_v18, %v2938_v60  ;;  %v2689_v60 = vadd.f32 %v6749_v26, %v6741_v61 }
 0x449   : > { %v2901_v59 = vpop.f32.mrf.mxu2  ;;  %v2924_v54 = vpop.f32.mrf.mxu3  ;;  %v2964_v33 = vmax.f32 %v2954_v62, 0.0 }
 0x44a   : > { %v2857_v55 = vpop.f32.mrf.mxu0  ;;  %v2880_v29 = vpop.f32.mrf.mxu1  ;;  %v2925_v41 = vadd.f32 %v2924_v54, %v2901_v59 }
 0x44b   : > { %v2881_v32 = vadd.f32 %v2880_v29, %v2857_v55 }
 0x44c   : > { %v2939_v25 = vadd.f32 %v2925_v41, %v2702_v12  ;;  %v2712_v41 = vadd.f32 %v6751_v21, %v2689_v60 }
 0x44d   : > { %v2940_v13 = vadd.f32 %v2881_v32, %v2658_v22 }
 0x44e   : > { %v2955_v47 = vadd.f32 %v6756_v4, %v2939_v25 }
 0x44f   : > { %v2956_v45 = vadd.f32 %v2950_v18, %v2940_v13 }
 0x450   : > { %v2965_v12 = vmax.f32 %v2955_v47, 0.0  ;;  %v4999_v47 = vld [vmem:[%s7073_s8 + $0x74] sm:$0xf0] }
 0x451   : > { %v2966_v28 = vmax.f32 %v2956_v45, 0.0  ;;  %v2903_v52 = vpop.f32.mrf.mxu2  ;;  %v2926_v9 = vpop.f32.mrf.mxu3 }
 0x452   : > { %v2927_v30 = vadd.f32 %v2926_v9, %v2903_v52  ;;  %v2860_v11 = vpop.f32.mrf.mxu0  ;;  %v2883_v36 = vpop.f32.mrf.mxu1 }
 0x453   : > { %v6758_v0 = vpack.c.bf16 %v2966_v28, %v2964_v33  ;;  %v2884_v24 = vadd.f32 %v2883_v36, %v2860_v11  ;;  %v4983_v36 = vld [vmem:[%s7072_s7 + $0x10] sm:$0xff] }
 0x454   : > { %v2941_v39 = vadd.f32 %v2927_v30, %v2704_v40  ;;  %v2643_v40 = vadd.f32 %v2642_v20, %v6739_v50 }
 0x455   : > { %v2942_v27 = vadd.f32 %v2884_v24, %v2661_v16  ;;  %v2518_v16 = vadd.f32 %v6737_v19, %v6735_v49  ;;  %v4997_v24 = vld [vmem:[%s7073_s8 + $0x64] sm:$0xf0] }
 0x456   : > { %v2957_v48 = vadd.f32 %v6756_v4, %v2941_v39  ;;  %v2666_v17 = vadd.f32 %v2665_v46, %v2643_v40  ;;  %v5009_v40 = vld [vmem:[%s7073_s8 + $0xc4] sm:$0xf0] }
 0x457   : > { %v2958_v43 = vadd.f32 %v2950_v18, %v2942_v27  ;;  %v2686_v8 = vadd.f32 %v6745_v58, %v2518_v16  ;;  %v4593_v27 = vld [vmem:[%s7073_s8 + $0x40] sm:$0xf] }
 0x458   : > { %v2967_v22 = vmax.f32 %v2957_v48, 0.0  ;;  %v4610_v48 = vor.u32 %v4997_v24, %v4609_v57 }
 0x459   : > { %v2906_v6 = vpop.f32.mrf.mxu2  ;;  %v2929_v3 = vpop.f32.mrf.mxu3  ;;  %v2968_v5 = vmax.f32 %v2958_v43, 0.0  ;;  %v2709_v59 = vadd.f32 %v6747_v1, %v2686_v8  ;;  %v4641_v8 = vld [vmem:[%s7073_s8 + $0xa0] sm:$0xf] }
 0x45a   : > { %v2862_v34 = vpop.f32.mrf.mxu0  ;;  %v2885_v15 = vpop.f32.mrf.mxu1  ;;  %v2975_v31 = vpack.c.bf16 %v2967_v22, %v2965_v12  ;;  %v2930_v54 = vadd.f32 %v2929_v3, %v2906_v6  ;;  %v4995_v12 = vld [vmem:[%s7073_s8 + $0x54] sm:$0xf0]  ;;  %v4993_v6 = vld [vmem:[%s7073_s8 + $0x44] sm:$0xf0]  ;;  %v4665_v3 = vld [vmem:[%s7073_s8 + $0xd0] sm:$0xf] }
 0x45b   : > { %v2886_v44 = vadd.f32 %v2885_v15, %v2862_v34  ;;  %v4602_v22 = vor.u32 %v4995_v12, %v4601_v37  ;;  %v5011_v34 = vld [vmem:[%s7073_s8 + $0xd4] sm:$0xf0]  ;;  %v4594_v15 = vor.u32 %v4993_v6, %v4593_v27  ;;  %v4988_v37 = vld [vmem:[%s7073_s8 + $0x24] sm:$0xf]  ;;  %v4579_v12 = vld [vmem:[%s7073_s8 + $0x28] sm:$0xf0] }
 0x45c   : > { %v2943_v45 = vadd.f32 %v2930_v54, %v6743_v7  ;;  %v4981_v7 = vld [vmem:[%s7072_s7] sm:$0xff]  ;;  %v5006_v27 = vld [vmem:[%s7073_s8 + $0xb4] sm:$0xf]  ;;  %v4651_v6 = vld [vmem:[%s7073_s8 + $0xb8] sm:$0xf0] }
 0x45d   : > { %v2944_v23 = vadd.f32 %v2886_v44, %v2663_v35  ;;  %v4585_v35 = vld [vmem:[%s7073_s8 + $0x30] sm:$0xf]  ;;  %v4991_v44 = vld [vmem:[%s7073_s8 + $0x34] sm:$0xf0] }
 0x45e   : > { %v2959_v25 = vadd.f32 %v6756_v4, %v2943_v45  ;;  %v4586_v43 = vor.u32 %v4991_v44, %v4585_v35  ;;  %v4643_v35 = vld [vmem:[%s7073_s8 + $0xa8] sm:$0xf0] }
 0x45f   : > { %v2960_v63 = vadd.f32 %v2950_v18, %v2944_v23  ;;  %v4657_v23 = vld [vmem:[%s7073_s8 + $0xc0] sm:$0xf] }
 0x460   : > { %v2969_v30 = vmax.f32 %v2959_v25, 0.0  ;;  %v5010_v25 = vld [vmem:[%s7073_s8 + $0xd4] sm:$0xf] }
 0x461   : > { %v2970_v51 = vmax.f32 %v2960_v63, 0.0  ;;  %v2908_v14 = vpop.f32.mrf.mxu2  ;;  %v2931_v42 = vpop.f32.mrf.mxu3  ;;  %v4577_v63 = vld [vmem:[%s7073_s8 + $0x20] sm:$0xf] }
 0x462   : > { %v2865_v53 = vpop.f32.mrf.mxu0  ;;  %v2888_v10 = vpop.f32.mrf.mxu1  ;;  %v2932_v50 = vadd.f32 %v2931_v42, %v2908_v14  ;;  %v4649_v14 = vld [vmem:[%s7073_s8 + $0xb0] sm:$0xf]  ;;  %v5007_v42 = vld [vmem:[%s7073_s8 + $0xb4] sm:$0xf0] }
 0x463   : > { %v2889_v56 = vadd.f32 %v2888_v10, %v2865_v53  ;;  %v2976_v38 = vpack.c.bf16 %v2970_v51, %v2968_v5  ;;  %v4658_v5 = vor.u32 %v5009_v40, %v4657_v23  ;;  %v4989_v51 = vld [vmem:[%s7073_s8 + $0x24] sm:$0xf0]  ;;  %v4650_v10 = vor.u32 %v5007_v42, %v4649_v14  ;;  %v4984_v40 = vld [vmem:[%s7073_s8 + $0x4] sm:$0xf]  ;;  %v4635_v14 = vld [vmem:[%s7073_s8 + $0x98] sm:$0xf0] }
 0x464   : > { %v2945_v62 = vadd.f32 %v2932_v50, %v2709_v59  ;;  %v4578_v53 = vor.u32 %v4989_v51, %v4577_v63  ;;  %v4561_v50 = vld [vmem:[%s7073_s8] sm:$0xf]  ;;  %v4633_v59 = vld [vmem:[%s7073_s8 + $0x90] sm:$0xf]  ;;  %v5002_v51 = vld [vmem:[%s7073_s8 + $0x94] sm:$0xf] }
 0x465   : > { %v2946_v2 = vadd.f32 %v2889_v56, %v2666_v17  ;;  %v4569_v17 = vld [vmem:[%s7073_s8 + $0x10] sm:$0xf]  ;;  %v4987_v56 = vld [vmem:[%s7073_s8 + $0x14] sm:$0xf0] }
 0x466   : > { %v2961_v1 = vadd.f32 %v6756_v4, %v2945_v62  ;;  %v4625_v62 = vld [vmem:[%s7073_s8 + $0x80] sm:$0xf] }
 0x467   : > { %v2962_v20 = vadd.f32 %v2950_v18, %v2946_v2  ;;  %v5005_v2 = vld [vmem:[%s7073_s8 + $0xa4] sm:$0xf0] }
 0x468   : > { %v2971_v52 = vmax.f32 %v2961_v1, 0.0  ;;  %v4642_v60 = vor.u32 %v5005_v2, %v4641_v8  ;;  %v4994_v1 = vld [vmem:[%s7073_s8 + $0x54] sm:$0xf]  ;;  %v4627_v8 = vld [vmem:[%s7073_s8 + $0x88] sm:$0xf0] }
 0x469   : > { %v2972_v55 = vmax.f32 %v2962_v20, 0.0  ;;  %v2911_v29 = vpop.f32.mrf.mxu2  ;;  %v2934_v32 = vpop.f32.mrf.mxu3  ;;  %v4985_v20 = vld [vmem:[%s7073_s8 + $0x4] sm:$0xf0] }
 0x46a   : > { %v2935_v49 = vadd.f32 %v2934_v32, %v2911_v29  ;;  %v2867_v19 = vpop.f32.mrf.mxu0  ;;  %v2890_v46 = vpop.f32.mrf.mxu1  ;;  %v2977_v11 = vpack.c.bf16 %v2971_v52, %v2969_v30  ;;  %v4562_v54 = vor.u32 %v4985_v20, %v4561_v50  ;;  %v4992_v30 = vld [vmem:[%s7073_s8 + $0x44] sm:$0xf] }
 0x46b   : > { %v2978_v58 = vpack.c.bf16 %v2972_v55, %v2972_v55  ;;  %v5003_v55 = vld [vmem:[%s7073_s8 + $0x94] sm:$0xf0]  ;;  %v4619_v19 = vld [vmem:[%s7073_s8 + $0x78] sm:$0xf0] }
 0x46c   : > { %v2947_v13 = vadd.f32 %v2935_v49, %v2712_v41  ;;  %v4634_v29 = vor.u32 %v5003_v55, %v4633_v59  ;;  %v4998_v49 = vld [vmem:[%s7073_s8 + $0x74] sm:$0xf] }
 0x46d   : > { %v3013_v61 = vsel %vm3011_vm7, %v2978_v58, 0  ;;  %v4622_v46 = vor.u32 %v4998_v49, %v4619_v19  ;;  %v5001_v58 = vld [vmem:[%s7073_s8 + $0x84] sm:$0xf0]  ;;  %v5016_v19 = vld [vmem:[%s7074_s9 + $0x20] sm:$0xff] }
 0x46e   : > { %v2963_v26 = vadd.f32 %v6756_v4, %v2947_v13  ;;  %3023 = vmatpush.bf16.msrb.mxu0 %v3013_v61  ;;  %v4982_v4 = vld [vmem:[%s7072_s7 + $0x8] sm:$0xff]  ;;  %v4996_v13 = vld [vmem:[%s7073_s8 + $0x64] sm:$0xf]  ;;  %v4626_v45 = vor.u32 %v5001_v58, %v4625_v62  ;;  %v5015_v62 = vld [vmem:[%s7074_s9 + $0x18] sm:$0xff] }
 0x46f   : > { %v4611_v61 = vld [vmem:[%s7073_s8 + $0x68] sm:$0xf0] }
 0x470   : > { %v2973_v18 = vmax.f32 %v2963_v26, 0.0  ;;  %v4614_v26 = vor.u32 %v4996_v13, %v4611_v61  ;;  %v5022_v13 = vld [vmem:[%s7074_s9 + $0x50] sm:$0xff] }
 0x471   : > { %v2913_v21 = vpop.f32.mrf.mxu2  ;;  %v2936_v33 = vpop.f32.mrf.mxu3 }
 0x472   : > { %3024 = vmatpush.bf16.msrb.mxu0 %v2976_v38  ;;  %v2979_v28 = vpack.c.bf16 %v2973_v18, %v2973_v18  ;;  %v4570_v38 = vor.u32 %v4987_v56, %v4569_v17  ;;  %v4603_v18 = vld [vmem:[%s7073_s8 + $0x58] sm:$0xf0]  ;;  %v4638_v56 = vor.u32 %v5002_v51, %v4635_v14 }
 0x473   : > { %v4667_v21 = vld [vmem:[%s7073_s8 + $0xd8] sm:$0xf0]  ;;  %v4606_v52 = vor.u32 %v4994_v1, %v4603_v18  ;;  %v5021_v1 = vld [vmem:[%s7074_s9 + $0x48] sm:$0xff] }
 0x474   : > { %v3016_v9 = vsel %vm3011_vm7, %v2979_v28, 0  ;;  %v4670_v33 = vor.u32 %v5010_v25, %v4667_v21  ;;  %v5013_v18 = vld [vmem:[%s7074_s9 + $0x8] sm:$0xff]  ;;  %v5020_v21 = vld [vmem:[%s7074_s9 + $0x40] sm:$0xff] }
 0x475   : > { %3047 = vmatpush.bf16.msrb.mxu1 %v3016_v9  ;;  %v5029_v25 = vld [vmem:[%s7074_s9 + $0x88] sm:$0xff] }
 0x476   : > { %3025 = vmatpush.bf16.msrb.mxu0 %v6758_v0  ;;  %v4617_v0 = vld [vmem:[%s7073_s8 + $0x70] sm:$0xf] }
 0x477   : > { %v4618_v39 = vor.u32 %v4999_v47, %v4617_v0  ;;  %v5008_v0 = vld [vmem:[%s7073_s8 + $0xc4] sm:$0xf]  ;;  %v4659_v47 = vld [vmem:[%s7073_s8 + $0xc8] sm:$0xf0] }
 0x478   : > { %v4662_v24 = vor.u32 %v5008_v0, %v4659_v47  ;;  %v5025_v47 = vld [vmem:[%s7074_s9 + $0x68] sm:$0xff] }
 0x479   : > { %3048 = vmatpush.bf16.msrb.mxu1 %v2977_v11  ;;  %4553 = vmatmul.msk.bf16.vlgmr.msrb.gmra.mxu0 %vm3001_vm8, %v4981_v7 }
 0x47a   : > { %3251 = vmatpush.bf16.msrb.mxu2 %v4618_v39 }
 0x47d   : > { %3049 = vmatpush.bf16.msrb.mxu1 %v2975_v31  ;;  %v4666_v31 = vor.u32 %v5011_v34, %v4665_v3  ;;  %v4986_v3 = vld [vmem:[%s7073_s8 + $0x14] sm:$0xf]  ;;  %v4654_v34 = vor.u32 %v5006_v27, %v4651_v6 }
 0x47e   : > { %3252 = vmatpush.bf16.msrb.mxu2 %v4610_v48 }
 0x47f   : > { %3271 = vmatpush.bf16.msrb.mxu3 %v4666_v31  ;;  %v5004_v31 = vld [vmem:[%s7073_s8 + $0xa4] sm:$0xf] }
 0x480   : > { %4556 = vmatmul.msk.bf16.vlgmr.msrb.gmra.mxu1 %vm3001_vm8, %v4981_v7  ;;  %v4595_v7 = vld [vmem:[%s7073_s8 + $0x48] sm:$0xf0]  ;;  %v4646_v23 = vor.u32 %v5004_v31, %v4643_v35 }
 0x481   : > { %v4598_v11 = vor.u32 %v4992_v30, %v4595_v7  ;;  %v5019_v30 = vld [vmem:[%s7074_s9 + $0x38] sm:$0xff] }
 0x482   : > { %3253 = vmatpush.bf16.msrb.mxu2 %v4602_v22  ;;  %v4582_v22 = vor.u32 %v4988_v37, %v4579_v12  ;;  %v5027_v7 = vld [vmem:[%s7074_s9 + $0x78] sm:$0xff] }
 0x483   : > { %3272 = vmatpush.bf16.msrb.mxu3 %v4658_v5  ;;  %v4563_v5 = vld [vmem:[%s7073_s8 + $0x8] sm:$0xf0] }
 0x484   : > { %v4566_v17 = vor.u32 %v4984_v40, %v4563_v5 }
 0x486   : > { %3254 = vmatpush.bf16.msrb.mxu2 %v4594_v15  ;;  %v4571_v15 = vld [vmem:[%s7073_s8 + $0x18] sm:$0xf0] }
 0x487   : > { %3273 = vmatpush.bf16.msrb.mxu3 %v4650_v10 }
 0x489   : > { %4554 = vmatmul.msk.bf16.gmra.mxu0 %vm3001_vm8, %v4982_v4 }
 0x48a   : > { %3255 = vmatpush.bf16.msrb.mxu2 %v4586_v43  ;;  %v4574_v43 = vor.u32 %v4986_v3, %v4571_v15 }
 0x48b   : > { %3274 = vmatpush.bf16.msrb.mxu3 %v4642_v60 }
 0x48e   : > { %3256 = vmatpush.bf16.msrb.mxu2 %v4578_v53 }
 0x48f   : > { %3275 = vmatpush.bf16.msrb.mxu3 %v4634_v29 }
 0x490   : > { %4557 = vmatmul.msk.bf16.gmra.mxu1 %vm3001_vm8, %v4982_v4  ;;  %v4990_v4 = vld [vmem:[%s7073_s8 + $0x34] sm:$0xf] }
 0x492   : > { %3257 = vmatpush.bf16.msrb.mxu2 %v4570_v38  ;;  %v5000_v38 = vld [vmem:[%s7073_s8 + $0x84] sm:$0xf] }
 0x493   : > { %3276 = vmatpush.bf16.msrb.mxu3 %v4626_v45  ;;  %v4630_v60 = vor.u32 %v5000_v38, %v4627_v8  ;;  %v5014_v45 = vld [vmem:[%s7074_s9 + $0x10] sm:$0xff]  ;;  %v5030_v38 = vld [vmem:[%s7076_s11] sm:$0xff] }
 0x496   : > { %3258 = vmatpush.bf16.msrb.mxu2 %v4562_v54 }
 0x497   : > { %3307 = vmatpush.bf16.msra.mxu3 %v4670_v33  ;;  %v5012_v33 = vld [vmem:[%s7074_s9] sm:$0xff] }
 0x499   : > { %4555 = vmatmul.msk.bf16.gmra.mxu0 %vm3001_vm8, %v4983_v36 }
 0x49a   : > { %3287 = vmatpush.bf16.msra.mxu2 %v4622_v46  ;;  %v5023_v46 = vld [vmem:[%s7074_s9 + $0x58] sm:$0xff] }
 0x49b   : > { %3308 = vmatpush.bf16.msra.mxu3 %v4662_v24  ;;  %3395 = vmatpush.bf16.msra.mxu0 %v5023_v46  ;;  %v5055_v46 = vld [vmem:[%s7077_s12] ss:$0 sm:$0xff] }
 0x49e   : > { %3288 = vmatpush.bf16.msra.mxu2 %v4614_v26 }
 0x49f   : > { %3309 = vmatpush.bf16.msra.mxu3 %v4654_v34  ;;  %3396 = vmatpush.bf16.msra.mxu0 %v5022_v13 }
 0x4a0   : > { %4558 = vmatmul.msk.bf16.gmra.mxu1 %vm3001_vm8, %v4983_v36  ;;  %v4587_v36 = vld [vmem:[%s7073_s8 + $0x38] sm:$0xf0] }
 0x4a1   : > { %v4590_v57 = vor.u32 %v4990_v4, %v4587_v36  ;;  %v5026_v4 = vld [vmem:[%s7074_s9 + $0x70] sm:$0xff] }
 0x4a2   : > { %3289 = vmatpush.bf16.msra.mxu2 %v4606_v52 }
 0x4a3   : > { %3310 = vmatpush.bf16.msra.mxu3 %v4646_v23  ;;  %3397 = vmatpush.bf16.msra.mxu0 %v5021_v1 }
 0x4a6   : > { %3290 = vmatpush.bf16.msra.mxu2 %v4598_v11  ;;  %v5018_v11 = vld [vmem:[%s7074_s9 + $0x30] sm:$0xff] }
 0x4a7   : > { %3311 = vmatpush.bf16.msra.mxu3 %v4638_v56  ;;  %3398 = vmatpush.bf16.msra.mxu0 %v5020_v21  ;;  %v5031_v56 = vld [vmem:[%s7076_s11 + $0x8] sm:$0xff] }
 0x4aa   : > { %3291 = vmatpush.bf16.msra.mxu2 %v4590_v57 }
 0x4ab   : > { %3312 = vmatpush.bf16.msra.mxu3 %v4630_v60  ;;  %3399 = vmatpush.bf16.msra.mxu0 %v5019_v30 }
 0x4ae   : > { %3292 = vmatpush.bf16.msra.mxu2 %v4582_v22 }
 0x4af   : > { %3400 = vmatpush.bf16.msra.mxu0 %v5018_v11 }
 0x4b2   : > { %3293 = vmatpush.bf16.msra.mxu2 %v4574_v43 }
 0x4b6   : > { %3294 = vmatpush.bf16.msra.mxu2 %v4566_v17  ;;  %v5032_v17 = vld [vmem:[%s7076_s11 + $0x10] sm:$0xff] }
 0x4f6   : > { %v6842_v16 = vpop.f32.mrf.mxu0 }
 0x4fd   : > { %v6868_v32 = vpop.f32.mrf.mxu1 }
 0x4fe   : > { %v3029_v41 = vpop.f32.mrf.mxu0 }
 0x505   : > { %v3053_v28 = vpop.f32.mrf.mxu1 }
 0x506   : > { %v3032_v9 = vpop.f32.mrf.mxu0 }
 0x50d   : > { %v3056_v39 = vpop.f32.mrf.mxu1 }
 0x50e   : > { %v3034_v48 = vpop.f32.mrf.mxu0 }
 0x50f   : > { %v3066_v42 = vmax.f32 %v6842_v16, %v3034_v48 }
 0x515   : > { %v3058_v44 = vpop.f32.mrf.mxu1 }
 0x516   : > { %v3037_v63 = vpop.f32.mrf.mxu0  ;;  %v3067_v16 = vmax.f32 %v6868_v32, %v3058_v44  ;;  %v5017_v32 = vld [vmem:[%s7074_s9 + $0x28] sm:$0xff] }
 0x517   : > { %v3068_v53 = vmax.f32 %v3029_v41, %v3037_v63  ;;  %3447 = vmatpush.bf16.msra.mxu1 %v5017_v32  ;;  %v5037_v32 = vld [vmem:[%s7078_s13 + $0x8] sm:$0xff] }
 0x518   : > { %3630 = vmatpush.bf16.msrb.mxu0 %v5037_v32 }
 0x519   : > { %v3072_v10 = vpack.c.bf16 %v3068_v53, %v3066_v42  ;;  %v5035_v42 = vld [vmem:[%s7076_s11 + $0x28] sm:$0xff]  ;;  %v5034_v53 = vld [vmem:[%s7076_s11 + $0x20] sm:$0xff] }
 0x51b   : > { %3259 = vmatmul.bf16.vlgmr.msrb.gmra.mxu2 %v3072_v10  ;;  %3448 = vmatpush.bf16.msra.mxu1 %v5016_v19  ;;  %v5036_v19 = vld [vmem:[%s7078_s13] sm:$0xff] }
 0x51c   : > { %3512 = vmatpush.bf16.msrb.mxu2 %v5029_v25  ;;  %3631 = vmatpush.bf16.msrb.mxu0 %v5036_v19 }
 0x51d   : > { %v3061_v2 = vpop.f32.mrf.mxu1 }
 0x51e   : > { %v3069_v50 = vmax.f32 %v3053_v28, %v3061_v2  ;;  %v3039_v59 = vpop.f32.mrf.mxu0  ;;  %v5028_v28 = vld [vmem:[%s7074_s9 + $0x80] sm:$0xff] }
 0x51f   : > { %v3070_v54 = vmax.f32 %v3032_v9, %v3039_v59  ;;  %3449 = vmatpush.bf16.msra.mxu1 %v5015_v62 }
 0x520   : > { %v3073_v20 = vpack.c.bf16 %v3069_v50, %v3067_v16  ;;  %3513 = vmatpush.bf16.msrb.mxu2 %v5028_v28 }
 0x521   : > { %v3074_v55 = vpack.c.bf16 %v3070_v54, %v3070_v54 }
 0x522   : > { %4671 = vmatmul.msk.bf16.vlgmr.msrb.gmra.mxu3 %vm3244_vm9, %v3073_v20 }
 0x523   : > { %3450 = vmatpush.bf16.msra.mxu1 %v5014_v45  ;;  %3588 = vmatpush.bf16.msrb.mxu3 %v5035_v42 }
 0x524   : > { %3514 = vmatpush.bf16.msrb.mxu2 %v5027_v7 }
 0x525   : > { %v3063_v29 = vpop.f32.mrf.mxu1 }
 0x526   : > { %v3071_v41 = vmax.f32 %v3056_v39, %v3063_v29  ;;  %v5024_v39 = vld [vmem:[%s7074_s9 + $0x60] sm:$0xff] }
 0x527   : > { %3451 = vmatpush.bf16.msra.mxu1 %v5013_v18  ;;  %3589 = vmatpush.bf16.msrb.mxu3 %v5034_v53 }
 0x528   : > { %v3075_v49 = vpack.c.bf16 %v3071_v41, %v3071_v41  ;;  %3515 = vmatpush.bf16.msrb.mxu2 %v5026_v4 }
 0x52b   : > { %3264 = vmatmul.bf16.gmra.mxu2 %v3074_v55  ;;  %3452 = vmatpush.bf16.msra.mxu1 %v5012_v33 }
 0x52c   : > { %3516 = vmatpush.bf16.msrb.mxu2 %v5025_v47 }
 0x530   : > { %3517 = vmatpush.bf16.msrb.mxu2 %v5024_v39 }
 0x532   : > { %4672 = vmatmul.msk.bf16.gmra.mxu3 %vm3244_vm9, %v3075_v49 }
 0x53b   : > { %3295 = vmatmul.bf16.vlgmr.msra.gmra.mxu2 %v3072_v10  ;;  %v5033_v10 = vld [vmem:[%s7076_s11 + $0x18] sm:$0xff] }
 0x53c   : > { %3590 = vmatpush.bf16.msrb.mxu3 %v5033_v10 }
 0x540   : > { %3591 = vmatpush.bf16.msrb.mxu3 %v5032_v17 }
 0x542   : > { %4673 = vmatmul.msk.bf16.vlgmr.msra.gmra.mxu3 %vm3244_vm9, %v3073_v20  ;;  %v5054_v20 = vld [vmem:[%s7075_s10] ss:$0 sm:$0xff] }
 0x544   : > { %3592 = vmatpush.bf16.msrb.mxu3 %v5031_v56 }
 0x548   : > { %3593 = vmatpush.bf16.msrb.mxu3 %v5030_v38 }
 0x54b   : > { %3300 = vmatmul.bf16.gmra.mxu2 %v3074_v55 }
 0x552   : > { %4674 = vmatmul.msk.bf16.gmra.mxu3 %vm3244_vm9, %v3075_v49 }
 0x59e   : > { %v3260_v58 = vpop.f32.mrf.mxu2 }
 0x5a5   : > { %v3278_v61 = vpop.f32.mrf.mxu3 }
 0x5a6   : > { %v3262_v26 = vpop.f32.mrf.mxu2  ;;  %v3279_v37 = vadd.f32 %v3278_v61, %v3260_v58 }
 0x5ad   : > { %v3280_v52 = vpop.f32.mrf.mxu3 }
 0x5ae   : > { %v3265_v9 = vpop.f32.mrf.mxu2  ;;  %v3281_v34 = vadd.f32 %v3280_v52, %v3262_v26  ;;  %v5056_v26 = vld [vmem:[%s7079_s14] ss:$0 sm:$0xff] }
 0x5b5   : > { %v3283_v36 = vpop.f32.mrf.mxu3 }
 0x5b6   : > { %v3267_v0 = vpop.f32.mrf.mxu2  ;;  %v3284_v23 = vadd.f32 %v3283_v36, %v3265_v9 }
 0x5bd   : > { %v3285_v57 = vpop.f32.mrf.mxu3 }
 0x5be   : > { %v3296_v24 = vpop.f32.mrf.mxu2 }
 0x5c5   : > { %v3314_v48 = vpop.f32.mrf.mxu3 }
 0x5c6   : > { %v3315_v12 = vadd.f32 %v3314_v48, %v3296_v24  ;;  %v3298_v22 = vpop.f32.mrf.mxu2 }
 0x5c8   : > { %v3323_v27 = vmax.f32 %v3279_v37, %v3315_v12 }
 0x5ca   : > { %v3326_v6 = vpack.c.bf16 %v3323_v27, %v3323_v27 }
 0x5cc   : > { %4736 = vmatmul.msk.bf16.vlgmr.msra.gmra.mxu1 %vm3244_vm9, %v3326_v6 }
 0x5cd   : > { %v3316_v3 = vpop.f32.mrf.mxu3 }
 0x5ce   : > { %v3317_v15 = vadd.f32 %v3316_v3, %v3298_v22  ;;  %v3301_v31 = vpop.f32.mrf.mxu2 }
 0x5d0   : > { %v3324_v35 = vmax.f32 %v3281_v34, %v3317_v15 }
 0x5d2   : > { %v3327_v44 = vpack.c.bf16 %v3324_v35, %v3324_v35 }
 0x5d4   : > { %4711 = vmatmul.msk.bf16.vlgmr.msra.gmra.mxu0 %vm3244_vm9, %v3327_v44 }
 0x5d5   : > { %v3319_v43 = vpop.f32.mrf.mxu3 }
 0x5d6   : > { %v3320_v40 = vadd.f32 %v3319_v43, %v3301_v31  ;;  %v3303_v63 = vpop.f32.mrf.mxu2 }
 0x5d8   : > { %v3325_v5 = vmax.f32 %v3284_v23, %v3320_v40 }
 0x5da   : > { %v3328_v51 = vpack.c.bf16 %v3325_v5, %v3325_v5 }
 0x5dc   : > { %4773 = vmatmul.msk.bf16.vlgmr.msrb.gmra.mxu2 %vm3244_vm9, %v3328_v51 }
 0x5dd   : > { %v3321_v14 = vpop.f32.mrf.mxu3 }
 0x649   : > { %v3454_v8 = vpop.f32.mrf.mxu1 }
 0x651   : > { %v3402_v2 = vpop.f32.mrf.mxu0  ;;  %v3456_v60 = vpop.f32.mrf.mxu1 }
 0x652   : > { %v3455_v50 = vadd.f32 %v3454_v8, %v3402_v2 }
 0x659   : > { %v3404_v16 = vpop.f32.mrf.mxu0 }
 0x65f   : > { %v3519_v59 = vpop.f32.mrf.mxu2 }
 0x660   : > { %v3523_v54 = vadd.f32 %v3519_v59, %v3455_v50 }
 0x662   : > { %v3528_v55 = vadd.f32 %v5054_v20, %v3523_v54 }
 0x664   : > { %v3529_v29 = vmax.f32 %v3528_v55, 0.0 }
 0x666   : > { %v3530_v41 = vpack.c.bf16 %v3529_v29, %v3529_v29 }
 0x667   : > { %v3521_v49 = vpop.f32.mrf.mxu2 }
 0x668   : > { %4798 = vmatmul.msk.bf16.vlgmr.msrb.gmra.mxu3 %vm3244_vm9, %v3530_v41 }
 0x6eb   : > { %v3595_v62 = vpop.f32.mrf.mxu3 }
 0x6ec   : > { %v3596_v58 = vadd.f32 %v5055_v46, %v3595_v62 }
 0x6ee   : > { %v3599_v13 = vmax.f32 %v3596_v58, 0.0 }
 0x6f0   : > { %v3600_v45 = vpack.c.bf16 %v3599_v13, %v3599_v13 }
 0x6f2   : > { %4807 = vmatmul.msk.bf16.vlgmr.msrb.gmra.mxu0 %vm1924_vm5, %v3600_v45 }
 0x6f3   : > { %v3597_v61 = vpop.f32.mrf.mxu3 }
 0x76f   : > { %v3633_v1 = vpop.f32.mrf.mxu0 }
 0x770   : > { %v3634_v18 = vadd.f32 %v5056_v26, %v3633_v1 }
 0x772   : > { %3638 = vst.msk [vmem:[%s492_s27] sm:$0xf] %vm3637_vm10, %v3634_v18 }
 0x777   : > { %v3635_v25 = vpop.f32.mrf.mxu0 }
 0x778 PF: > { %s25_s18 = sadd.s32 1, %s5063_s18  }
 0x779   : > { %p22_p4 = scmp.ge.s32.totalorder %s25_s18, 4  }
 0x77b   :  { %24 = sbr.rel (!%p22_p4) target bundleno = 1 (0x1), region = 116 }

</bundles_post_ra>
